<compile_context>
chip_gen: v6e
topology: v6e:2x2x1
jax: 0.10.0
libtpu: 0.0.40
codegen_flags: <defaults>
</compile_context>

<pallas_src>
import functools

import jax
import jax.numpy as jnp
from jax.experimental import pallas as pl
from jax.experimental.pallas import tpu as pltpu

# Spatial constants (28x28 input, as implied by fc(1600) = 64*5*5)
H1, W1 = 13, 13       # conv1+pool output (real)
W1P = 16              # conv1+pool width padded to a multiple of 8 (cols 13..15 are junk)
W2IN = 24             # width of the zero-widened image stage 2 slices from (>= 2+16)
G2H, G2W = 11, 16     # conv2 grid held in-kernel (real cols 0..10; cols 11..15 junk, never read)
K1 = 37               # 4 pool windows * 9 taps (Cin=1) + 1 ones-column (bias fold)
K2 = 288              # 3*3*32


# ----------------------------- fused Pallas kernel ------------------------------

def fused_extractor_kernel(p1_ref, w1_ref, w2_ref, b2_ref, wf_ref, bf_ref, o_ref, *, bf16_epi):
    bb = o_ref.shape[0]
    edt = jnp.bfloat16 if bf16_epi else jnp.float32

    # ---- stage 1: conv1(1->32,k3) + bias (folded) + ReLU + 2x2 max-pool (single matmul) ----
    # p1 rows = (batch, pooled_y, pooled_x padded to W1P); lanes = pool_window*9 + tap, +ones.
    h1 = jnp.dot(p1_ref[...], w1_ref[...], preferred_element_type=jnp.float32)  # (bb*H1*W1P, 128)
    h1 = jnp.maximum(h1.astype(edt), 0.0)
    f1 = jnp.maximum(jnp.maximum(h1[:, 0:32], h1[:, 32:64]),
                     jnp.maximum(h1[:, 64:96], h1[:, 96:128]))                  # (bb*H1*W1P, 32)
    img = f1.astype(jnp.bfloat16).reshape(bb, H1, W1P, 32)       # tile-aligned (W1P % 8 == 0)
    # widen 16 -> 24 columns (8-aligned zero concat) so the dx in {0,1,2} taps can slice width 16
    img = jnp.concatenate(
        [img, jnp.zeros((bb, H1, W2IN - W1P, 32), jnp.bfloat16)], axis=2)       # (bb, 13, 24, 32)

    # ---- stage 2: conv2(32->64,k3) + bias + ReLU on an 11x16 grid (single matmul) ----
    taps = [img[:, dy:dy + G2H, dx:dx + G2W, :] for dy in range(3) for dx in range(3)]
    p2 = jnp.concatenate(taps, axis=-1)                          # (bb, 11, 16, 288), tap-major/ci-minor
    h2 = jnp.dot(p2.reshape(bb * G2H * G2W, K2), w2_ref[...],
                 preferred_element_type=jnp.float32)             # (bb*176, 64)
    h2 = jnp.maximum(h2.astype(edt) + b2_ref[...].astype(edt), 0.0)
    h2 = h2.reshape(bb, G2H, G2W, 64)

    # ---- 2x2 max-pool (11x11 -> 5x5; row/col 10+ dropped) + flatten, (y,x,c) order ----
    h2p = h2[:, 0:10].reshape(bb, 5, 2, G2W, 64)                 # split outer dim: free
    hy = jnp.maximum(h2p[:, :, 0], h2p[:, :, 1])                 # (bb, 5, 16, 64)  y-pool
    cols = [jnp.maximum(hy[:, :, 2 * x, :], hy[:, :, 2 * x + 1, :]) for x in range(5)]
    fy = jnp.concatenate(cols, axis=-1)                          # (bb, 5, 320)     x-pool
    feat = jnp.concatenate([fy[:, y, :] for y in range(5)], axis=-1)              # (bb, 1600)
    feat = feat.astype(jnp.bfloat16)

    # ---- fc(1600 -> 128) (feature order matches the pre-permuted wf) ----
    o_ref[...] = jnp.dot(feat, wf_ref[...], preferred_element_type=jnp.float32) + bf_ref[...]


# ------------------------------ host-side helpers --------------------------------

def build_p1(x_img):
    """x_img: (B, 28, 28) f32 -> (B*H1*W1P, 37) bf16 pool-grouped, window-in-lane im2col (+ones)."""
    B = x_img.shape[0]
    cols = []
    for a in range(2):
        for bwin in range(2):
            for dy in range(3):
                for dx in range(3):
                    cols.append(x_img[:, a + dy: a + dy + 26: 2, bwin + dx: bwin + dx + 26: 2])
    p = jnp.stack(cols, axis=-1)                                  # (B, 13, 13, 36)
    ones = jnp.ones(p.shape[:-1] + (1,), p.dtype)                 # bias-fold column
    p = jnp.concatenate([p, ones], axis=-1)                       # (B, 13, 13, 37)
    p = jnp.pad(p, ((0, 0), (0, 0), (0, W1P - W1), (0, 0)))       # pad pooled width 13 -> 16
    return p.reshape(B * H1 * W1P, K1).astype(jnp.bfloat16)


def prepare_params(params):
    """Permute/cast PyTorch-layout weights ONCE (outside the jitted forward)."""
    w1, b1, w2, b2, wf, bf = params
    w1k = jnp.transpose(w1, (2, 3, 1, 0)).reshape(9, 32)          # row = dy*3+dx (Cin=1)
    w1bd = jnp.zeros((K1, 128), jnp.float32)
    for w in range(4):                                            # block-diagonal: one block per pool window
        w1bd = w1bd.at[w * 9:(w + 1) * 9, w * 32:(w + 1) * 32].set(w1k)
    w1bd = w1bd.at[36, :].set(jnp.tile(b1, 4))                    # bias row (ones-column fold)
    w1bd = w1bd.astype(jnp.bfloat16)
    w2k = jnp.transpose(w2, (2, 3, 1, 0)).reshape(K2, 64).astype(jnp.bfloat16)   # row = (dy*3+dx)*32+ci
    b2r = b2.reshape(1, 64).astype(jnp.float32)
    # FC weight permuted so feature row order is (pool_y, pool_x, channel) — matches kernel flatten.
    wfk = jnp.transpose(wf.reshape(128, 64, 5, 5), (2, 3, 1, 0)).reshape(1600, 128).astype(jnp.bfloat16)
    bfr = bf.reshape(1, 128).astype(jnp.float32)
    return (w1bd, w2k, b2r, wfk, bfr)


def _tpu_config():
    """Generation-aware defaults: batch block, vmem limit, epilogue dtype. Sweep block_b for best perf."""
    kind = ""
    try:
        kind = jax.devices()[0].device_kind.lower()
    except Exception:
        pass
    if "v7" in kind:
        # 64 MiB VMEM: keep bb moderate; at large B, Bpad//bb >= 2 lets the 2 TCs split the grid.
        return dict(block_b=32, vmem_mb=48, bf16_epi=True)
    if "v6" in kind:
        return dict(block_b=96, vmem_mb=96, bf16_epi=True)
    if "v5e" in kind or "v5 lite" in kind or "v5lite" in kind:
        return dict(block_b=64, vmem_mb=96, bf16_epi=False)       # v5e VPU has no bf16 ALUs
    return dict(block_b=32, vmem_mb=48, bf16_epi=True)


def feature_extractor_forward(x_nchw, prep, *, block_b=32, vmem_mb=48, bf16_epi=True):
    w1bd, w2k, b2r, wfk, bfr = prep
    B = x_nchw.shape[0]
    x = x_nchw[:, 0, :, :].astype(jnp.float32)                    # (B, 28, 28), Cin = 1

    bb = block_b if B >= block_b else B
    Bpad = ((B + bb - 1) // bb) * bb
    if Bpad != B:
        x = jnp.pad(x, ((0, Bpad - B), (0, 0), (0, 0)))

    p1 = build_p1(x)                                              # (Bpad*H1*W1P, 37) bf16
    rows_blk = bb * H1 * W1P

    flops = 2 * (H1 * W1P * K1 * 128 + G2H * G2W * K2 * 64 + 1600 * 128) * Bpad
    bytes_acc = (p1.size * 2
                 + (K1 * 128 + K2 * 64 + 64 + 1600 * 128 + 128) * 2
                 + Bpad * 128 * 4)

    kernel = functools.partial(fused_extractor_kernel, bf16_epi=bf16_epi)

    out = pl.pallas_call(
        kernel,
        out_shape=jax.ShapeDtypeStruct((Bpad, 128), jnp.float32),
        grid=(Bpad // bb,),
        in_specs=[
            pl.BlockSpec((rows_blk, K1), lambda n: (n, 0)),       # stage-1 patches (batch block)
            pl.BlockSpec((K1, 128), lambda n: (0, 0)),            # resident weights / biases
            pl.BlockSpec((K2, 64), lambda n: (0, 0)),
            pl.BlockSpec((1, 64), lambda n: (0, 0)),
            pl.BlockSpec((1600, 128), lambda n: (0, 0)),
            pl.BlockSpec((1, 128), lambda n: (0, 0)),
        ],
        out_specs=pl.BlockSpec((bb, 128), lambda n: (n, 0)),
        compiler_params=pltpu.CompilerParams(
            dimension_semantics=("parallel",),
            vmem_limit_bytes=vmem_mb * 1024 * 1024),
        cost_estimate=pl.CostEstimate(flops=flops, transcendentals=0, bytes_accessed=bytes_acc),
    )(p1, w1bd, w2k, b2r, wfk, bfr)
    return out[:B]


# ---------------------- reference (pure lax, for checking) -----------------------

def reference_forward(x, params):
    w1, b1, w2, b2, wf, bf = params
    dn = ('NCHW', 'OIHW', 'NCHW')
    y = jax.lax.conv_general_dilated(x, w1, (1, 1), 'VALID', dimension_numbers=dn)
    y = jnp.maximum(y + b1[None, :, None, None], 0.0)
    y = jax.lax.reduce_window(y, -jnp.inf, jax.lax.max, (1, 1, 2, 2), (1, 1, 2, 2), 'VALID')
    y = jax.lax.conv_general_dilated(y, w2, (1, 1), 'VALID', dimension_numbers=dn)
    y = jnp.maximum(y + b2[None, :, None, None], 0.0)
    y = jax.lax.reduce_window(y, -jnp.inf, jax.lax.max, (1, 1, 2, 2), (1, 1, 2, 2), 'VALID')
    y = y.reshape(y.shape[0], -1)
    return y @ wf.T + bf


# ------------------------------------ params -------------------------------------

def init_params(key):
    ks = jax.random.split(key, 6)

    def u(k, shape, fan_in):
        bound = 1.0 / float(fan_in) ** 0.5
        return jax.random.uniform(k, shape, jnp.float32, -bound, bound)

    w1 = u(ks[0], (32, 1, 3, 3), 9)
    b1 = u(ks[1], (32,), 9)
    w2 = u(ks[2], (64, 32, 3, 3), 32 * 9)
    b2 = u(ks[3], (64,), 32 * 9)
    wf = u(ks[4], (128, 1600), 1600)
    bf = u(ks[5], (128,), 1600)
    return (w1, b1, w2, b2, wf, bf)


if __name__ == "__main__":
    key = jax.random.PRNGKey(0)
    k_x, k_p = jax.random.split(key)
    # fc expects 1600 = 64*5*5 features => input spatial must be 28x28 (MNIST-like)
    x = jax.random.normal(k_x, (2, 1, 28, 28), jnp.float32)
    params = init_params(k_p)
    prep = prepare_params(params)        # weight permutation hoisted out of the jitted forward

    cfg = _tpu_config()
    fwd = jax.jit(functools.partial(feature_extractor_forward, **cfg))
    out = jax.block_until_ready(fwd(x, prep))
    assert out.shape == (2, 128)

    ref = reference_forward(x, params)
    err = float(jnp.max(jnp.abs(out - ref)))
    assert jnp.allclose(out, ref, rtol=5e-2, atol=5e-2), err

    print("KERNEL_OK")
</pallas_src>

<mosaic_0001>
module attributes {stable_mosaic.version = 11 : i64} {
  func.func @fused_extractor_kernel(%arg0: i32, %arg1: memref<416x37xbf16, #tpu.memory_space<vmem>>, %arg2: memref<37x128xbf16, #tpu.memory_space<vmem>>, %arg3: memref<288x64xbf16, #tpu.memory_space<vmem>>, %arg4: memref<1x64xf32, #tpu.memory_space<vmem>>, %arg5: memref<1600x128xbf16, #tpu.memory_space<vmem>>, %arg6: memref<1x128xf32, #tpu.memory_space<vmem>>, %arg7: memref<2x128xf32, #tpu.memory_space<vmem>>) attributes {dimension_semantics = [#tpu.dimension_semantics<parallel>], iteration_bounds = array<i64: 1>, scalar_prefetch = 0 : i64, scratch_operands = 0 : i64, tpu.core_type = #tpu.core_type<tc>, window_params = [{transform_indices = @transform_0, window_bounds = array<i64: 416, 37>}, {pipeline_mode = #tpu.pipeline_mode<synchronous>, transform_indices = @transform_1, window_bounds = array<i64: 37, 128>}, {pipeline_mode = #tpu.pipeline_mode<synchronous>, transform_indices = @transform_2, window_bounds = array<i64: 288, 64>}, {pipeline_mode = #tpu.pipeline_mode<synchronous>, transform_indices = @transform_3, window_bounds = array<i64: 1, 64>}, {pipeline_mode = #tpu.pipeline_mode<synchronous>, transform_indices = @transform_4, window_bounds = array<i64: 1600, 128>}, {pipeline_mode = #tpu.pipeline_mode<synchronous>, transform_indices = @transform_5, window_bounds = array<i64: 1, 128>}, {transform_indices = @transform_6, window_bounds = array<i64: 2, 128>}]} {
    %c0 = arith.constant 0 : index
    %c0_0 = arith.constant 0 : index
    %0 = vector.load %arg1[%c0, %c0_0] : memref<416x37xbf16, #tpu.memory_space<vmem>>, vector<416x37xbf16>
    %c0_1 = arith.constant 0 : index
    %c0_2 = arith.constant 0 : index
    %1 = vector.load %arg2[%c0_1, %c0_2] : memref<37x128xbf16, #tpu.memory_space<vmem>>, vector<37x128xbf16>
    %cst = arith.constant dense<0.000000e+00> : vector<416x128xf32>
    %2 = tpu.matmul %0, %1, %cst {dimension_numbers = #tpu.dot_dimension_numbers<[1], [0], [0], [1], [0, 0, 1, 1], [], []>} : vector<416x37xbf16>, vector<37x128xbf16>, vector<416x128xf32> -> vector<416x128xf32>
    %3 = arith.truncf %2 : vector<416x128xf32> to vector<416x128xbf16>
    %cst_3 = arith.constant 0.000000e+00 : bf16
    %4 = vector.broadcast %cst_3 : bf16 to vector<416x128xbf16>
    %5 = arith.maximumf %3, %4 : vector<416x128xbf16>
    %6 = vector.extract_strided_slice %5 {offsets = [0, 0], sizes = [416, 32], strides = [1, 1]} : vector<416x128xbf16> to vector<416x32xbf16>
    %7 = vector.extract_strided_slice %5 {offsets = [0, 32], sizes = [416, 32], strides = [1, 1]} : vector<416x128xbf16> to vector<416x32xbf16>
    %8 = arith.maximumf %6, %7 : vector<416x32xbf16>
    %9 = vector.extract_strided_slice %5 {offsets = [0, 64], sizes = [416, 32], strides = [1, 1]} : vector<416x128xbf16> to vector<416x32xbf16>
    %10 = vector.extract_strided_slice %5 {offsets = [0, 96], sizes = [416, 32], strides = [1, 1]} : vector<416x128xbf16> to vector<416x32xbf16>
    %11 = arith.maximumf %9, %10 : vector<416x32xbf16>
    %12 = arith.maximumf %8, %11 : vector<416x32xbf16>
    %13 = vector.shape_cast %12 : vector<416x32xbf16> to vector<2x13x16x32xbf16>
    %cst_4 = arith.constant 0.000000e+00 : bf16
    %14 = vector.broadcast %cst_4 : bf16 to vector<2x13x8x32xbf16>
    %15 = tpu.concatenate %13, %14 in 2 : vector<2x13x16x32xbf16>, vector<2x13x8x32xbf16> -> vector<2x13x24x32xbf16>
    %16 = vector.extract_strided_slice %15 {offsets = [0, 0, 0, 0], sizes = [2, 11, 16, 32], strides = [1, 1, 1, 1]} : vector<2x13x24x32xbf16> to vector<2x11x16x32xbf16>
    %17 = vector.extract_strided_slice %15 {offsets = [0, 0, 1, 0], sizes = [2, 11, 16, 32], strides = [1, 1, 1, 1]} : vector<2x13x24x32xbf16> to vector<2x11x16x32xbf16>
    %18 = vector.extract_strided_slice %15 {offsets = [0, 0, 2, 0], sizes = [2, 11, 16, 32], strides = [1, 1, 1, 1]} : vector<2x13x24x32xbf16> to vector<2x11x16x32xbf16>
    %19 = vector.extract_strided_slice %15 {offsets = [0, 1, 0, 0], sizes = [2, 11, 16, 32], strides = [1, 1, 1, 1]} : vector<2x13x24x32xbf16> to vector<2x11x16x32xbf16>
    %20 = vector.extract_strided_slice %15 {offsets = [0, 1, 1, 0], sizes = [2, 11, 16, 32], strides = [1, 1, 1, 1]} : vector<2x13x24x32xbf16> to vector<2x11x16x32xbf16>
    %21 = vector.extract_strided_slice %15 {offsets = [0, 1, 2, 0], sizes = [2, 11, 16, 32], strides = [1, 1, 1, 1]} : vector<2x13x24x32xbf16> to vector<2x11x16x32xbf16>
    %22 = vector.extract_strided_slice %15 {offsets = [0, 2, 0, 0], sizes = [2, 11, 16, 32], strides = [1, 1, 1, 1]} : vector<2x13x24x32xbf16> to vector<2x11x16x32xbf16>
    %23 = vector.extract_strided_slice %15 {offsets = [0, 2, 1, 0], sizes = [2, 11, 16, 32], strides = [1, 1, 1, 1]} : vector<2x13x24x32xbf16> to vector<2x11x16x32xbf16>
    %24 = vector.extract_strided_slice %15 {offsets = [0, 2, 2, 0], sizes = [2, 11, 16, 32], strides = [1, 1, 1, 1]} : vector<2x13x24x32xbf16> to vector<2x11x16x32xbf16>
    %25 = tpu.concatenate %16, %17, %18, %19, %20, %21, %22, %23, %24 in 3 : vector<2x11x16x32xbf16>, vector<2x11x16x32xbf16>, vector<2x11x16x32xbf16>, vector<2x11x16x32xbf16>, vector<2x11x16x32xbf16>, vector<2x11x16x32xbf16>, vector<2x11x16x32xbf16>, vector<2x11x16x32xbf16>, vector<2x11x16x32xbf16> -> vector<2x11x16x288xbf16>
    %26 = vector.shape_cast %25 : vector<2x11x16x288xbf16> to vector<352x288xbf16>
    %c0_5 = arith.constant 0 : index
    %c0_6 = arith.constant 0 : index
    %27 = vector.load %arg3[%c0_5, %c0_6] : memref<288x64xbf16, #tpu.memory_space<vmem>>, vector<288x64xbf16>
    %cst_7 = arith.constant dense<0.000000e+00> : vector<352x64xf32>
    %28 = tpu.matmul %26, %27, %cst_7 {dimension_numbers = #tpu.dot_dimension_numbers<[1], [0], [0], [1], [0, 0, 1, 1], [], []>} : vector<352x288xbf16>, vector<288x64xbf16>, vector<352x64xf32> -> vector<352x64xf32>
    %29 = arith.truncf %28 : vector<352x64xf32> to vector<352x64xbf16>
    %c0_8 = arith.constant 0 : index
    %c0_9 = arith.constant 0 : index
    %30 = vector.load %arg4[%c0_8, %c0_9] : memref<1x64xf32, #tpu.memory_space<vmem>>, vector<1x64xf32>
    %31 = arith.truncf %30 : vector<1x64xf32> to vector<1x64xbf16>
    %32 = vector.broadcast %31 : vector<1x64xbf16> to vector<352x64xbf16>
    %33 = arith.addf %29, %32 : vector<352x64xbf16>
    %cst_10 = arith.constant 0.000000e+00 : bf16
    %34 = vector.broadcast %cst_10 : bf16 to vector<352x64xbf16>
    %35 = arith.maximumf %33, %34 : vector<352x64xbf16>
    %36 = vector.shape_cast %35 : vector<352x64xbf16> to vector<2x11x16x64xbf16>
    %37 = vector.extract_strided_slice %36 {offsets = [0, 0, 0, 0], sizes = [2, 10, 16, 64], strides = [1, 1, 1, 1]} : vector<2x11x16x64xbf16> to vector<2x10x16x64xbf16>
    %38 = vector.shape_cast %37 : vector<2x10x16x64xbf16> to vector<2x5x2x16x64xbf16>
    %39 = vector.extract_strided_slice %38 {offsets = [0, 0, 0, 0, 0], sizes = [2, 5, 1, 16, 64], strides = [1, 1, 1, 1, 1]} : vector<2x5x2x16x64xbf16> to vector<2x5x1x16x64xbf16>
    %40 = vector.shape_cast %39 : vector<2x5x1x16x64xbf16> to vector<2x5x16x64xbf16>
    %41 = vector.extract_strided_slice %38 {offsets = [0, 0, 1, 0, 0], sizes = [2, 5, 1, 16, 64], strides = [1, 1, 1, 1, 1]} : vector<2x5x2x16x64xbf16> to vector<2x5x1x16x64xbf16>
    %42 = vector.shape_cast %41 : vector<2x5x1x16x64xbf16> to vector<2x5x16x64xbf16>
    %43 = arith.maximumf %40, %42 : vector<2x5x16x64xbf16>
    %44 = vector.extract_strided_slice %43 {offsets = [0, 0, 0, 0], sizes = [2, 5, 1, 64], strides = [1, 1, 1, 1]} : vector<2x5x16x64xbf16> to vector<2x5x1x64xbf16>
    %45 = vector.shape_cast %44 : vector<2x5x1x64xbf16> to vector<2x5x64xbf16>
    %46 = vector.extract_strided_slice %43 {offsets = [0, 0, 1, 0], sizes = [2, 5, 1, 64], strides = [1, 1, 1, 1]} : vector<2x5x16x64xbf16> to vector<2x5x1x64xbf16>
    %47 = vector.shape_cast %46 : vector<2x5x1x64xbf16> to vector<2x5x64xbf16>
    %48 = arith.maximumf %45, %47 : vector<2x5x64xbf16>
    %49 = vector.extract_strided_slice %43 {offsets = [0, 0, 2, 0], sizes = [2, 5, 1, 64], strides = [1, 1, 1, 1]} : vector<2x5x16x64xbf16> to vector<2x5x1x64xbf16>
    %50 = vector.shape_cast %49 : vector<2x5x1x64xbf16> to vector<2x5x64xbf16>
    %51 = vector.extract_strided_slice %43 {offsets = [0, 0, 3, 0], sizes = [2, 5, 1, 64], strides = [1, 1, 1, 1]} : vector<2x5x16x64xbf16> to vector<2x5x1x64xbf16>
    %52 = vector.shape_cast %51 : vector<2x5x1x64xbf16> to vector<2x5x64xbf16>
    %53 = arith.maximumf %50, %52 : vector<2x5x64xbf16>
    %54 = vector.extract_strided_slice %43 {offsets = [0, 0, 4, 0], sizes = [2, 5, 1, 64], strides = [1, 1, 1, 1]} : vector<2x5x16x64xbf16> to vector<2x5x1x64xbf16>
    %55 = vector.shape_cast %54 : vector<2x5x1x64xbf16> to vector<2x5x64xbf16>
    %56 = vector.extract_strided_slice %43 {offsets = [0, 0, 5, 0], sizes = [2, 5, 1, 64], strides = [1, 1, 1, 1]} : vector<2x5x16x64xbf16> to vector<2x5x1x64xbf16>
    %57 = vector.shape_cast %56 : vector<2x5x1x64xbf16> to vector<2x5x64xbf16>
    %58 = arith.maximumf %55, %57 : vector<2x5x64xbf16>
    %59 = vector.extract_strided_slice %43 {offsets = [0, 0, 6, 0], sizes = [2, 5, 1, 64], strides = [1, 1, 1, 1]} : vector<2x5x16x64xbf16> to vector<2x5x1x64xbf16>
    %60 = vector.shape_cast %59 : vector<2x5x1x64xbf16> to vector<2x5x64xbf16>
    %61 = vector.extract_strided_slice %43 {offsets = [0, 0, 7, 0], sizes = [2, 5, 1, 64], strides = [1, 1, 1, 1]} : vector<2x5x16x64xbf16> to vector<2x5x1x64xbf16>
    %62 = vector.shape_cast %61 : vector<2x5x1x64xbf16> to vector<2x5x64xbf16>
    %63 = arith.maximumf %60, %62 : vector<2x5x64xbf16>
    %64 = vector.extract_strided_slice %43 {offsets = [0, 0, 8, 0], sizes = [2, 5, 1, 64], strides = [1, 1, 1, 1]} : vector<2x5x16x64xbf16> to vector<2x5x1x64xbf16>
    %65 = vector.shape_cast %64 : vector<2x5x1x64xbf16> to vector<2x5x64xbf16>
    %66 = vector.extract_strided_slice %43 {offsets = [0, 0, 9, 0], sizes = [2, 5, 1, 64], strides = [1, 1, 1, 1]} : vector<2x5x16x64xbf16> to vector<2x5x1x64xbf16>
    %67 = vector.shape_cast %66 : vector<2x5x1x64xbf16> to vector<2x5x64xbf16>
    %68 = arith.maximumf %65, %67 : vector<2x5x64xbf16>
    %69 = tpu.concatenate %48, %53, %58, %63, %68 in 2 : vector<2x5x64xbf16>, vector<2x5x64xbf16>, vector<2x5x64xbf16>, vector<2x5x64xbf16>, vector<2x5x64xbf16> -> vector<2x5x320xbf16>
    %70 = vector.extract_strided_slice %69 {offsets = [0, 0, 0], sizes = [2, 1, 320], strides = [1, 1, 1]} : vector<2x5x320xbf16> to vector<2x1x320xbf16>
    %71 = vector.shape_cast %70 : vector<2x1x320xbf16> to vector<2x320xbf16>
    %72 = vector.extract_strided_slice %69 {offsets = [0, 1, 0], sizes = [2, 1, 320], strides = [1, 1, 1]} : vector<2x5x320xbf16> to vector<2x1x320xbf16>
    %73 = vector.shape_cast %72 : vector<2x1x320xbf16> to vector<2x320xbf16>
    %74 = vector.extract_strided_slice %69 {offsets = [0, 2, 0], sizes = [2, 1, 320], strides = [1, 1, 1]} : vector<2x5x320xbf16> to vector<2x1x320xbf16>
    %75 = vector.shape_cast %74 : vector<2x1x320xbf16> to vector<2x320xbf16>
    %76 = vector.extract_strided_slice %69 {offsets = [0, 3, 0], sizes = [2, 1, 320], strides = [1, 1, 1]} : vector<2x5x320xbf16> to vector<2x1x320xbf16>
    %77 = vector.shape_cast %76 : vector<2x1x320xbf16> to vector<2x320xbf16>
    %78 = vector.extract_strided_slice %69 {offsets = [0, 4, 0], sizes = [2, 1, 320], strides = [1, 1, 1]} : vector<2x5x320xbf16> to vector<2x1x320xbf16>
    %79 = vector.shape_cast %78 : vector<2x1x320xbf16> to vector<2x320xbf16>
    %80 = tpu.concatenate %71, %73, %75, %77, %79 in 1 : vector<2x320xbf16>, vector<2x320xbf16>, vector<2x320xbf16>, vector<2x320xbf16>, vector<2x320xbf16> -> vector<2x1600xbf16>
    %c0_11 = arith.constant 0 : index
    %c0_12 = arith.constant 0 : index
    %81 = vector.load %arg5[%c0_11, %c0_12] : memref<1600x128xbf16, #tpu.memory_space<vmem>>, vector<1600x128xbf16>
    %cst_13 = arith.constant dense<0.000000e+00> : vector<2x128xf32>
    %82 = tpu.matmul %80, %81, %cst_13 {dimension_numbers = #tpu.dot_dimension_numbers<[1], [0], [0], [1], [0, 0, 1, 1], [], []>} : vector<2x1600xbf16>, vector<1600x128xbf16>, vector<2x128xf32> -> vector<2x128xf32>
    %c0_14 = arith.constant 0 : index
    %c0_15 = arith.constant 0 : index
    %83 = vector.load %arg6[%c0_14, %c0_15] : memref<1x128xf32, #tpu.memory_space<vmem>>, vector<1x128xf32>
    %84 = vector.broadcast %83 : vector<1x128xf32> to vector<2x128xf32>
    %85 = arith.addf %82, %84 : vector<2x128xf32>
    %c0_16 = arith.constant 0 : index
    %c0_17 = arith.constant 0 : index
    %86 = vector.load %arg7[%c0_16, %c0_17] : memref<2x128xf32, #tpu.memory_space<vmem>>, vector<2x128xf32>
    tpu.vector_store %arg7[%c0_16, %c0_17], %85 {strides = array<i32>} : memref<2x128xf32, #tpu.memory_space<vmem>>, vector<2x128xf32>,
    return
  }
  func.func @transform_0(%arg0: i32) -> (i32, i32) {
    %c0_i32 = arith.constant 0 : i32
    %c0_i32_0 = arith.constant 0 : i32
    return %arg0, %c0_i32 : i32, i32
  }
  func.func @transform_1(%arg0: i32) -> (i32, i32) {
    %c0_i32 = arith.constant 0 : i32
    %c0_i32_0 = arith.constant 0 : i32
    %c0_i32_1 = arith.constant 0 : i32
    return %c0_i32, %c0_i32_0 : i32, i32
  }
  func.func @transform_2(%arg0: i32) -> (i32, i32) {
    %c0_i32 = arith.constant 0 : i32
    %c0_i32_0 = arith.constant 0 : i32
    %c0_i32_1 = arith.constant 0 : i32
    return %c0_i32, %c0_i32_0 : i32, i32
  }
  func.func @transform_3(%arg0: i32) -> (i32, i32) {
    %c0_i32 = arith.constant 0 : i32
    %c0_i32_0 = arith.constant 0 : i32
    %c0_i32_1 = arith.constant 0 : i32
    return %c0_i32, %c0_i32_0 : i32, i32
  }
  func.func @transform_4(%arg0: i32) -> (i32, i32) {
    %c0_i32 = arith.constant 0 : i32
    %c0_i32_0 = arith.constant 0 : i32
    %c0_i32_1 = arith.constant 0 : i32
    return %c0_i32, %c0_i32_0 : i32, i32
  }
  func.func @transform_5(%arg0: i32) -> (i32, i32) {
    %c0_i32 = arith.constant 0 : i32
    %c0_i32_0 = arith.constant 0 : i32
    %c0_i32_1 = arith.constant 0 : i32
    return %c0_i32, %c0_i32_0 : i32, i32
  }
  func.func @transform_6(%arg0: i32) -> (i32, i32) {
    %c0_i32 = arith.constant 0 : i32
    %c0_i32_0 = arith.constant 0 : i32
    return %arg0, %c0_i32 : i32, i32
  }
}

</mosaic_0001>

<bundles_post_ra>
// kernel: feature_extractor_forward.1
= control target key start
LH: loop header
LB: loop body
LE: loop exit
PB: predicated region body
PF: predicated region fallthrough
CT: control target
= control target key end

     0   :  { %vm306_vm0 = vcmask 1041408   ;;  %vm307_vm1 = vcmask 1042432   ;;  %v4540_v1 = vmov 65535   ;;  %vm227_vm2 = vcmask 302080   ;;  %s6570_s0 = inlined_call_operand.vmem [shape: bf16[416,37], index: 0, kind: input, shape index: {}]   ;;  %s6571_s1 = inlined_call_operand.vmem [shape: bf16[37,128], index: 1, kind: input, shape index: {}]   ;;  %s6572_s2 = inlined_call_operand.vmem [shape: bf16[288,64], index: 2, kind: input, shape index: {}]   ;;  %s6573_s3 = inlined_call_operand.vmem [shape: f32[1,64], index: 3, kind: input, shape index: {}]   ;;  %s6574_s4 = inlined_call_operand.vmem [shape: bf16[1600,128], index: 4, kind: input, shape index: {}]   ;;  %s6575_s5 = inlined_call_operand.vmem [shape: f32[1,128], index: 5, kind: input, shape index: {}]   ;;  %s6576_s6 = inlined_call_operand.hbm [shape: f32[2,128], index: 6, kind: output, shape index: {}]  }
   0x1   :  { %v4371_v0 = vld [vmem:[%s6571_s1 + $0x10] ss:$0 sps:$4 sm:$0x77]   ;;  %v308_v2 = vsel %vm306_vm0, 4294967295, %v4540_v1  ;;  %v4372_v4 = vld [vmem:[%s6571_s1 + $0x8] sm:$0xff]   ;;  %v4374_v6 = vld [vmem:[%s6570_s0] sm:$0xff]  }
   0x2   :  { %v309_v3 = vsel %vm307_vm1, %v308_v2, 0  ;;  %4251 = vmatprep.mubr.msk.bf16.mxu0 %vm227_vm2, %v4374_v6  ;;  %v4373_v7 = vld [vmem:[%s6571_s1] sm:$0xff]   ;;  %v4375_v8 = vld [vmem:[%s6570_s0 + $0x8] sm:$0xff]   ;;  %v4376_v9 = vld [vmem:[%s6570_s0 + $0x10] sm:$0xff]   ;;  %v6577_v28 = vmov 0  }
   0x3   :  { %v311_v5 = vand.u32 %v4371_v0, %v309_v3  ;;  %v4377_v10 = vld [vmem:[%s6570_s0 + $0x18] sm:$0xff]   ;;  %v4378_v11 = vld [vmem:[%s6570_s0 + $0x20] sm:$0xff]   ;;  %v4379_v12 = vld [vmem:[%s6570_s0 + $0x28] sm:$0xff]   ;;  %1967 = vmatprep.subr.bf16.mxu1 %v6577_v28 }
   0x4   :  { %v4380_v13 = vld [vmem:[%s6570_s0 + $0x30] sm:$0xff]   ;;  %v4381_v14 = vld [vmem:[%s6570_s0 + $0x38] sm:$0xff]   ;;  %v4382_v15 = vld [vmem:[%s6570_s0 + $0x40] sm:$0xff]  }
   0x5   :  { %4245 = vmatprep.subr.bf16.mxu0 %v311_v5  ;;  %v4383_v16 = vld [vmem:[%s6570_s0 + $0x48] sm:$0xff]   ;;  %v4384_v17 = vld [vmem:[%s6570_s0 + $0x50] sm:$0xff]   ;;  %v4385_v18 = vld [vmem:[%s6570_s0 + $0x58] sm:$0xff]  }
   0x6   :  { %4246 = vmatpush3.bf16.msra.mxu0 %v311_v5  ;;  %v4386_v19 = vld [vmem:[%s6570_s0 + $0x60] sm:$0xff]   ;;  %v4387_v20 = vld [vmem:[%s6570_s0 + $0x68] sm:$0xff]   ;;  %v4388_v21 = vld [vmem:[%s6570_s0 + $0x70] sm:$0xff]  }
   0x7   :  { %4247 = vmatprep.subr.bf16.mxu0 %v4372_v4  ;;  %v4389_v22 = vld [vmem:[%s6570_s0 + $0x78] sm:$0xff]   ;;  %v4390_v23 = vld [vmem:[%s6570_s0 + $0x80] sm:$0xff]   ;;  %v4391_v24 = vld [vmem:[%s6570_s0 + $0x88] sm:$0xff]  }
   0x8   :  { %v4392_v25 = vld [vmem:[%s6570_s0 + $0x90] sm:$0xff]   ;;  %v4393_v26 = vld [vmem:[%s6570_s0 + $0x98] sm:$0xff]   ;;  %v4394_v27 = vld [vmem:[%s6570_s0 + $0xa0] sm:$0xff]  }
   0x9   :  { %v4395_v29 = vld [vmem:[%s6570_s0 + $0xa8] sm:$0xff]   ;;  %v4396_v30 = vld [vmem:[%s6570_s0 + $0xb0] sm:$0xff]   ;;  %v4397_v31 = vld [vmem:[%s6570_s0 + $0xb8] sm:$0xff]  }
   0xa   :  { %4248 = vmatpush3.bf16.msra.mxu0 %v4372_v4  ;;  %v4398_v32 = vld [vmem:[%s6570_s0 + $0xc0] sm:$0xff]  }
   0xb   :  { %4249 = vmatprep.subr.bf16.mxu0 %v4373_v7 }
   0xe   :  { %4250 = vmatpush3.bf16.msra.mxu0 %v4373_v7 }
  0x11   :  { %4252 = vmatmul.mubr.msk.bf16.vlgmr.msra.gmra.mxu0 %vm227_vm2, %v4375_v8 }
  0x12   :  { %4255 = vmatprep.mubr.msk.bf16.mxu0 %vm227_vm2, %v4376_v9 }
  0x19   :  { %4256 = vmatmul.mubr.msk.bf16.gmra.mxu0 %vm227_vm2, %v4377_v10 }
  0x1a   :  { %4259 = vmatprep.mubr.msk.bf16.mxu0 %vm227_vm2, %v4378_v11 }
  0x21   :  { %4260 = vmatmul.mubr.msk.bf16.gmra.mxu0 %vm227_vm2, %v4379_v12 }
  0x22   :  { %4263 = vmatprep.mubr.msk.bf16.mxu0 %vm227_vm2, %v4380_v13 }
  0x29   :  { %4264 = vmatmul.mubr.msk.bf16.gmra.mxu0 %vm227_vm2, %v4381_v14 }
  0x2a   :  { %4267 = vmatprep.mubr.msk.bf16.mxu0 %vm227_vm2, %v4382_v15 }
  0x31   :  { %4268 = vmatmul.mubr.msk.bf16.gmra.mxu0 %vm227_vm2, %v4383_v16 }
  0x32   :  { %4271 = vmatprep.mubr.msk.bf16.mxu0 %vm227_vm2, %v4384_v17 }
  0x39   :  { %4272 = vmatmul.mubr.msk.bf16.gmra.mxu0 %vm227_vm2, %v4385_v18 }
  0x3a   :  { %4275 = vmatprep.mubr.msk.bf16.mxu0 %vm227_vm2, %v4386_v19 }
  0x41   :  { %4276 = vmatmul.mubr.msk.bf16.gmra.mxu0 %vm227_vm2, %v4387_v20 }
  0x42   :  { %4279 = vmatprep.mubr.msk.bf16.mxu0 %vm227_vm2, %v4388_v21 }
  0x49   :  { %4280 = vmatmul.mubr.msk.bf16.gmra.mxu0 %vm227_vm2, %v4389_v22 }
  0x4a   :  { %4283 = vmatprep.mubr.msk.bf16.mxu0 %vm227_vm2, %v4390_v23 }
  0x51   :  { %4284 = vmatmul.mubr.msk.bf16.gmra.mxu0 %vm227_vm2, %v4391_v24 }
  0x52   :  { %4287 = vmatprep.mubr.msk.bf16.mxu0 %vm227_vm2, %v4392_v25 }
  0x59   :  { %4288 = vmatmul.mubr.msk.bf16.gmra.mxu0 %vm227_vm2, %v4393_v26 }
  0x5a   :  { %4291 = vmatprep.mubr.msk.bf16.mxu0 %vm227_vm2, %v4394_v27 }
  0x61   :  { %4292 = vmatmul.mubr.msk.bf16.gmra.mxu0 %vm227_vm2, %v4395_v29 }
  0x62   :  { %4295 = vmatprep.mubr.msk.bf16.mxu0 %vm227_vm2, %v4396_v30 }
  0x69   :  { %4296 = vmatmul.mubr.msk.bf16.gmra.mxu0 %vm227_vm2, %v4397_v31 }
  0x6a   :  { %4299 = vmatprep.mubr.msk.bf16.mxu0 %vm227_vm2, %v4398_v32 }
  0x6b   :  { %11 = vsyncpa [#allocation3], 0  ;;  %v4399_v33 = vld [vmem:[%s6570_s0 + $0xc8] sm:$0xff]   ;;  %s4542_s29 = smov 96   ;;  %s4543_s9 = smov 64   ;;  %vm1114_vm3 = vcmask 1046528  }
  0x6c   :  { %s4544_s27 = smov 32   ;;  %vm866_vm4 = vsmask.f32 7424  ;;  %vm1424_vm5 = vcmask 261120   ;;  %vm1469_vm6 = vcmask 523264   ;;  %vm1514_vm7 = vcmask 785408  }
  0x6d   :  { %vm2527_vm8 = vcmask 1041409   ;;  %vm2530_vm9 = vcmask 1042434   ;;  %vm2533_vm10 = vcmask 1043459   ;;  %vm2536_vm11 = vcmask 1044484   ;;  %s4547_s7 = smov [#allocation2]  }
  0x6e   :  { %vm4546_vm12 = vmmov 0   ;;  %s3848_s8 = sshll.u32 %s4547_s7, 4  ;;  %s3849_s8 = int_to_ptr.vmem [resolvable:$true] %s3848_s8 }
  0x6f   :  { %p4523_p1 = scmp.lt.s32.totalorder %s3849_s8, %s3849_s8 }
  0x71   :  { %4300 = vmatmul.mubr.msk.bf16.gmra.mxu0 %vm227_vm2, %v4399_v33 }
  0xd1   :  { %v4253_v34 = vpop.f32.mrf.mxu0 }
  0xd3   :  { %v347_v35 = vpop.f32.mrf.mxu0 }
  0xd5   :  { %v4254_v36 = vpop.f32.mrf.mxu0 }
  0xd6   :  { %v555_v37 = vpack.c.bf16 %v4254_v36, %v4253_v34 }
  0xd7   :  { %v350_v38 = vpop.f32.mrf.mxu0 }
  0xd8   :  { %v554_v39 = vpack.c.bf16 %v350_v38, %v347_v35  ;;  %v4698_v40 = vmax.bf16 %v6577_v28, %v555_v37 }
  0xd9   :  { %v4257_v41 = vpop.f32.mrf.mxu0 }
  0xda   :  { %634 = vrot.lane.b32.xlu1 %v4698_v40, %s4542_s29  ;;  %v4703_v42 = vmax.bf16 %v6577_v28, %v554_v39 }
  0xdb   :  { %v363_v43 = vpop.f32.mrf.mxu0 }
  0xdc   :  { %632 = vrot.lane.b32.xlu0 %v4703_v42, %s4542_s29 }
  0xdd   :  { %v4258_v44 = vpop.f32.mrf.mxu0 }
  0xde   :  { %v557_v45 = vpack.c.bf16 %v4258_v44, %v4257_v41 }
  0xdf   :  { %v366_v46 = vpop.f32.mrf.mxu0 }
  0xe0   :  { %v4708_v47 = vmax.bf16 %v6577_v28, %v557_v45  ;;  %v556_v48 = vpack.c.bf16 %v366_v46, %v363_v43 }
  0xe1   :  { %v4261_v49 = vpop.f32.mrf.mxu0 }
  0xe2   :  { %v4711_v50 = vmax.bf16 %v6577_v28, %v556_v48  ;;  %638 = vrot.lane.b32.xlu1 %v4708_v47, %s4542_s29 }
  0xe3   :  { %v379_v51 = vpop.f32.mrf.mxu0 }
  0xe4   :  { %636 = vrot.lane.b32.xlu0 %v4711_v50, %s4542_s29 }
  0xe5   :  { %v4262_v52 = vpop.f32.mrf.mxu0 }
  0xe6   :  { %v559_v53 = vpack.c.bf16 %v4262_v52, %v4261_v49 }
  0xe7   :  { %v382_v54 = vpop.f32.mrf.mxu0 }
  0xe8   :  { %v4718_v55 = vmax.bf16 %v6577_v28, %v559_v53  ;;  %v558_v56 = vpack.c.bf16 %v382_v54, %v379_v51 }
  0xe9   :  { %v4265_v57 = vpop.f32.mrf.mxu0 }
  0xea   :  { %v4721_v58 = vmax.bf16 %v6577_v28, %v558_v56  ;;  %642 = vrot.lane.b32.xlu1 %v4718_v55, %s4542_s29 }
  0xeb   :  { %v395_v59 = vpop.f32.mrf.mxu0 }
  0xec   :  { %640 = vrot.lane.b32.xlu0 %v4721_v58, %s4542_s29 }
  0xed   :  { %v4266_v60 = vpop.f32.mrf.mxu0 }
  0xee   :  { %v561_v61 = vpack.c.bf16 %v4266_v60, %v4265_v57 }
  0xef   :  { %v398_v62 = vpop.f32.mrf.mxu0 }
  0xf0   :  { %v4728_v63 = vmax.bf16 %v6577_v28, %v561_v61  ;;  %v560_v0 = vpack.c.bf16 %v398_v62, %v395_v59 }
  0xf1   :  { %v4269_v1 = vpop.f32.mrf.mxu0 }
  0xf2   :  { %v4731_v2 = vmax.bf16 %v6577_v28, %v560_v0  ;;  %646 = vrot.lane.b32.xlu1 %v4728_v63, %s4542_s29 }
  0xf3   :  { %v411_v3 = vpop.f32.mrf.mxu0 }
  0xf4   :  { %644 = vrot.lane.b32.xlu0 %v4731_v2, %s4542_s29 }
  0xf5   :  { %v4270_v4 = vpop.f32.mrf.mxu0 }
  0xf6   :  { %v563_v5 = vpack.c.bf16 %v4270_v4, %v4269_v1 }
  0xf7   :  { %v414_v6 = vpop.f32.mrf.mxu0 }
  0xf8   :  { %v4738_v7 = vmax.bf16 %v6577_v28, %v563_v5  ;;  %v562_v8 = vpack.c.bf16 %v414_v6, %v411_v3 }
  0xf9   :  { %v4273_v9 = vpop.f32.mrf.mxu0 }
  0xfa   :  { %v4741_v10 = vmax.bf16 %v6577_v28, %v562_v8  ;;  %650 = vrot.lane.b32.xlu1 %v4738_v7, %s4542_s29 }
  0xfb   :  { %v427_v11 = vpop.f32.mrf.mxu0 }
  0xfc   :  { %648 = vrot.lane.b32.xlu0 %v4741_v10, %s4542_s29 }
  0xfd   :  { %v4274_v12 = vpop.f32.mrf.mxu0 }
  0xfe   :  { %v565_v13 = vpack.c.bf16 %v4274_v12, %v4273_v9 }
  0xff   :  { %v430_v14 = vpop.f32.mrf.mxu0 }
 0x100   :  { %v4748_v15 = vmax.bf16 %v6577_v28, %v565_v13  ;;  %v564_v16 = vpack.c.bf16 %v430_v14, %v427_v11 }
 0x101   :  { %v4277_v17 = vpop.f32.mrf.mxu0 }
 0x102   :  { %v4751_v18 = vmax.bf16 %v6577_v28, %v564_v16  ;;  %654 = vrot.lane.b32.xlu1 %v4748_v15, %s4542_s29 }
 0x103   :  { %v443_v19 = vpop.f32.mrf.mxu0 }
 0x105   :  { %v4278_v20 = vpop.f32.mrf.mxu0 }
 0x106   :  { %v567_v21 = vpack.c.bf16 %v4278_v20, %v4277_v17  ;;  %652 = vrot.lane.b32.xlu1 %v4751_v18, %s4542_s29 }
 0x107   :  { %v446_v22 = vpop.f32.mrf.mxu0 }
 0x108   :  { %v4758_v23 = vmax.bf16 %v6577_v28, %v567_v21  ;;  %v566_v24 = vpack.c.bf16 %v446_v22, %v443_v19 }
 0x109   :  { %v4281_v25 = vpop.f32.mrf.mxu0 }
 0x10a   :  { %v4761_v26 = vmax.bf16 %v6577_v28, %v566_v24  ;;  %658 = vrot.lane.b32.xlu1 %v4758_v23, %s4542_s29  ;;  %v4400_v24 = vld [vmem:[%s6572_s2 + $0x88] sm:$0xff]  }
 0x10b   :  { %v459_v27 = vpop.f32.mrf.mxu0  ;;  %4303 = vmatprep.subr.bf16.mxu0 %v4400_v24 }
 0x10c   :  { %4304 = vmatpush3.bf16.msra.mxu0 %v4400_v24  ;;  %v4993_v24 = vrot.slane %v6577_v28, 1 }
 0x10d   :  { %v4282_v29 = vpop.f32.mrf.mxu0 }
 0x10e   :  { %v569_v30 = vpack.c.bf16 %v4282_v29, %v4281_v25  ;;  %656 = vrot.lane.b32.xlu1 %v4761_v26, %s4542_s29 }
 0x10f   :  { %v462_v31 = vpop.f32.mrf.mxu0 }
 0x110   :  { %v4768_v32 = vmax.bf16 %v6577_v28, %v569_v30  ;;  %v568_v33 = vpack.c.bf16 %v462_v31, %v459_v27  ;;  %v4401_v27 = vld [vmem:[%s6572_s2 + $0x80] sm:$0xff]  }
 0x111   :  { %v4285_v34 = vpop.f32.mrf.mxu0  ;;  %4305 = vmatprep.subr.bf16.mxu0 %v4401_v27 }
 0x112   :  { %v4771_v35 = vmax.bf16 %v6577_v28, %v568_v33  ;;  %662 = vrot.lane.b32.xlu0 %v4768_v32, %s4542_s29  ;;  %4306 = vmatpush3.bf16.msra.mxu0 %v4401_v27 }
 0x113   :  { %v475_v36 = vpop.f32.mrf.mxu0 }
 0x114   :  { %660 = vrot.lane.b32.xlu1 %v4771_v35, %s4542_s29 }
 0x115   :  { %v4286_v37 = vpop.f32.mrf.mxu0 }
 0x116   :  { %v571_v38 = vpack.c.bf16 %v4286_v37, %v4285_v34 }
 0x117   :  { %v478_v39 = vpop.f32.mrf.mxu0 }
 0x118   :  { %v4778_v41 = vmax.bf16 %v6577_v28, %v571_v38  ;;  %v570_v43 = vpack.c.bf16 %v478_v39, %v475_v36 }
 0x119   :  { %v4289_v44 = vpop.f32.mrf.mxu0 }
 0x11a   :  { %v4781_v45 = vmax.bf16 %v6577_v28, %v570_v43  ;;  %666 = vrot.lane.b32.xlu1 %v4778_v41, %s4542_s29 }
 0x11b   :  { %v491_v46 = vpop.f32.mrf.mxu0 }
 0x11d   :  { %v4290_v48 = vpop.f32.mrf.mxu0 }
 0x11e   :  { %v573_v49 = vpack.c.bf16 %v4290_v48, %v4289_v44  ;;  %664 = vrot.lane.b32.xlu1 %v4781_v45, %s4542_s29 }
 0x11f   :  { %v494_v51 = vpop.f32.mrf.mxu0 }
 0x120   :  { %v4788_v52 = vmax.bf16 %v6577_v28, %v573_v49  ;;  %v572_v53 = vpack.c.bf16 %v494_v51, %v491_v46 }
 0x121   :  { %v4293_v54 = vpop.f32.mrf.mxu0 }
 0x122   :  { %v4791_v56 = vmax.bf16 %v6577_v28, %v572_v53  ;;  %670 = vrot.lane.b32.xlu1 %v4788_v52, %s4542_s29 }
 0x123   :  { %v507_v57 = vpop.f32.mrf.mxu0 }
 0x125   :  { %v4294_v59 = vpop.f32.mrf.mxu0 }
 0x126   :  { %v575_v60 = vpack.c.bf16 %v4294_v59, %v4293_v54  ;;  %668 = vrot.lane.b32.xlu1 %v4791_v56, %s4542_s29 }
 0x127   :  { %v510_v61 = vpop.f32.mrf.mxu0 }
 0x128   :  { %v4798_v62 = vmax.bf16 %v6577_v28, %v575_v60  ;;  %v574_v0 = vpack.c.bf16 %v510_v61, %v507_v57 }
 0x129   :  { %v4297_v1 = vpop.f32.mrf.mxu0 }
 0x12a   :  { %v4801_v3 = vmax.bf16 %v6577_v28, %v574_v0  ;;  %674 = vrot.lane.b32.xlu0 %v4798_v62, %s4542_s29 }
 0x12b   :  { %v523_v4 = vpop.f32.mrf.mxu0 }
 0x12d   :  { %v4298_v5 = vpop.f32.mrf.mxu0 }
 0x12e   :  { %v577_v6 = vpack.c.bf16 %v4298_v5, %v4297_v1  ;;  %672 = vrot.lane.b32.xlu0 %v4801_v3, %s4542_s29 }
 0x12f   :  { %v526_v8 = vpop.f32.mrf.mxu0 }
 0x130   :  { %v4808_v9 = vmax.bf16 %v6577_v28, %v577_v6  ;;  %v576_v11 = vpack.c.bf16 %v526_v8, %v523_v4  ;;  %v4403_v8 = vld [vmem:[%s6572_s2 + $0x30] sm:$0xff]  }
 0x131   :  { %v4301_v12 = vpop.f32.mrf.mxu0 }
 0x132   :  { %v4811_v13 = vmax.bf16 %v6577_v28, %v576_v11  ;;  %678 = vrot.lane.b32.xlu0 %v4808_v9, %s4542_s29 }
 0x133   :  { %v539_v14 = vpop.f32.mrf.mxu0 }
 0x135   :  { %v4302_v16 = vpop.f32.mrf.mxu0 }
 0x136   :  { %v579_v17 = vpack.c.bf16 %v4302_v16, %v4301_v12  ;;  %676 = vrot.lane.b32.xlu0 %v4811_v13, %s4542_s29  ;;  %v4407_v16 = vld [vmem:[%s6572_s2 + $0x10] sm:$0xff]  }
 0x137   :  { %v542_v19 = vpop.f32.mrf.mxu0 }
 0x138   :  { %v4818_v20 = vmax.bf16 %v6577_v28, %v579_v17  ;;  %v578_v21 = vpack.c.bf16 %v542_v19, %v539_v14  ;;  %v4406_v14 = vld [vmem:[%s6572_s2 + $0x18] sm:$0xff]   ;;  %v4408_v17 = vld [vmem:[%s6572_s2 + $0x8] sm:$0xff]  }
 0x13a   :  { %6595 = vst [vmem:[#allocation5_spill] sm:$0xff] %v4818_v20  ;;  %v4821_v22 = vmax.bf16 %v6577_v28, %v578_v21  ;;  %682 = vrot.lane.b32.xlu1 %v4818_v20, %s4542_s29  ;;  %v4409_v21 = vld [vmem:[%s6572_s2] sm:$0xff]  }
 0x13c   :  { %680 = vrot.lane.b32.xlu0 %v4821_v22, %s4542_s29 }
 0x14c   :  { %v635_v25 = vpop.permute.xlu1 %634 }
 0x14d   :  { %v4834_v29 = vmax.bf16 %v635_v25, %v4698_v40 }
 0x14e   :  { %v633_v30 = vpop.permute.xlu0 %632 }
 0x14f   :  { %764 = vrot.lane.b32.xlu0 %v4834_v29, %s4543_s9  ;;  %v4839_v31 = vmax.bf16 %v633_v30, %v4703_v42 }
 0x153   :  { %762 = vrot.lane.b32.xlu0 %v4839_v31, %s4543_s9 }
 0x154   :  { %v639_v33 = vpop.permute.xlu1 %638 }
 0x155   :  { %v4844_v34 = vmax.bf16 %v639_v33, %v4708_v47 }
 0x156   :  { %v637_v36 = vpop.permute.xlu0 %636 }
 0x157   :  { %v4847_v40 = vmax.bf16 %v637_v36, %v4711_v50  ;;  %768 = vrot.lane.b32.xlu0 %v4844_v34, %s4543_s9 }
 0x159   :  { %766 = vrot.lane.b32.xlu1 %v4847_v40, %s4543_s9 }
 0x15c   :  { %v643_v37 = vpop.permute.xlu1 %642 }
 0x15d   :  { %v4854_v42 = vmax.bf16 %v643_v37, %v4718_v55 }
 0x15e   :  { %v641_v38 = vpop.permute.xlu0 %640 }
 0x15f   :  { %772 = vrot.lane.b32.xlu0 %v4854_v42, %s4543_s9  ;;  %v4859_v47 = vmax.bf16 %v641_v38, %v4721_v58 }
 0x163   :  { %770 = vrot.lane.b32.xlu0 %v4859_v47, %s4543_s9 }
 0x164   :  { %v647_v50 = vpop.permute.xlu1 %646 }
 0x165   :  { %v4864_v39 = vmax.bf16 %v647_v50, %v4728_v63 }
 0x166   :  { %v645_v43 = vpop.permute.xlu0 %644 }
 0x167   :  { %776 = vrot.lane.b32.xlu0 %v4864_v39, %s4543_s9  ;;  %v4869_v55 = vmax.bf16 %v645_v43, %v4731_v2 }
 0x16b   :  { %774 = vrot.lane.b32.xlu0 %v4869_v55, %s4543_s9 }
 0x16c   :  { %v651_v44 = vpop.permute.xlu1 %650 }
 0x16d   :  { %v4874_v58 = vmax.bf16 %v651_v44, %v4738_v7 }
 0x16e   :  { %v649_v46 = vpop.permute.xlu0 %648 }
 0x16f   :  { %780 = vrot.lane.b32.xlu0 %v4874_v58, %s4543_s9  ;;  %v4879_v63 = vmax.bf16 %v649_v46, %v4741_v10  ;;  %v4411_v46 = vld [vmem:[%s6572_s2 + $0x70] sm:$0xff]  }
 0x173   :  { %778 = vrot.lane.b32.xlu0 %v4879_v63, %s4543_s9 }
 0x174   :  { %v655_v48 = vpop.permute.xlu1 %654 }
 0x175   :  { %v4884_v2 = vmax.bf16 %v655_v48, %v4748_v15 }
 0x177   :  { %784 = vrot.lane.b32.xlu0 %v4884_v2, %s4543_s9 }
 0x178   :  { %v653_v49 = vpop.permute.xlu1 %652 }
 0x179   :  { %v4889_v7 = vmax.bf16 %v653_v49, %v4751_v18 }
 0x17b   :  { %782 = vrot.lane.b32.xlu0 %v4889_v7, %s4543_s9 }
 0x17c   :  { %v659_v51 = vpop.permute.xlu1 %658 }
 0x17d   :  { %v4894_v10 = vmax.bf16 %v659_v51, %v4758_v23 }
 0x17f   :  { %788 = vrot.lane.b32.xlu0 %v4894_v10, %s4543_s9 }
 0x180   :  { %v657_v53 = vpop.permute.xlu1 %656 }
 0x181   :  { %v4899_v15 = vmax.bf16 %v657_v53, %v4761_v26 }
 0x183   :  { %786 = vrot.lane.b32.xlu0 %v4899_v15, %s4543_s9 }
 0x184   :  { %v663_v54 = vpop.permute.xlu0 %662 }
 0x185   :  { %v4904_v18 = vmax.bf16 %v663_v54, %v4768_v32 }
 0x186   :  { %v661_v57 = vpop.permute.xlu1 %660 }
 0x187   :  { %792 = vrot.lane.b32.xlu1 %v4904_v18, %s4543_s9  ;;  %v4909_v23 = vmax.bf16 %v661_v57, %v4771_v35 }
 0x18b   :  { %790 = vrot.lane.b32.xlu1 %v4909_v23, %s4543_s9 }
 0x18c   :  { %v667_v59 = vpop.permute.xlu1 %666 }
 0x18d   :  { %v4914_v26 = vmax.bf16 %v667_v59, %v4778_v41 }
 0x18f   :  { %796 = vrot.lane.b32.xlu0 %v4914_v26, %s4543_s9 }
 0x190   :  { %v665_v60 = vpop.permute.xlu1 %664 }
 0x191   :  { %v4919_v32 = vmax.bf16 %v665_v60, %v4781_v45  ;;  %v4412_v60 = vld [vmem:[%s6572_s2 + $0x68] sm:$0xff]  }
 0x193   :  { %794 = vrot.lane.b32.xlu0 %v4919_v32, %s4543_s9 }
 0x194   :  { %v671_v61 = vpop.permute.xlu1 %670 }
 0x195   :  { %v4924_v35 = vmax.bf16 %v671_v61, %v4788_v52 }
 0x197   :  { %800 = vrot.lane.b32.xlu0 %v4924_v35, %s4543_s9 }
 0x198   :  { %v669_v0 = vpop.permute.xlu1 %668 }
 0x199   :  { %v4929_v41 = vmax.bf16 %v669_v0, %v4791_v56  ;;  %v4402_v56 = vld [vmem:[%s6572_s2 + $0x38] sm:$0xff]  }
 0x19a   :  { %1968 = vmatpush1.bf16.msra.mxu1 %v4402_v56  ;;  %v4413_v56 = vld [vmem:[%s6572_s2 + $0x60] sm:$0xff]  }
 0x19b   :  { %798 = vrot.lane.b32.xlu1 %v4929_v41, %s4543_s9  ;;  %1969 = vmatprep.subr.bf16.mxu1 %v6577_v28 }
 0x19c   :  { %v675_v1 = vpop.permute.xlu0 %674 }
 0x19d   :  { %v4934_v45 = vmax.bf16 %v675_v1, %v4798_v62 }
 0x19e   :  { %1970 = vmatpush1.bf16.msra.mxu1 %v4403_v8 }
 0x19f   :  { %804 = vrot.lane.b32.xlu0 %v4934_v45, %s4543_s9  ;;  %1971 = vmatprep.subr.bf16.mxu1 %v6577_v28 }
 0x1a0   :  { %v673_v4 = vpop.permute.xlu0 %672 }
 0x1a1   :  { %v4939_v52 = vmax.bf16 %v673_v4, %v4801_v3 }
 0x1a3   :  { %802 = vrot.lane.b32.xlu1 %v4939_v52, %s4543_s9 }
 0x1a4   :  { %v679_v5 = vpop.permute.xlu0 %678 }
 0x1a5   :  { %v4947_v6 = vmax.bf16 %v679_v5, %v4808_v9  ;;  %v4404_v9 = vld [vmem:[%s6572_s2 + $0x28] sm:$0xff]  }
 0x1a6   :  { %1972 = vmatpush1.bf16.msra.mxu1 %v4404_v9 }
 0x1a7   :  { %808 = vrot.lane.b32.xlu0 %v4947_v6, %s4543_s9  ;;  %1973 = vmatprep.subr.bf16.mxu1 %v6577_v28 }
 0x1a8   :  { %v677_v62 = vpop.permute.xlu0 %676 }
 0x1a9   :  { %v4953_v3 = vmax.bf16 %v677_v62, %v4811_v13  ;;  %v4405_v13 = vld [vmem:[%s6572_s2 + $0x20] sm:$0xff]  }
 0x1aa   :  { %1974 = vmatpush1.bf16.msra.mxu1 %v4405_v13  ;;  %v4414_v13 = vld [vmem:[%s6572_s2 + $0x58] sm:$0xff]  }
 0x1ab   :  { %806 = vrot.lane.b32.xlu1 %v4953_v3, %s4543_s9  ;;  %1975 = vmatprep.subr.bf16.mxu1 %v6577_v28 }
 0x1ac   :  { %v5008_v38 = vpop.permute.xlu1 %682 }
 0x1ad   :  { %6596 = vst [vmem:[#allocation6_spill] sm:$0xff] %v5008_v38 }
 0x1ae   :  { %v681_v11 = vpop.permute.xlu0 %680  ;;  %1976 = vmatpush1.bf16.msra.mxu1 %v4406_v14 }
 0x1af   :  { %v4965_v12 = vmax.bf16 %v681_v11, %v4821_v22  ;;  %1977 = vmatprep.subr.bf16.mxu1 %v6577_v28 }
 0x1b1   :  { %810 = vrot.lane.b32.xlu1 %v4965_v12, %s4543_s9 }
 0x1b2   :  { %1978 = vmatpush1.bf16.msra.mxu1 %v4407_v16 }
 0x1b3   :  { %1979 = vmatprep.subr.bf16.mxu1 %v6577_v28 }
 0x1b6   :  { %1980 = vmatpush1.bf16.msra.mxu1 %v4408_v17 }
 0x1b7   :  { %1981 = vmatprep.subr.bf16.mxu1 %v6577_v28 }
 0x1ba   :  { %1982 = vmatpush1.bf16.msra.mxu1 %v4409_v21 }
 0x1bb   :  { %1983 = vmatprep.subr.bf16.mxu1 %v6577_v28 }
 0x1c1   :  { %v765_v19 = vpop.permute.xlu0 %764 }
 0x1c2   :  { %v4990_v22 = vmax.bf16 %v765_v19, %v4834_v29  ;;  %v4410_v29 = vld [vmem:[%s6572_s2 + $0x78] sm:$0xff]  }
 0x1c3   :  { %1984 = vmatpush2.bf16.msra.mxu1 %v4410_v29 }
 0x1c4   :  { %1206 = vrot.lane.b32.xlu1 %v4990_v22, %s4542_s29  ;;  %v1118_v25 = vrot.slane %v4990_v22, 1  ;;  %v882_v27 = vshll.u32 %v4990_v22, 16  ;;  %v880_v43 = vshrl.u32 %v4990_v22, 16  ;;  %1985 = vmatprep.subr.bf16.mxu1 %v6577_v28 }
 0x1c5   :  { %v763_v30 = vpop.permute.xlu0 %762 }
 0x1c6   :  { %v5004_v33 = vmax.bf16 %v763_v30, %v4839_v31  ;;  %v1119_v36 = vsel %vm1114_vm3, %v1118_v25, %v4993_v24  ;;  %v884_v37 = vrot.slane %v882_v27, 1 }
 0x1c7   :  { %1162 = vrot.lane.b32.xlu0 %v1119_v36, %s4543_s9  ;;  %1986 = vmatpush2.bf16.msra.mxu1 %v4411_v46 }
 0x1c8   :  { %1270 = vrot.lane.b32.xlu1 %v1119_v36, %s4544_s27  ;;  %v1115_v50 = vrot.slane %v5004_v33, 1  ;;  %v870_v44 = vshll.u32 %v5004_v33, 16  ;;  %v885_v51 = vor.u32 %v884_v37, %v880_v43  ;;  %v868_v59 = vshrl.u32 %v5004_v33, 16  ;;  %1987 = vmatprep.subr.bf16.mxu1 %v6577_v28 }
 0x1c9   :  { %v769_v31 = vpop.permute.xlu0 %768 }
 0x1ca   :  { %v5020_v48 = vmax.bf16 %v769_v31, %v4844_v34  ;;  %v1117_v49 = vsel %vm1114_vm3, %v1115_v50, %v4993_v24  ;;  %v872_v53 = vrot.slane %v870_v44, 1  ;;  %v5038_v61 = vsel %vm866_vm4, %v885_v51, %v4993_v24 }
 0x1cb   :  { %v767_v54 = vpop.permute.xlu1 %766  ;;  %1160 = vrot.lane.b32.xlu0 %v1117_v49, %s4543_s9  ;;  %1988 = vmatpush2.bf16.msra.mxu1 %v4412_v60 }
 0x1cc   :  { %v5026_v57 = vmax.bf16 %v767_v54, %v4847_v40  ;;  %1318 = vrot.lane.b32.xlu1 %v5020_v48, %s4543_s9  ;;  %v1122_v34 = vrot.slane %v5020_v48, 1  ;;  %v873_v0 = vor.u32 %v872_v53, %v868_v59  ;;  %1989 = vmatprep.subr.bf16.mxu1 %v6577_v28  ;;  %v898_v8 = vshll.u32 %v5020_v48, 16 }
 0x1cd   :  { %v896_v21 = vshrl.u32 %v5020_v48, 16 }
 0x1ce   :  { %v1120_v40 = vrot.slane %v5026_v57, 1  ;;  %v1123_v5 = vsel %vm1114_vm3, %v1122_v34, %v4993_v24  ;;  %v878_v62 = vsel %vm866_vm4, %v873_v0, %v4993_v24  ;;  %v900_v16 = vrot.slane %v898_v8, 1 }
 0x1cf   :  { %1049 = vrot.lane.b32.xlu0 %v5038_v61, %s4544_s27  ;;  %1990 = vmatpush2.bf16.msra.mxu1 %v4413_v56  ;;  %v888_v50 = vshrl.u32 %v5026_v57, 16 }
 0x1d0   :  { %1210 = vrot.lane.b32.xlu1 %v5020_v48, %s4542_s29  ;;  %v1121_v1 = vsel %vm1114_vm3, %v1120_v40, %v4993_v24  ;;  %1991 = vmatprep.subr.bf16.mxu1 %v6577_v28  ;;  %v901_v30 = vor.u32 %v900_v16, %v896_v21 }
 0x1d1   :  { %4307 = vmatprep.mubr.msk.bf16.mxu0 %vm1424_vm5, %v1121_v1  ;;  %v773_v4 = vpop.permute.xlu0 %772 }
 0x1d2   :  { %4308 = vmatmul.mubr.msk.bf16.vlgmr.msra.gmra.mxu0 %vm1424_vm5, %v1123_v5  ;;  %v5059_v9 = vmax.bf16 %v773_v4, %v4854_v42  ;;  %v890_v42 = vshll.u32 %v5026_v57, 16  ;;  %v5105_v31 = vsel %vm866_vm4, %v901_v30, %v4993_v24 }
 0x1d3   :  { %1047 = vrot.lane.b32.xlu0 %v878_v62, %s4544_s27  ;;  %1992 = vmatpush2.bf16.msra.mxu1 %v4414_v13 }
 0x1d4   :  { %1316 = vrot.lane.b32.xlu1 %v5026_v57, %s4543_s9  ;;  %v1126_v17 = vrot.slane %v5059_v9, 1  ;;  %1993 = vmatprep.subr.bf16.mxu1 %v6577_v28  ;;  %v892_v29 = vrot.slane %v890_v42, 1  ;;  %v914_v0 = vshll.u32 %v5059_v9, 16  ;;  %v912_v13 = vshrl.u32 %v5059_v9, 16 }
 0x1d5   :  { %v771_v11 = vpop.permute.xlu0 %770 }
 0x1d6   :  { %v5069_v14 = vmax.bf16 %v771_v11, %v4859_v47  ;;  %v4415_v47 = vld [vmem:[%s6572_s2 + $0x50] sm:$0xff]   ;;  %v5091_v37 = vsel %vm1114_vm3, %v1126_v17, %v4993_v24  ;;  %v893_v46 = vor.u32 %v892_v29, %v888_v50  ;;  %v916_v62 = vrot.slane %v914_v0, 1 }
 0x1d7   :  { %1166 = vrot.lane.b32.xlu0 %v1123_v5, %s4543_s9  ;;  %1994 = vmatpush2.bf16.msra.mxu1 %v4415_v47 }
 0x1d8   :  { %1208 = vrot.lane.b32.xlu1 %v5026_v57, %s4542_s29  ;;  %v1124_v19 = vrot.slane %v5069_v14, 1  ;;  %1995 = vmatprep.subr.bf16.mxu1 %v6577_v28  ;;  %v5118_v54 = vsel %vm866_vm4, %v893_v46, %v4993_v24  ;;  %v917_v42 = vor.u32 %v916_v62, %v912_v13 }
 0x1d9   :  { %v777_v25 = vpop.permute.xlu0 %776 }
 0x1da   :  { %v1125_v27 = vsel %vm1114_vm3, %v1124_v19, %v4993_v24  ;;  %v5085_v36 = vmax.bf16 %v777_v25, %v4864_v39  ;;  %v4416_v39 = vld [vmem:[%s6572_s2 + $0x48] sm:$0xff]   ;;  %v904_v25 = vshrl.u32 %v5069_v14, 16  ;;  %v5183_v30 = vsel %vm866_vm4, %v917_v42, %v4993_v24 }
 0x1db   :  { %1164 = vrot.lane.b32.xlu0 %v1121_v1, %s4543_s9  ;;  %4311 = vmatprep.mubr.msk.bf16.mxu0 %vm1424_vm5, %v1125_v27 }
 0x1dc   :  { %1274 = vrot.lane.b32.xlu1 %v1123_v5, %s4544_s27  ;;  %4312 = vmatmul.mubr.msk.bf16.gmra.mxu0 %vm1424_vm5, %v5091_v37  ;;  %v1130_v49 = vrot.slane %v5085_v36, 1  ;;  %v928_v0 = vshrl.u32 %v5085_v36, 16 }
 0x1dd   :  { %v775_v43 = vpop.permute.xlu0 %774  ;;  %1996 = vmatpush2.bf16.msra.mxu1 %v4416_v39 }
 0x1de   :  { %v5101_v44 = vmax.bf16 %v775_v43, %v4869_v55  ;;  %v4417_v55 = vld [vmem:[%s6572_s2 + $0x40] sm:$0xff]   ;;  %1997 = vmatprep.subr.bf16.mxu1 %v6577_v28  ;;  %v5134_v60 = vsel %vm1114_vm3, %v1130_v49, %v4993_v24 }
 0x1df   :  { %1053 = vrot.lane.b32.xlu0 %v5105_v31, %s4544_s27 }
 0x1e0   :  { %1272 = vrot.lane.b32.xlu1 %v1121_v1, %s4544_s27  ;;  %v1128_v51 = vrot.slane %v5101_v44, 1 }
 0x1e1   :  { %v781_v53 = vpop.permute.xlu0 %780  ;;  %1998 = vmatpush2.bf16.msra.mxu1 %v4417_v55 }
 0x1e2   :  { %v5122_v59 = vsel %vm1114_vm3, %v1128_v51, %v4993_v24  ;;  %v5126_v34 = vmax.bf16 %v781_v53, %v4874_v58  ;;  %v930_v53 = vshll.u32 %v5085_v36, 16 }
 0x1e3   :  { %1051 = vrot.lane.b32.xlu0 %v5118_v54, %s4544_s27  ;;  %4315 = vmatprep.mubr.msk.bf16.mxu0 %vm1424_vm5, %v5122_v59 }
 0x1e4   :  { %6597 = vst [vmem:[#allocation7_spill] sm:$0xff] %v5126_v34  ;;  %1378 = vrot.lane.b32.xlu1 %v5105_v31, %s4542_s29  ;;  %4316 = vmatmul.mubr.msk.bf16.gmra.mxu0 %vm1424_vm5, %v5134_v60  ;;  %v1134_v1 = vrot.slane %v5126_v34, 1 }
 0x1e5   :  { %v779_v40 = vpop.permute.xlu0 %778 }
 0x1e6   :  { %v5141_v58 = vmax.bf16 %v779_v40, %v4879_v63  ;;  %v906_v63 = vshll.u32 %v5069_v14, 16  ;;  %v5163_v11 = vsel %vm1114_vm3, %v1134_v1, %v4993_v24 }
 0x1e7   :  { %1170 = vrot.lane.b32.xlu0 %v5091_v37, %s4543_s9 }
 0x1e8   :  { %6598 = vst [vmem:[#allocation8_spill] sm:$0xff] %v5141_v58  ;;  %1322 = vrot.lane.b32.xlu1 %v5059_v9, %s4543_s9  ;;  %v1132_v4 = vrot.slane %v5141_v58, 1  ;;  %v908_v17 = vrot.slane %v906_v63, 1 }
 0x1e9   :  { %v785_v5 = vpop.permute.xlu0 %784 }
 0x1ea   :  { %v5152_v56 = vsel %vm1114_vm3, %v1132_v4, %v4993_v24  ;;  %v5156_v8 = vmax.bf16 %v785_v5, %v4884_v2 }
 0x1eb   :  { %1276 = vrot.lane.b32.xlu0 %v1125_v27, %s4544_s27  ;;  %4319 = vmatprep.mubr.msk.bf16.mxu0 %vm1424_vm5, %v5152_v56 }
 0x1ec   :  { %1214 = vrot.lane.b32.xlu1 %v5059_v9, %s4542_s29  ;;  %4320 = vmatmul.mubr.msk.bf16.gmra.mxu0 %vm1424_vm5, %v5163_v11  ;;  %v1266_v19 = vrot.slane %v5156_v8, 1 }
 0x1ed   :  { %v783_v16 = vpop.permute.xlu0 %782 }
 0x1ee   :  { %v5171_v2 = vmax.bf16 %v783_v16, %v4889_v7  ;;  %v5195_v29 = vsel %vm1114_vm3, %v1266_v19, %v4993_v24 }
 0x1ef   :  { %1168 = vrot.lane.b32.xlu0 %v1125_v27, %s4543_s9  ;;  %v909_v27 = vor.u32 %v908_v17, %v904_v25 }
 0x1f0   :  { %6599 = vst [vmem:[#allocation9_spill] sm:$0xff] %v5171_v2  ;;  %1376 = vrot.lane.b32.xlu1 %v5118_v54, %s4542_s29  ;;  %v1136_v21 = vrot.slane %v5171_v2, 1 }
 0x1f1   :  { %v5179_v47 = vpop.permute.xlu0 %788  ;;  %v5206_v39 = vsel %vm866_vm4, %v909_v27, %v4993_v24 }
 0x1f2   :  { %v5187_v7 = vsel %vm1114_vm3, %v1136_v21, %v4993_v24  ;;  %v946_v21 = vshll.u32 %v5126_v34, 16 }
 0x1f3   :  { %1057 = vrot.lane.b32.xlu0 %v5183_v30, %s4544_s27  ;;  %4323 = vmatprep.mubr.msk.bf16.mxu0 %vm1424_vm5, %v5187_v7 }
 0x1f4   :  { %1320 = vrot.lane.b32.xlu1 %v5069_v14, %s4543_s9  ;;  %4324 = vmatmul.mubr.msk.bf16.gmra.mxu0 %vm1424_vm5, %v5195_v29 }
 0x1f5   :  { %v787_v50 = vpop.permute.xlu0 %786 }
 0x1f6   :  { %v5202_v43 = vmax.bf16 %v787_v50, %v4899_v15 }
 0x1f7   :  { %1055 = vrot.lane.b32.xlu0 %v5206_v39, %s4544_s27 }
 0x1f8   :  { %1212 = vrot.lane.b32.xlu1 %v5069_v14, %s4542_s29  ;;  %v1420_v46 = vrot.slane %v5202_v43, 1 }
 0x1f9   :  { %v793_v49 = vpop.permute.xlu1 %792 }
 0x1fa   :  { %v5214_v51 = vmax.bf16 %v793_v49, %v4904_v18  ;;  %v1421_v15 = vsel %vm1114_vm3, %v1420_v46, %v4993_v24  ;;  %v932_v18 = vrot.slane %v930_v53, 1  ;;  %v948_v49 = vrot.slane %v946_v21, 1 }
 0x1fb   :  { %1216 = vrot.lane.b32.xlu0 %v5101_v44, %s4542_s29  ;;  %4327 = vmatprep.mubr.msk.bf16.mxu0 %vm1424_vm5, %v1421_v15  ;;  %v922_v21 = vshll.u32 %v5101_v44, 16 }
 0x1fc   :  { %6600 = vst [vmem:[#allocation10_spill] sm:$0xff] %v5214_v51  ;;  %1278 = vrot.lane.b32.xlu1 %v5091_v37, %s4544_s27  ;;  %v1142_v55 = vrot.slane %v5214_v51, 1  ;;  %v933_v37 = vor.u32 %v932_v18, %v928_v0 }
 0x1fd   :  { %v5256_v13 = vpop.permute.xlu1 %790 }
 0x1fe   :  { %v5227_v40 = vsel %vm1114_vm3, %v1142_v55, %v4993_v24  ;;  %v5248_v63 = vsel %vm866_vm4, %v933_v37, %v4993_v24  ;;  %v944_v55 = vshrl.u32 %v5126_v34, 16 }
 0x1ff   :  { %1282 = vrot.lane.b32.xlu0 %v5134_v60, %s4544_s27  ;;  %4328 = vmatmul.mubr.msk.bf16.gmra.mxu0 %vm1424_vm5, %v5227_v40 }
 0x200   :  { %1382 = vrot.lane.b32.xlu1 %v5183_v30, %s4542_s29  ;;  %v949_v0 = vor.u32 %v948_v49, %v944_v55  ;;  %v924_v49 = vrot.slane %v922_v21, 1  ;;  %v920_v55 = vshrl.u32 %v5101_v44, 16  ;;  %v952_v21 = vshrl.u32 %v5171_v2, 16 }
 0x201   :  { %v797_v1 = vpop.permute.xlu0 %796 }
 0x202   :  { %v5237_v4 = vmax.bf16 %v797_v1, %v4914_v26 }
 0x203   :  { %1174 = vrot.lane.b32.xlu0 %v5134_v60, %s4543_s9 }
 0x204   :  { %1326 = vrot.lane.b32.xlu1 %v5085_v36, %s4543_s9  ;;  %v1146_v26 = vrot.slane %v5237_v4, 1 }
 0x205   :  { %v795_v5 = vpop.permute.xlu0 %794 }
 0x206   :  { %v5244_v62 = vmax.bf16 %v795_v5, %v4919_v32  ;;  %v5271_v17 = vsel %vm1114_vm3, %v1146_v26, %v4993_v24  ;;  %v936_v26 = vshrl.u32 %v5141_v58, 16 }
 0x207   :  { %1061 = vrot.lane.b32.xlu0 %v5248_v63, %s4544_s27 }
 0x208   :  { %1218 = vrot.lane.b32.xlu1 %v5085_v36, %s4542_s29  ;;  %v1144_v60 = vrot.slane %v5244_v62, 1 }
 0x209   :  { %v801_v16 = vpop.permute.xlu0 %800 }
 0x20a   :  { %v5260_v32 = vsel %vm1114_vm3, %v1144_v60, %v4993_v24  ;;  %v5263_v42 = vmax.bf16 %v801_v16, %v4924_v35  ;;  %v5320_v16 = vsel %vm866_vm4, %v949_v0, %v4993_v24 }
 0x20b   :  { %1328 = vrot.lane.b32.xlu0 %v5141_v58, %s4543_s9  ;;  %4331 = vmatprep.mubr.msk.bf16.mxu0 %vm1424_vm5, %v5260_v32 }
 0x20c   :  { %1380 = vrot.lane.b32.xlu1 %v5206_v39, %s4542_s29  ;;  %4332 = vmatmul.mubr.msk.bf16.gmra.mxu0 %vm1424_vm5, %v5271_v17  ;;  %v1150_v25 = vrot.slane %v5263_v42, 1 }
 0x20d   :  { %v799_v19 = vpop.permute.xlu1 %798 }
 0x20e   :  { %v5278_v35 = vmax.bf16 %v799_v19, %v4929_v41  ;;  %v938_v41 = vshll.u32 %v5141_v58, 16  ;;  %v5301_v53 = vsel %vm1114_vm3, %v1150_v25, %v4993_v24 }
 0x20f   :  { %1220 = vrot.lane.b32.xlu0 %v5141_v58, %s4542_s29 }
 0x210   :  { %1324 = vrot.lane.b32.xlu1 %v5101_v44, %s4543_s9  ;;  %v1148_v27 = vrot.slane %v5278_v35, 1  ;;  %v940_v1 = vrot.slane %v938_v41, 1 }
 0x211   :  { %v805_v50 = vpop.permute.xlu0 %804 }
 0x212   :  { %v5289_v46 = vsel %vm1114_vm3, %v1148_v27, %v4993_v24  ;;  %v5293_v15 = vmax.bf16 %v805_v50, %v4934_v45  ;;  %v941_v19 = vor.u32 %v940_v1, %v936_v26 }
 0x213   :  { %1286 = vrot.lane.b32.xlu0 %v5163_v11, %s4544_s27  ;;  %4335 = vmatprep.mubr.msk.bf16.mxu0 %vm1424_vm5, %v5289_v46 }
 0x214   :  { %6601 = vst [vmem:[#allocation11_spill] sm:$0xff] %v5293_v15  ;;  %1280 = vrot.lane.b32.xlu1 %v5122_v59, %s4544_s27  ;;  %4336 = vmatmul.mubr.msk.bf16.gmra.mxu0 %vm1424_vm5, %v5301_v53  ;;  %v1154_v37 = vrot.slane %v5293_v15, 1  ;;  %v5347_v27 = vsel %vm866_vm4, %v941_v19, %v4993_v24 }
 0x215   :  { %v803_v45 = vpop.permute.xlu1 %802 }
 0x216   :  { %v5309_v18 = vmax.bf16 %v803_v45, %v4939_v52  ;;  %v954_v45 = vshll.u32 %v5171_v2, 16 }
 0x217   :  { %1178 = vrot.lane.b32.xlu0 %v5163_v11, %s4543_s9 }
 0x218   :  { %1172 = vrot.lane.b32.xlu1 %v5122_v59, %s4543_s9  ;;  %v1152_v5 = vrot.slane %v5309_v18, 1  ;;  %v5335_v59 = vsel %vm1114_vm3, %v1154_v37, %v4993_v24  ;;  %v925_v37 = vor.u32 %v924_v49, %v920_v55  ;;  %v1363_v55 = vshll.u32 %v5202_v43, 16 }
 0x219   :  { %v809_v60 = vpop.permute.xlu0 %808 }
 0x21a   :  { %v5324_v52 = vsel %vm1114_vm3, %v1152_v5, %v4993_v24  ;;  %v5327_v11 = vmax.bf16 %v809_v60, %v4947_v6  ;;  %v956_v60 = vrot.slane %v954_v45, 1  ;;  %v5381_v19 = vsel %vm866_vm4, %v925_v37, %v4993_v24 }
 0x21b   :  { %1065 = vrot.lane.b32.xlu0 %v5320_v16, %s4544_s27  ;;  %4339 = vmatprep.mubr.msk.bf16.mxu0 %vm1424_vm5, %v5324_v52 }
 0x21c   :  { %6602 = vst [vmem:[#allocation12_spill] sm:$0xff] %v5327_v11  ;;  %1386 = vrot.lane.b32.xlu1 %v5248_v63, %s4542_s29  ;;  %4340 = vmatmul.mubr.msk.bf16.gmra.mxu0 %vm1424_vm5, %v5335_v59  ;;  %v1158_v50 = vrot.slane %v5327_v11, 1 }
 0x21d   :  { %v807_v6 = vpop.permute.xlu1 %806 }
 0x21e   :  { %v5343_v25 = vmax.bf16 %v807_v6, %v4953_v3  ;;  %v5367_v1 = vsel %vm1114_vm3, %v1158_v50, %v4993_v24  ;;  %v5394_v6 = vmax.bf16 %v5179_v47, %v4894_v10  ;;  %v957_v50 = vor.u32 %v956_v60, %v952_v21 }
 0x21f   :  { %1388 = vrot.lane.b32.xlu0 %v5347_v27, %s4542_s29  ;;  %6603 = vst [vmem:[#allocation13_spill] sm:$0xff] %v5367_v1  ;;  %v1365_v21 = vrot.slane %v1363_v55, 1 }
 0x220   :  { %1330 = vrot.lane.b32.xlu1 %v5126_v34, %s4543_s9  ;;  %v1156_v41 = vrot.slane %v5343_v25, 1  ;;  %6606 = vst [vmem:[#allocation16_spill] sm:$0xff] %v5394_v6  ;;  %v962_v49 = vshll.u32 %v5394_v6, 16  ;;  %v1138_v10 = vrot.slane %v5394_v6, 1 }
 0x222   :  { %v5358_v3 = vsel %vm1114_vm3, %v1156_v41, %v4993_v24  ;;  %v5403_v41 = vsel %vm866_vm4, %v957_v50, %v4993_v24  ;;  %v964_v47 = vrot.slane %v962_v49, 1  ;;  %v1361_v50 = vshrl.u32 %v5202_v43, 16 }
 0x223   :  { %v811_v0 = vpop.permute.xlu1 %810  ;;  %1332 = vrot.lane.b32.xlu0 %v5171_v2, %s4543_s9  ;;  %4343 = vmatprep.mubr.msk.bf16.mxu0 %vm1424_vm5, %v5358_v3  ;;  %6607 = vst [vmem:[#allocation17_spill] sm:$0xff] %v5403_v41 }
 0x224   :  { %v5370_v5 = vmax.bf16 %v811_v0, %v4965_v12  ;;  %1222 = vrot.lane.b32.xlu1 %v5126_v34, %s4542_s29  ;;  %4344 = vmatmul.mubr.msk.bf16.gmra.mxu0 %vm1424_vm5, %v5367_v1  ;;  %v1139_v0 = vsel %vm1114_vm3, %v1138_v10, %v4993_v24 }
 0x226   :  { %6604 = vst [vmem:[#allocation14_spill] sm:$0xff] %v5370_v5  ;;  %v1268_v26 = vrot.slane %v5370_v5, 1 }
 0x227   :  { %1224 = vrot.lane.b32.xlu0 %v5171_v2, %s4542_s29 }
 0x228   :  { %1384 = vrot.lane.b32.xlu1 %v5381_v19, %s4542_s29  ;;  %v5387_v12 = vsel %vm1114_vm3, %v1268_v26, %v4993_v24 }
 0x229   :  { %6605 = vst [vmem:[#allocation15_spill] sm:$0xff] %v5387_v12  ;;  %4347 = vmatprep.mubr.msk.bf16.mxu0 %vm1424_vm5, %v5387_v12  ;;  %v978_v12 = vshll.u32 %v5214_v51, 16 }
 0x22b   :  { %1290 = vrot.lane.b32.xlu0 %v5195_v29, %s4544_s27  ;;  %v960_v29 = vshrl.u32 %v5394_v6, 16  ;;  %v980_v2 = vrot.slane %v978_v12, 1 }
 0x22c   :  { %1059 = vrot.lane.b32.xlu1 %v5381_v19, %s4544_s27 }
 0x22d   :  { %v965_v37 = vor.u32 %v964_v47, %v960_v29  ;;  %v1366_v47 = vor.u32 %v1365_v21, %v1361_v50 }
 0x22f   :  { %1392 = vrot.lane.b32.xlu0 %v5403_v41, %s4542_s29 }
 0x230   :  { %1284 = vrot.lane.b32.xlu1 %v5152_v56, %s4544_s27 }
 0x233   :  { %1336 = vrot.lane.b32.xlu0 %v5202_v43, %s4543_s9  ;;  %v1367_v43 = vsel %vm866_vm4, %v1366_v47, %v4993_v24 }
 0x234   :  { %1176 = vrot.lane.b32.xlu1 %v5152_v56, %s4543_s9  ;;  %v966_v56 = vsel %vm866_vm4, %v965_v37, %v4993_v24  ;;  %v5453_v37 = vmax.bf16 %v5256_v13, %v4909_v23 }
 0x236   :  { %v5416_v45 = vpop.permute.xlu1 %1206  ;;  %6608 = vst [vmem:[#allocation18_spill] sm:$0xff] %v5453_v37  ;;  %v1140_v6 = vrot.slane %v5453_v37, 1  ;;  %v970_v12 = vshll.u32 %v5453_v37, 16 }
 0x237   :  { %1182 = vrot.lane.b32.xlu0 %v1139_v0, %s4543_s9  ;;  %v1253_v0 = vshll.u32 %v5156_v8, 16 }
 0x238   :  { %1390 = vrot.lane.b32.xlu1 %v5320_v16, %s4542_s29  ;;  %v1141_v34 = vsel %vm1114_vm3, %v1140_v6, %v4993_v24  ;;  %v972_v20 = vrot.slane %v970_v12, 1 }
 0x239   :  { %v5423_v26 = vpop.permute.xlu0 %1162  ;;  %v1255_v50 = vrot.slane %v1253_v0, 1 }
 0x23a   :  { %v5425_v60 = vpop.permute.xlu1 %1270 }
 0x23b   :  { %1069 = vrot.lane.b32.xlu0 %v966_v56, %s4544_s27 }
 0x23c   :  { %1334 = vrot.lane.b32.xlu1 %v5156_v8, %s4543_s9 }
 0x23d   :  { %v5433_v49 = vpop.permute.xlu0 %1160 }
 0x23e   :  { %v5435_v10 = vpop.permute.xlu1 %1318 }
 0x23f   :  { %1230 = vrot.lane.b32.xlu0 %v5214_v51, %s4542_s29 }
 0x240   :  { %1226 = vrot.lane.b32.xlu1 %v5156_v8, %s4542_s29 }
 0x241   :  { %v5441_v29 = vpop.permute.xlu0 %1049 }
 0x242   :  { %v5443_v55 = vpop.permute.xlu1 %1210 }
 0x243   :  { %1396 = vrot.lane.b32.xlu0 %v1367_v43, %s4542_s29  ;;  %v1251_v43 = vshrl.u32 %v5156_v8, 16 }
 0x244   :  { %1063 = vrot.lane.b32.xlu1 %v5347_v27, %s4544_s27 }
 0x245   :  { %v1048_v56 = vpop.permute.xlu0 %1047  ;;  %v1256_v23 = vor.u32 %v1255_v50, %v1251_v43  ;;  %v976_v50 = vshrl.u32 %v5214_v51, 16 }
 0x246   :  { %v1317_v21 = vpop.permute.xlu1 %1316  ;;  %v1426_v12 = vsel %vm1424_vm5, %v5004_v33, %v1048_v56 }
 0x247   :  { %1228 = vrot.lane.b32.xlu0 %v5453_v37, %s4542_s29  ;;  %v5478_v8 = vsel %vm866_vm4, %v1256_v23, %v4993_v24  ;;  %v981_v38 = vor.u32 %v980_v2, %v976_v50  ;;  %v968_v2 = vshrl.u32 %v5453_v37, 16  ;;  %v994_v37 = vshll.u32 %v5237_v4, 16 }
 0x248   :  { %1288 = vrot.lane.b32.xlu1 %v5187_v7, %s4544_s27  ;;  %6609 = vst [vmem:[#allocation19_spill] sm:$0xff] %v5478_v8 }
 0x249   :  { %v5459_v47 = vpop.permute.xlu0 %1166 }
 0x24a   :  { %v5462_v28 = vpop.permute.xlu1 %1208 }
 0x24b   :  { %1294 = vrot.lane.b32.xlu0 %v5227_v40, %s4544_s27 }
 0x24c   :  { %1180 = vrot.lane.b32.xlu1 %v5187_v7, %s4543_s9 }
 0x24d   :  { %v5469_v13 = vpop.permute.xlu0 %1164 }
 0x24e   :  { %v5471_v0 = vpop.permute.xlu1 %1274 }
 0x24f   :  { %1186 = vrot.lane.b32.xlu0 %v5227_v40, %s4543_s9 }
 0x250   :  { %1394 = vrot.lane.b32.xlu1 %v5478_v8, %s4542_s29  ;;  %v5495_v8 = vsel %vm866_vm4, %v981_v38, %v4993_v24 }
 0x251   :  { %v5483_v7 = vpop.permute.xlu0 %1053  ;;  %6610 = vst [vmem:[#allocation20_spill] sm:$0xff] %v5495_v8 }
 0x252   :  { %v1273_v43 = vpop.permute.xlu1 %1272 }
 0x253   :  { %1184 = vrot.lane.b32.xlu0 %v1141_v34, %s4543_s9  ;;  %v1586_v33 = vsel %vm1424_vm5, %v5118_v54, %v1273_v43  ;;  %v996_v43 = vrot.slane %v994_v37, 1 }
 0x254   :  { %1067 = vrot.lane.b32.xlu1 %v5403_v41, %s4544_s27  ;;  %v973_v41 = vor.u32 %v972_v20, %v968_v2  ;;  %v1583_v20 = vsel %vm1424_vm5, %v5038_v61, %v5425_v60  ;;  %v1650_v54 = vsel %vm1469_vm6, %v1586_v33, %v5435_v10 }
 0x255   :  { %v5491_v40 = vpop.permute.xlu0 %1051  ;;  %v1648_v56 = vsel %vm1469_vm6, %v1583_v20, %v1317_v21  ;;  %v986_v20 = vshll.u32 %v5244_v62, 16 }
 0x256   :  { %v1379_v23 = vpop.permute.xlu1 %1378 }
 0x257   :  { %1073 = vrot.lane.b32.xlu0 %v5495_v8, %s4544_s27 }
 0x258   :  { %1338 = vrot.lane.b32.xlu1 %v5214_v51, %s4543_s9  ;;  %v5517_v51 = vsel %vm866_vm4, %v973_v41, %v4993_v24  ;;  %v1471_v41 = vsel %vm1469_vm6, %v1426_v12, %v5433_v49  ;;  %v1695_v49 = vsel %vm1514_vm7, %v1650_v54, %v1379_v23 }
 0x259   :  { %v5502_v6 = vpop.permute.xlu0 %1170  ;;  %v1516_v61 = vsel %vm1514_vm7, %v1471_v41, %v5416_v45  ;;  %v992_v45 = vshrl.u32 %v5237_v4, 16 }
 0x25a   :  { %v5504_v50 = vpop.permute.xlu1 %1322 }
 0x25b   :  { %1234 = vrot.lane.b32.xlu0 %v5237_v4, %s4542_s29  ;;  %v997_v23 = vor.u32 %v996_v43, %v992_v45  ;;  %v1430_v43 = vsel %vm1424_vm5, %v5026_v57, %v5491_v40  ;;  %v1010_v45 = vshll.u32 %v5263_v42, 16 }
 0x25c   :  { %1292 = vrot.lane.b32.xlu1 %v1141_v34, %s4544_s27  ;;  %v1475_v57 = vsel %vm1469_vm6, %v1430_v43, %v5469_v13  ;;  %v1008_v13 = vshrl.u32 %v5263_v42, 16  ;;  %v1002_v43 = vshll.u32 %v5278_v35, 16 }
 0x25d   :  { %v5509_v38 = vpop.permute.xlu0 %1276  ;;  %v5573_v41 = vsel %vm866_vm4, %v997_v23, %v4993_v24  ;;  %v1589_v23 = vsel %vm1424_vm5, %v5105_v31, %v5471_v0  ;;  %v1522_v31 = vsel %vm1514_vm7, %v1475_v57, %v5443_v55  ;;  %v1432_v55 = vsel %vm1424_vm5, %v5020_v48, %v5483_v7 }
 0x25e   :  { %v5513_v58 = vpop.permute.xlu1 %1214 }
 0x25f   :  { %1071 = vrot.lane.b32.xlu0 %v5517_v51, %s4544_s27 }
 0x260   :  { %1398 = vrot.lane.b32.xlu1 %v5495_v8, %s4542_s29 }
 0x261   :  { %v5528_v34 = vpop.permute.xlu0 %1168 }
 0x262   :  { %v1377_v2 = vpop.permute.xlu1 %1376 }
 0x263   :  { %1232 = vrot.lane.b32.xlu0 %v5244_v62, %s4542_s29  ;;  %v1692_v8 = vsel %vm1514_vm7, %v1648_v56, %v1377_v2  ;;  %v988_v56 = vrot.slane %v986_v20, 1  ;;  %v1592_v20 = vsel %vm1424_vm5, %v5206_v39, %v5509_v38 }
 0x264   :  { %1999 = vmatprep.mubr.bf16.mxu1 %v1692_v8  ;;  %1342 = vrot.lane.b32.xlu1 %v5237_v4, %s4543_s9  ;;  %v1428_v8 = vsel %vm1424_vm5, %v4990_v22, %v5441_v29  ;;  %v1654_v39 = vsel %vm1469_vm6, %v1592_v20, %v5504_v50  ;;  %v1477_v20 = vsel %vm1469_vm6, %v1432_v55, %v5459_v47 }
 0x265   :  { %2000 = vmatmul.mubr.bf16.vlgmr.msra.gmra.mxu1 %v1516_v61  ;;  %v5543_v60 = vpop.permute.xlu0 %1057  ;;  %v1473_v37 = vsel %vm1469_vm6, %v1428_v8, %v5423_v26 }
 0x266   :  { %v1321_v21 = vpop.permute.xlu1 %1320  ;;  %2007 = vmatprep.mubr.bf16.mxu1 %v1695_v49  ;;  %v1519_v22 = vsel %vm1514_vm7, %v1473_v37, %v5462_v28 }
 0x267   :  { %1190 = vrot.lane.b32.xlu0 %v5271_v17, %s4543_s9  ;;  %v1652_v40 = vsel %vm1469_vm6, %v1589_v23, %v1321_v21  ;;  %v1004_v23 = vrot.slane %v1002_v43, 1 }
 0x268   :  { %1340 = vrot.lane.b32.xlu1 %v5244_v62, %s4543_s9 }
 0x269   :  { %v5554_v10 = vpop.permute.xlu0 %1055 }
 0x26a   :  { %v5556_v12 = vpop.permute.xlu1 %1212  ;;  %v1434_v55 = vsel %vm1424_vm5, %v5069_v14, %v5554_v10 }
 0x26b   :  { %1188 = vrot.lane.b32.xlu0 %v5260_v32, %s4543_s9  ;;  %v1525_v48 = vsel %vm1514_vm7, %v1477_v20, %v5556_v12 }
 0x26c   :  { %1298 = vrot.lane.b32.xlu1 %v5271_v17, %s4544_s27  ;;  %v984_v17 = vshrl.u32 %v5244_v62, 16 }
 0x26d   :  { %2008 = vmatmul.mubr.bf16.gmra.mxu1 %v1519_v22  ;;  %v5567_v29 = vpop.permute.xlu0 %1216 }
 0x26e   :  { %v5569_v33 = vpop.permute.xlu1 %1278  ;;  %v989_v2 = vor.u32 %v988_v56, %v984_v17  ;;  %v1012_v56 = vrot.slane %v1010_v45, 1 }
 0x26f   :  { %1077 = vrot.lane.b32.xlu0 %v5573_v41, %s4544_s27 }
 0x270   :  { %1296 = vrot.lane.b32.xlu1 %v5260_v32, %s4544_s27  ;;  %v5592_v49 = vsel %vm866_vm4, %v989_v2, %v4993_v24  ;;  %v1013_v2 = vor.u32 %v1012_v56, %v1008_v13  ;;  %v1018_v13 = vshll.u32 %v5309_v18, 16 }
 0x271   :  { %v5580_v26 = vpop.permute.xlu0 %1282 }
 0x272   :  { %v1383_v28 = vpop.permute.xlu1 %1382 }
 0x273   :  { %1238 = vrot.lane.b32.xlu0 %v5263_v42, %s4542_s29  ;;  %v1701_v38 = vsel %vm1514_vm7, %v1654_v39, %v1383_v28  ;;  %v5646_v28 = vsel %vm866_vm4, %v1013_v2, %v4993_v24  ;;  %v1024_v2 = vshrl.u32 %v5293_v15, 16 }
 0x274   :  { %1402 = vrot.lane.b32.xlu1 %v5573_v41, %s4542_s29 }
 0x275   :  { %v5586_v61 = vpop.permute.xlu0 %1174 }
 0x276   :  { %v5588_v54 = vpop.permute.xlu1 %1326 }
 0x277   :  { %1075 = vrot.lane.b32.xlu0 %v5592_v49, %s4544_s27 }
 0x278   :  { %1346 = vrot.lane.b32.xlu1 %v5263_v42, %s4543_s9 }
 0x279   :  { %v5598_v32 = vpop.permute.xlu0 %1061 }
 0x27a   :  { %v5603_v8 = vpop.permute.xlu1 %1218 }
 0x27b   :  { %1236 = vrot.lane.b32.xlu0 %v5278_v35, %s4542_s29 }
 0x27c   :  { %1400 = vrot.lane.b32.xlu1 %v5592_v49, %s4542_s29 }
 0x27d   :  { %v5616_v37 = vpop.permute.xlu0 %1328 }
 0x27e   :  { %v1381_v22 = vpop.permute.xlu1 %1380 }
 0x27f   :  { %1194 = vrot.lane.b32.xlu0 %v5301_v53, %s4543_s9  ;;  %v1698_v17 = vsel %vm1514_vm7, %v1652_v40, %v1381_v22  ;;  %v1026_v22 = vshll.u32 %v5293_v15, 16 }
 0x280   :  { %1344 = vrot.lane.b32.xlu1 %v5278_v35, %s4543_s9  ;;  %2015 = vmatprep.mubr.bf16.mxu1 %v1698_v17 }
 0x281   :  { %2016 = vmatmul.mubr.bf16.gmra.mxu1 %v1522_v31  ;;  %v5631_v0 = vpop.permute.xlu0 %1220  ;;  %v1028_v39 = vrot.slane %v1026_v22, 1  ;;  %v1595_v22 = vsel %vm1424_vm5, %v5183_v30, %v5569_v33 }
 0x282   :  { %v1325_v21 = vpop.permute.xlu1 %1324  ;;  %2023 = vmatprep.mubr.bf16.mxu1 %v1701_v38 }
 0x283   :  { %1192 = vrot.lane.b32.xlu0 %v5289_v46, %s4543_s9 }
 0x284   :  { %1302 = vrot.lane.b32.xlu1 %v5301_v53, %s4544_s27  ;;  %v1000_v53 = vshrl.u32 %v5278_v35, 16 }
 0x285   :  { %v5642_v50 = vpop.permute.xlu0 %1286 }
 0x286   :  { %v1281_v45 = vpop.permute.xlu1 %1280  ;;  %v1005_v40 = vor.u32 %v1004_v23, %v1000_v53  ;;  %v1020_v53 = vrot.slane %v1018_v13, 1  ;;  %v1656_v13 = vsel %vm1469_vm6, %v1595_v22, %v1325_v21 }
 0x287   :  { %1081 = vrot.lane.b32.xlu0 %v5646_v28, %s4544_s27  ;;  %v1598_v14 = vsel %vm1424_vm5, %v5381_v19, %v1281_v45 }
 0x288   :  { %1300 = vrot.lane.b32.xlu1 %v5289_v46, %s4544_s27  ;;  %v5669_v12 = vsel %vm866_vm4, %v1005_v40, %v4993_v24  ;;  %v1016_v40 = vshrl.u32 %v5309_v18, 16  ;;  %v1658_v33 = vsel %vm1469_vm6, %v1598_v14, %v5588_v54 }
 0x289   :  { %2024 = vmatmul.mubr.bf16.gmra.mxu1 %v1525_v48  ;;  %v5657_v7 = vpop.permute.xlu0 %1178  ;;  %v1029_v48 = vor.u32 %v1028_v39, %v1024_v2  ;;  %v1479_v39 = vsel %vm1469_vm6, %v1434_v55, %v5528_v34 }
 0x28a   :  { %v5659_v57 = vpop.permute.xlu1 %1172  ;;  %v1528_v34 = vsel %vm1514_vm7, %v1479_v39, %v5513_v58  ;;  %v1436_v58 = vsel %vm1424_vm5, %v5059_v9, %v5543_v60 }
 0x28b   :  { %1242 = vrot.lane.b32.xlu0 %v5293_v15, %s4542_s29  ;;  %v1481_v9 = vsel %vm1469_vm6, %v1436_v58, %v5502_v6 }
 0x28c   :  { %1406 = vrot.lane.b32.xlu1 %v5646_v28, %s4542_s29 }
 0x28d   :  { %v5665_v47 = vpop.permute.xlu0 %1065 }
 0x28e   :  { %v1387_v46 = vpop.permute.xlu1 %1386 }
 0x28f   :  { %1079 = vrot.lane.b32.xlu0 %v5669_v12, %s4544_s27  ;;  %v1707_v45 = vsel %vm1514_vm7, %v1658_v33, %v1387_v46  ;;  %v1034_v33 = vshll.u32 %v5343_v25, 16 }
 0x290   :  { %1350 = vrot.lane.b32.xlu1 %v5293_v15, %s4543_s9  ;;  %v1021_v15 = vor.u32 %v1020_v53, %v1016_v40 }
 0x291   :  { %v1389_v56 = vpop.permute.xlu0 %1388 }
 0x292   :  { %v5676_v17 = vpop.f32.mrf.mxu0  ;;  %v5678_v31 = vpop.permute.xlu1 %1330 }
 0x293   :  { %6611 = vst [vmem:[#allocation21_spill] sm:$0xff] %v5676_v17  ;;  %1240 = vrot.lane.b32.xlu0 %v5309_v18, %s4542_s29  ;;  %v5716_v17 = vsel %vm866_vm4, %v1029_v48, %v4993_v24  ;;  %v5736_v48 = vsel %vm866_vm4, %v1021_v15, %v4993_v24  ;;  %v1601_v15 = vsel %vm1424_vm5, %v5248_v63, %v5580_v26 }
 0x294   :  { %v5683_v38 = vpop.f32.mrf.mxu0  ;;  %1404 = vrot.lane.b32.xlu1 %v5669_v12, %s4542_s29  ;;  %v1660_v60 = vsel %vm1469_vm6, %v1601_v15, %v5616_v37  ;;  %v1261_v37 = vshll.u32 %v5370_v5, 16 }
 0x295   :  { %v5688_v43 = vpop.permute.xlu0 %1332  ;;  %v1710_v63 = vsel %vm1514_vm7, %v1660_v60, %v1389_v56 }
 0x296   :  { %v5693_v23 = vpop.f32.mrf.mxu0  ;;  %v5695_v20 = vpop.permute.xlu1 %1222 }
 0x297   :  { %6612 = vst [vmem:[#allocation22_spill] sm:$0xff] %v5693_v23  ;;  %1196 = vrot.lane.b32.xlu0 %v5324_v52, %s4543_s9 }
 0x298   :  { %1348 = vrot.lane.b32.xlu1 %v5309_v18, %s4543_s9  ;;  %v5712_v2 = vpop.f32.mrf.mxu0 }
 0x299   :  { %v5707_v10 = vpop.permute.xlu0 %1224 }
 0x29a   :  { %v1385_v23 = vpop.permute.xlu1 %1384 }
 0x29b   :  { %1085 = vrot.lane.b32.xlu0 %v5716_v17, %s4544_s27  ;;  %v1704_v30 = vsel %vm1514_vm7, %v1656_v13, %v1385_v23 }
 0x29c   :  { %v5721_v19 = vpop.f32.mrf.mxu0  ;;  %1306 = vrot.lane.b32.xlu1 %v5335_v59, %s4544_s27  ;;  %2031 = vmatprep.mubr.bf16.mxu1 %v1704_v30 }
 0x29d   :  { %2032 = vmatmul.mubr.bf16.gmra.mxu1 %v1528_v34  ;;  %v5729_v21 = vpop.permute.xlu0 %1290  ;;  %v1263_v34 = vrot.slane %v1261_v37, 1  ;;  %v1032_v37 = vshrl.u32 %v5343_v25, 16 }
 0x29e   :  { %v5732_v55 = vpop.f32.mrf.mxu0  ;;  %v1060_v23 = vpop.permute.xlu1 %1059  ;;  %2039 = vmatprep.mubr.bf16.mxu1 %v1707_v45 }
 0x29f   :  { %1083 = vrot.lane.b32.xlu0 %v5736_v48, %s4544_s27 }
 0x2a0   :  { %v5743_v54 = vpop.f32.mrf.mxu0  ;;  %1304 = vrot.lane.b32.xlu1 %v5324_v52, %s4544_s27  ;;  %v1531_v52 = vsel %vm1514_vm7, %v1481_v9, %v5567_v29 }
 0x2a1   :  { %v5747_v46 = vpop.permute.xlu0 %1392 }
 0x2a2   :  { %v5749_v53 = vpop.f32.mrf.mxu0  ;;  %v1285_v40 = vpop.permute.xlu1 %1284 }
 0x2a3   :  { %1198 = vrot.lane.b32.xlu0 %v5335_v59, %s4543_s9  ;;  %v1438_v59 = vsel %vm1424_vm5, %v5101_v44, %v1060_v23  ;;  %v1604_v29 = vsel %vm1424_vm5, %v5347_v27, %v1285_v40  ;;  %v1259_v23 = vshrl.u32 %v5370_v5, 16 }
 0x2a4   :  { %v5760_v22 = vpop.f32.mrf.mxu0  ;;  %1410 = vrot.lane.b32.xlu1 %v5716_v17, %s4542_s29  ;;  %v1483_v44 = vsel %vm1469_vm6, %v1438_v59, %v5659_v57  ;;  %v1662_v57 = vsel %vm1469_vm6, %v1604_v29, %v5678_v31  ;;  %v1440_v31 = vsel %vm1424_vm5, %v5085_v36, %v5598_v32  ;;  %v1607_v36 = vsel %vm1424_vm5, %v5320_v16, %v5642_v50 }
 0x2a5   :  { %2040 = vmatmul.mubr.bf16.gmra.mxu1 %v1531_v52  ;;  %v5766_v14 = vpop.permute.xlu0 %1336  ;;  %v1534_v27 = vsel %vm1514_vm7, %v1483_v44, %v5603_v8  ;;  %v1264_v60 = vor.u32 %v1263_v34, %v1259_v23  ;;  %v1036_v52 = vrot.slane %v1034_v33, 1  ;;  %v1042_v8 = vshll.u32 %v5327_v11, 16 }
 0x2a6   :  { %v5771_v6 = vpop.f32.mrf.mxu0  ;;  %v1177_v26 = vpop.permute.xlu1 %1176  ;;  %2047 = vmatprep.mubr.bf16.mxu1 %v1710_v63  ;;  %v1485_v32 = vsel %vm1469_vm6, %v1440_v31, %v5586_v61  ;;  %v1040_v61 = vshrl.u32 %v5327_v11, 16 }
 0x2a7   :  { %1244 = vrot.lane.b32.xlu0 %v5343_v25, %s4542_s29  ;;  %v1037_v34 = vor.u32 %v1036_v52, %v1032_v37  ;;  %v1044_v33 = vrot.slane %v1042_v8, 1  ;;  %v1537_v23 = vsel %vm1514_vm7, %v1485_v32, %v5631_v0 }
 0x2a8   :  { %v5776_v39 = vpop.f32.mrf.mxu0  ;;  %1408 = vrot.lane.b32.xlu1 %v5736_v48, %s4542_s29 }
 0x2a9   :  { %v5782_v56 = vpop.permute.xlu0 %1182  ;;  %v5850_v8 = vsel %vm866_vm4, %v1037_v34, %v4993_v24  ;;  %v1045_v31 = vor.u32 %v1044_v33, %v1040_v61 }
 0x2aa   :  { %v5786_v13 = vpop.f32.mrf.mxu0  ;;  %v1391_v30 = vpop.permute.xlu1 %1390 }
 0x2ab   :  { %1310 = vrot.lane.b32.xlu0 %v5367_v1, %s4544_s27  ;;  %v1713_v40 = vsel %vm1514_vm7, %v1662_v57, %v1391_v30  ;;  %v5824_v30 = vsel %vm866_vm4, %v1264_v60, %v4993_v24  ;;  %v5859_v32 = vsel %vm866_vm4, %v1045_v31, %v4993_v24  ;;  %v6619_v31 = vld [vmem:[#allocation7_spill] sm:$0xff] }
 0x2ac   :  { %v5791_v45 = vpop.f32.mrf.mxu0  ;;  %1354 = vrot.lane.b32.xlu1 %v5327_v11, %s4543_s9  ;;  %6613 = vst [vmem:[#allocation23_spill] sm:$0xff] %v5824_v30 }
 0x2ad   :  { %2048 = vmatmul.mubr.bf16.gmra.mxu1 %v1534_v27  ;;  %v5800_v58 = vpop.permute.xlu0 %1069  ;;  %v1664_v27 = vsel %vm1469_vm6, %v1607_v36, %v5688_v43  ;;  %v6614_v43 = vld [vmem:[#allocation8_spill] sm:$0xff] }
 0x2ae   :  { %v5803_v15 = vpop.f32.mrf.mxu0  ;;  %v1335_v9 = vpop.permute.xlu1 %1334  ;;  %2055 = vmatprep.mubr.bf16.mxu1 %v1713_v40  ;;  %v1716_v50 = vsel %vm1514_vm7, %v1664_v27, %v5747_v46 }
 0x2af   :  { %1356 = vrot.lane.b32.xlu0 %v5370_v5, %s4543_s9 }
 0x2b0   :  { %v5811_v63 = vpop.f32.mrf.mxu0  ;;  %1352 = vrot.lane.b32.xlu1 %v5343_v25, %s4543_s9 }
 0x2b1   :  { %v5815_v59 = vpop.permute.xlu0 %1230 }
 0x2b2   :  { %v5818_v29 = vpop.f32.mrf.mxu0  ;;  %v5820_v44 = vpop.permute.xlu1 %1226 }
 0x2b3   :  { %1416 = vrot.lane.b32.xlu0 %v5824_v30, %s4542_s29  ;;  %v1444_v30 = vsel %vm1424_vm5, %v6619_v31, %v5665_v47 }
 0x2b4   :  { %v5835_v57 = vpop.f32.mrf.mxu0  ;;  %1308 = vrot.lane.b32.xlu1 %v5358_v3, %s4544_s27  ;;  %v1489_v47 = vsel %vm1469_vm6, %v1444_v30, %v5657_v7 }
 0x2b5   :  { %2056 = vmatmul.mubr.bf16.gmra.mxu1 %v1537_v23  ;;  %v1397_v16 = vpop.permute.xlu0 %1396  ;;  %v6615_v23 = vld [vmem:[#allocation5_spill] sm:$0xff] }
 0x2b6   :  { %v1064_v40 = vpop.permute.xlu1 %1063  ;;  %2063 = vmatprep.mubr.bf16.mxu1 %v1716_v50  ;;  %v5844_v60 = vpop.f32.mrf.mxu0  ;;  %v6616_v50 = vld [vmem:[#allocation6_spill] sm:$0xff] }
 0x2b7   :  { %v1442_v52 = vsel %vm1424_vm5, %v6614_v43, %v1064_v40  ;;  %v5869_v61 = vmax.bf16 %v6616_v50, %v6615_v23  ;;  %v6617_v40 = vld [vmem:[#allocation17_spill] sm:$0xff]  ;;  %v6620_v50 = vld [vmem:[#allocation19_spill] sm:$0xff] }
 0x2b8   :  { %1412 = vrot.lane.b32.xlu1 %v5850_v8, %s4542_s29  ;;  %v5854_v0 = vpop.f32.mrf.mxu0  ;;  %v1487_v37 = vsel %vm1469_vm6, %v1442_v52, %v1177_v26  ;;  %v1613_v5 = vsel %vm1424_vm5, %v6620_v50, %v5729_v21 }
 0x2b9   :  { %v1229_v46 = vpop.permute.xlu0 %1228  ;;  %v1540_v34 = vsel %vm1514_vm7, %v1487_v37, %v5695_v20  ;;  %v1668_v31 = vsel %vm1469_vm6, %v1613_v5, %v5766_v14 }
 0x2ba   :  { %v1289_v36 = vpop.permute.xlu1 %1288  ;;  %v5865_v33 = vpop.f32.mrf.mxu0 }
 0x2bb   :  { %v1610_v43 = vsel %vm1424_vm5, %v6617_v40, %v1289_v36 }
 0x2bc   :  { %1414 = vrot.lane.b32.xlu1 %v5859_v32, %s4542_s29  ;;  %v1666_v23 = vsel %vm1469_vm6, %v1610_v43, %v1335_v9  ;;  %v1543_v9 = vsel %vm1514_vm7, %v1489_v47, %v5707_v10 }
 0x2bd   :  { %2064 = vmatmul.mubr.bf16.gmra.mxu1 %v1540_v34  ;;  %v1295_v27 = vpop.permute.xlu0 %1294 }
 0x2be   :  { %v1181_v26 = vpop.permute.xlu1 %1180 }
 0x2bf   :  { %v5873_v52 = vpop.f32.mrf.mxu0 }
 0x2c0   :  { %6618 = vst [vmem:[#allocation8_spill] sm:$0xff] %v5873_v52  ;;  %812 = vrot.lane.b32.xlu1 %v5869_v61, %s4543_s9 }
 0x2c1   :  { %v2286_v20 = vpop.f32.mrf.mxu0  ;;  %v5880_v37 = vpop.permute.xlu0 %1186 }
 0x2c2   :  { %v1395_v34 = vpop.permute.xlu1 %1394  ;;  %v1722_v20 = vsel %vm1514_vm7, %v1668_v31, %v1397_v16 }
 0x2c3   :  { %v5886_v36 = vpop.f32.mrf.mxu0  ;;  %v1719_v40 = vsel %vm1514_vm7, %v1666_v23, %v1395_v34  ;;  %v6622_v34 = vld [vmem:[#allocation9_spill] sm:$0xff] }
 0x2c4   :  { %6621 = vst [vmem:[#allocation5_spill] sm:$0xff] %v5886_v36  ;;  %1200 = vrot.lane.b32.xlu1 %v5358_v3, %s4543_s9  ;;  %2071 = vmatprep.mubr.bf16.mxu1 %v1719_v40  ;;  %v6623_v40 = vld [vmem:[#allocation16_spill] sm:$0xff] }
 0x2c5   :  { %2072 = vmatmul.mubr.bf16.gmra.mxu1 %v1543_v9  ;;  %v2288_v43 = vpop.f32.mrf.mxu0  ;;  %v1185_v21 = vpop.permute.xlu0 %1184  ;;  %v1448_v47 = vsel %vm1424_vm5, %v6623_v40, %v5800_v58 }
 0x2c6   :  { %v1068_v50 = vpop.permute.xlu1 %1067  ;;  %2079 = vmatprep.mubr.bf16.mxu1 %v1722_v20  ;;  %v1493_v20 = vsel %vm1469_vm6, %v1448_v47, %v5782_v56  ;;  %v6625_v47 = vld [vmem:[#allocation20_spill] sm:$0xff] }
 0x2c7   :  { %v1446_v7 = vsel %vm1424_vm5, %v6622_v34, %v1068_v50 }
 0x2c8   :  { %1087 = vrot.lane.b32.xlu1 %v5850_v8, %s4544_s27  ;;  %v1491_v3 = vsel %vm1469_vm6, %v1446_v7, %v1181_v26 }
 0x2c9   :  { %v1074_v5 = vpop.permute.xlu0 %1073  ;;  %v1546_v10 = vsel %vm1514_vm7, %v1491_v3, %v5820_v44  ;;  %v1549_v44 = vsel %vm1514_vm7, %v1493_v20, %v1229_v46  ;;  %v1619_v46 = vsel %vm1424_vm5, %v6625_v47, %v1295_v27 }
 0x2ca   :  { %v1339_v14 = vpop.permute.xlu1 %1338 }
 0x2cc   :  { %1246 = vrot.lane.b32.xlu1 %v5327_v11, %s4542_s29 }
 0x2cd   :  { %2080 = vmatmul.mubr.bf16.gmra.mxu1 %v1546_v10  ;;  %v1235_v30 = vpop.permute.xlu0 %1234 }
 0x2ce   :  { %v1293_v16 = vpop.permute.xlu1 %1292 }
 0x2cf   :  { %v1616_v23 = vsel %vm1424_vm5, %v5517_v51, %v1293_v16 }
 0x2d0   :  { %v1670_v26 = vsel %vm1469_vm6, %v1616_v23, %v1339_v14 }
 0x2d1   :  { %v1072_v31 = vpop.permute.xlu0 %1071 }
 0x2d2   :  { %v1399_v9 = vpop.permute.xlu1 %1398 }
 0x2d3   :  { %v1725_v43 = vsel %vm1514_vm7, %v1670_v26, %v1399_v9  ;;  %v6624_v9 = vld [vmem:[#allocation18_spill] sm:$0xff] }
 0x2d4   :  { %2085 = vmatprep.mubr.bf16.mxu1 %v1725_v43  ;;  %v1450_v26 = vsel %vm1424_vm5, %v6624_v9, %v1072_v31 }
 0x2d5   :  { %2086 = vmatmul.mubr.bf16.gmra.mxu1 %v1549_v44  ;;  %v1233_v50 = vpop.permute.xlu0 %1232  ;;  %v1495_v44 = vsel %vm1469_vm6, %v1450_v26, %v1185_v21 }
 0x2d6   :  { %v1343_v34 = vpop.permute.xlu1 %1342  ;;  %v1552_v52 = vsel %vm1514_vm7, %v1495_v44, %v5815_v59 }
 0x2d9   :  { %v1191_v51 = vpop.permute.xlu0 %1190 }
 0x2da   :  { %v1341_v7 = vpop.permute.xlu1 %1340 }
 0x2db   :  { %v1672_v11 = vsel %vm1469_vm6, %v1619_v46, %v1341_v7 }
 0x2dd   :  { %v1189_v3 = vpop.permute.xlu0 %1188 }
 0x2de   :  { %v1299_v10 = vpop.permute.xlu1 %1298 }
 0x2e1   :  { %v1078_v58 = vpop.permute.xlu0 %1077 }
 0x2e2   :  { %v1297_v16 = vpop.permute.xlu1 %1296 }
 0x2e3   :  { %v1622_v43 = vsel %vm1424_vm5, %v5592_v49, %v1297_v16  ;;  %v6626_v49 = vld [vmem:[#allocation10_spill] sm:$0xff] }
 0x2e4   :  { %v1674_v31 = vsel %vm1469_vm6, %v1622_v43, %v1343_v34  ;;  %v1452_v21 = vsel %vm1424_vm5, %v6626_v49, %v1074_v5  ;;  %v1625_v5 = vsel %vm1424_vm5, %v5573_v41, %v1299_v10 }
 0x2e5   :  { %v5917_v40 = vpop.permute.xlu0 %1238 }
 0x2e6   :  { %v1403_v14 = vpop.permute.xlu1 %1402 }
 0x2e7   :  { %v1731_v27 = vsel %vm1514_vm7, %v1674_v31, %v1403_v14 }
 0x2e9   :  { %v1076_v23 = vpop.permute.xlu0 %1075 }
 0x2ea   :  { %v1347_v56 = vpop.permute.xlu1 %1346  ;;  %v1454_v14 = vsel %vm1424_vm5, %v5244_v62, %v1076_v23 }
 0x2ed   :  { %v1237_v20 = vpop.permute.xlu0 %1236 }
 0x2ee   :  { %v1401_v1 = vpop.permute.xlu1 %1400 }
 0x2ef   :  { %v1728_v36 = vsel %vm1514_vm7, %v1672_v11, %v1401_v1  ;;  %v1497_v11 = vsel %vm1469_vm6, %v1452_v21, %v5880_v37 }
 0x2f0   :  { %2093 = vmatprep.mubr.bf16.mxu1 %v1728_v36  ;;  %v1555_v1 = vsel %vm1514_vm7, %v1497_v11, %v1233_v50  ;;  %v1499_v50 = vsel %vm1469_vm6, %v1454_v14, %v1189_v3 }
 0x2f1   :  { %2094 = vmatmul.mubr.bf16.gmra.mxu1 %v1552_v52  ;;  %v1195_v9 = vpop.permute.xlu0 %1194  ;;  %v1558_v49 = vsel %vm1514_vm7, %v1499_v50, %v1235_v30 }
 0x2f2   :  { %v1345_v47 = vpop.permute.xlu1 %1344  ;;  %2101 = vmatprep.mubr.bf16.mxu1 %v1731_v27 }
 0x2f3   :  { %v1676_v44 = vsel %vm1469_vm6, %v1625_v5, %v1345_v47 }
 0x2f5   :  { %v1193_v16 = vpop.permute.xlu0 %1192 }
 0x2f6   :  { %v1303_v7 = vpop.permute.xlu1 %1302 }
 0x2f9   :  { %2102 = vmatmul.mubr.bf16.gmra.mxu1 %v1555_v1  ;;  %v1082_v59 = vpop.permute.xlu0 %1081 }
 0x2fa   :  { %v1301_v36 = vpop.permute.xlu1 %1300 }
 0x2fb   :  { %v1628_v43 = vsel %vm1424_vm5, %v5669_v12, %v1301_v36  ;;  %v1456_v12 = vsel %vm1424_vm5, %v5237_v4, %v1078_v58 }
 0x2fc   :  { %v1678_v62 = vsel %vm1469_vm6, %v1628_v43, %v1347_v56  ;;  %v1501_v21 = vsel %vm1469_vm6, %v1456_v12, %v1191_v51 }
 0x2fd   :  { %v5937_v34 = vpop.permute.xlu0 %1242  ;;  %v1561_v11 = vsel %vm1514_vm7, %v1501_v21, %v1237_v20 }
 0x2fe   :  { %v1407_v52 = vpop.permute.xlu1 %1406 }
 0x2ff   :  { %v1737_v41 = vsel %vm1514_vm7, %v1678_v62, %v1407_v52  ;;  %v1631_v52 = vsel %vm1424_vm5, %v5646_v28, %v1303_v7 }
 0x301   :  { %v1080_v26 = vpop.permute.xlu0 %1079 }
 0x302   :  { %v1351_v46 = vpop.permute.xlu1 %1350  ;;  %v1458_v56 = vsel %vm1424_vm5, %v5278_v35, %v1080_v26 }
 0x303   :  { %v1503_v58 = vsel %vm1469_vm6, %v1458_v56, %v1193_v16 }
 0x304   :  { %v1564_v43 = vsel %vm1514_vm7, %v1503_v58, %v5917_v40  ;;  %v2397_v40 = vld [vmem:[%s6573_s3] sm:$0x1] }
 0x305   :  { %v1241_v37 = vpop.permute.xlu0 %1240 }
 0x306   :  { %v1405_v31 = vpop.permute.xlu1 %1404 }
 0x307   :  { %v1734_v27 = vsel %vm1514_vm7, %v1676_v44, %v1405_v31  ;;  %v2402_v31 = vlaneseq }
 0x308   :  { %2109 = vmatprep.mubr.bf16.mxu1 %v1734_v27 }
 0x309   :  { %2110 = vmatmul.mubr.bf16.gmra.mxu1 %v1558_v49  ;;  %v1197_v23 = vpop.permute.xlu0 %1196 }
 0x30a   :  { %v1349_v10 = vpop.permute.xlu1 %1348  ;;  %2117 = vmatprep.mubr.bf16.mxu1 %v1737_v41 }
 0x30b   :  { %v1680_v14 = vsel %vm1469_vm6, %v1631_v52, %v1349_v10 }
 0x30d   :  { %v5953_v3 = vpop.permute.xlu0 %1085 }
 0x30e   :  { %v1307_v47 = vpop.permute.xlu1 %1306 }
 0x311   :  { %2118 = vmatmul.mubr.bf16.gmra.mxu1 %v1561_v11  ;;  %v1084_v1 = vpop.permute.xlu0 %1083 }
 0x312   :  { %v1305_v30 = vpop.permute.xlu1 %1304 }
 0x313   :  { %v1634_v4 = vsel %vm1424_vm5, %v5736_v48, %v1305_v30  ;;  %v1460_v48 = vsel %vm1424_vm5, %v5263_v42, %v1082_v59  ;;  %v2398_v42 = vpack.c.bf16 %v2397_v40, %v2397_v40  ;;  %v2403_v59 = vshrl.u32 %v2402_v31, 7 }
 0x314   :  { %v1682_v35 = vsel %vm1469_vm6, %v1634_v4, %v1351_v46  ;;  %v1505_v50 = vsel %vm1469_vm6, %v1460_v48, %v1195_v9  ;;  %v1462_v46 = vsel %vm1424_vm5, %v5309_v18, %v1084_v1  ;;  %v1637_v9 = vsel %vm1424_vm5, %v5716_v17, %v1307_v47 }
 0x315   :  { %v1199_v51 = vpop.permute.xlu0 %1198  ;;  %v1567_v44 = vsel %vm1514_vm7, %v1505_v50, %v1241_v37  ;;  %v1507_v37 = vsel %vm1469_vm6, %v1462_v46, %v1197_v23  ;;  %v2400_v4 = vpack.i.b16 %v2398_v42, %v2398_v42  ;;  %v2404_v17 = vsub.s32 0, %v2403_v59 }
 0x316   :  { %v1411_v36 = vpop.permute.xlu1 %1410  ;;  %v1570_v23 = vsel %vm1514_vm7, %v1507_v37, %v5937_v34  ;;  %v6629_v34 = vld [vmem:[#allocation22_spill] sm:$0xff] }
 0x317   :  { %v1743_v28 = vsel %vm1514_vm7, %v1682_v35, %v1411_v36 }
 0x319   :  { %v1245_v16 = vpop.permute.xlu0 %1244 }
 0x31a   :  { %v1409_v5 = vpop.permute.xlu1 %1408 }
 0x31b   :  { %v1740_v20 = vsel %vm1514_vm7, %v1680_v14, %v1409_v5 }
 0x31c   :  { %2125 = vmatprep.mubr.bf16.mxu1 %v1740_v20  ;;  %v6627_v20 = vld [vmem:[#allocation11_spill] sm:$0xff] }
 0x31d   :  { %2126 = vmatmul.mubr.bf16.gmra.mxu1 %v1564_v43  ;;  %v1311_v49 = vpop.permute.xlu0 %1310  ;;  %v1464_v43 = vsel %vm1424_vm5, %v6627_v20, %v5953_v3 }
 0x31e   :  { %v1355_v7 = vpop.permute.xlu1 %1354  ;;  %2133 = vmatprep.mubr.bf16.mxu1 %v1743_v28  ;;  %v6628_v28 = vld [vmem:[#allocation21_spill] sm:$0xff] }
 0x321   :  { %v1357_v36 = vpop.permute.xlu0 %1356 }
 0x322   :  { %v1353_v26 = vpop.permute.xlu1 %1352 }
 0x323   :  { %v1684_v12 = vsel %vm1469_vm6, %v1637_v9, %v1353_v26 }
 0x325   :  { %v2001_v27 = vpop.f32.mrf.mxu1  ;;  %2134 = vmatmul.mubr.bf16.gmra.mxu1 %v1567_v44  ;;  %v1417_v35 = vpop.permute.xlu0 %1416  ;;  %v1509_v44 = vsel %vm1469_vm6, %v1464_v43, %v1199_v51 }
 0x326   :  { %v1309_v62 = vpop.permute.xlu1 %1308  ;;  %v2207_v21 = vadd.f32 %v5683_v38, %v2001_v27 }
 0x327   :  { %v2003_v41 = vpop.f32.mrf.mxu1  ;;  %v1640_v18 = vsel %vm1424_vm5, %v5850_v8, %v1309_v62  ;;  %v5992_v8 = vrot.slane %v2400_v4, %v2404_v17  ;;  %v1573_v62 = vsel %vm1514_vm7, %v1509_v44, %v1245_v16 }
 0x329   :  { %v2004_v10 = vpop.f32.mrf.mxu1 }
 0x32a   :  { %v2210_v11 = vadd.f32 %v5712_v2, %v2004_v10  ;;  %v1413_v30 = vpop.permute.xlu1 %1412  ;;  %v1686_v2 = vsel %vm1469_vm6, %v1640_v18, %v1355_v7  ;;  %v1643_v7 = vsel %vm1424_vm5, %v5859_v32, %v1311_v49  ;;  %v6630_v49 = vmov 0  }
 0x32b   :  { %v2006_v1 = vpop.f32.mrf.mxu1  ;;  %v1746_v56 = vsel %vm1514_vm7, %v1684_v12, %v1413_v30  ;;  %v1688_v40 = vsel %vm1469_vm6, %v1643_v7, %v1357_v36 }
 0x32c   :  { %v2377_v52 = vpack.c.bf16 %v2210_v11, %v2207_v21  ;;  %2141 = vmatprep.mubr.bf16.mxu1 %v1746_v56  ;;  %v1752_v41 = vsel %vm1514_vm7, %v1688_v40, %v1417_v35 }
 0x32d   :  { %v2009_v47 = vpop.f32.mrf.mxu1  ;;  %2142 = vmatmul.mubr.bf16.gmra.mxu1 %v1570_v23 }
 0x32e   :  { %v1415_v38 = vpop.permute.xlu1 %1414  ;;  %v2215_v48 = vadd.f32 %v6628_v28, %v2009_v47  ;;  %v2406_v46 = vadd.bf16 %v5992_v8, %v2377_v52 }
 0x32f   :  { %v2011_v58 = vpop.f32.mrf.mxu1  ;;  %v1749_v14 = vsel %vm1514_vm7, %v1686_v2, %v1415_v38 }
 0x330   :  { %2149 = vmatprep.mubr.bf16.mxu1 %v1749_v14  ;;  %v2426_v9 = vmax.bf16 %v6630_v49, %v2406_v46 }
 0x331   :  { %v2012_v5 = vpop.f32.mrf.mxu1 }
 0x332   :  { %v2218_v26 = vadd.f32 %v6629_v34, %v2012_v5  ;;  %v813_v50 = vpop.permute.xlu1 %812 }
 0x333   :  { %v6003_v31 = vmax.bf16 %v813_v50, %v5869_v61  ;;  %v2014_v27 = vpop.f32.mrf.mxu1 }
 0x334   :  { %v2378_v3 = vpack.c.bf16 %v2218_v26, %v2215_v48 }
 0x335   :  { %2150 = vmatmul.mubr.bf16.gmra.mxu1 %v1573_v62  ;;  %v1422_v42 = vrot.slane %v6003_v31, 1 }
 0x336   :  { %v2407_v51 = vadd.bf16 %v5992_v8, %v2378_v3  ;;  %v1201_v59 = vpop.permute.xlu1 %1200  ;;  %2157 = vmatprep.mubr.bf16.mxu1 %v1752_v41 }
 0x337   :  { %v1423_v61 = vsel %vm1114_vm3, %v1422_v42, %v4993_v24 }
 0x338   :  { %v2427_v10 = vmax.bf16 %v6630_v49, %v2407_v51  ;;  %4348 = vmatmul.mubr.msk.bf16.gmra.mxu0 %vm1424_vm5, %v1423_v61 }
 0x33a   :  { %v2446_v37 = vmax.bf16 %v2427_v10, %v2426_v9  ;;  %v1088_v16 = vpop.permute.xlu1 %1087 }
 0x33b   :  { %v1466_v12 = vsel %vm1424_vm5, %v5343_v25, %v1088_v16 }
 0x33c   :  { %v1511_v11 = vsel %vm1469_vm6, %v1466_v12, %v1201_v59  ;;  %v2457_v20 = vshrl.u32 %v2446_v37, 16 }
 0x33e   :  { %v1247_v21 = vpop.permute.xlu1 %1246  ;;  %v2496_v35 = vmax.bf16 %v2457_v20, %v2446_v37 }
 0x33f   :  { %v1576_v30 = vsel %vm1514_vm7, %v1511_v11, %v1247_v21 }
 0x340   :  { %2158 = vmatmul.mubr.bf16.gmra.mxu1 %v1576_v30  ;;  %v2516_v34 = vunpack.c.l.b16 %v2496_v35  ;;  %v2612_v44 = vunpack.c.h.b16 %v2496_v35 }
 0x341   :  { %v2017_v18 = vpop.f32.mrf.mxu1 }
 0x342   :  { %v2223_v36 = vadd.f32 %v5732_v55, %v2017_v18  ;;  %v2588_v7 = vrot.slane %v2516_v34, 6  ;;  %v2548_v46 = vrot.slane %v2516_v34, 2  ;;  %v2570_v41 = vrot.slane %v2516_v34, 4 }
 0x343   :  { %v2019_v1 = vpop.f32.mrf.mxu1 }
 0x345   :  { %v2020_v56 = vpop.f32.mrf.mxu1 }
 0x346   :  { %v2226_v52 = vadd.f32 %v5749_v53, %v2020_v56 }
 0x347   :  { %v2022_v4 = vpop.f32.mrf.mxu1 }
 0x348   :  { %v2379_v17 = vpack.c.bf16 %v2226_v52, %v2223_v36 }
 0x349   :  { %v2025_v23 = vpop.f32.mrf.mxu1 }
 0x34a   :  { %v2231_v25 = vadd.f32 %v5721_v19, %v2025_v23  ;;  %v2408_v14 = vadd.bf16 %v5992_v8, %v2379_v17 }
 0x34b   :  { %v2027_v47 = vpop.f32.mrf.mxu1 }
 0x34c   :  { %v2428_v55 = vmax.bf16 %v6630_v49, %v2408_v14 }
 0x34d   :  { %v2028_v38 = vpop.f32.mrf.mxu1 }
 0x34e   :  { %v2234_v2 = vadd.f32 %v5743_v54, %v2028_v38 }
 0x34f   :  { %v2030_v58 = vpop.f32.mrf.mxu1 }
 0x350   :  { %v2380_v5 = vpack.c.bf16 %v2234_v2, %v2231_v25 }
 0x352   :  { %v2409_v43 = vadd.bf16 %v5992_v8, %v2380_v5 }
 0x354   :  { %v2429_v53 = vmax.bf16 %v6630_v49, %v2409_v43 }
 0x356   :  { %v2447_v28 = vmax.bf16 %v2429_v53, %v2428_v55 }
 0x358   :  { %v2460_v48 = vshrl.u32 %v2447_v28, 16 }
 0x35a   :  { %v2497_v26 = vmax.bf16 %v2460_v48, %v2447_v28 }
 0x35c   :  { %v2517_v50 = vunpack.c.l.b16 %v2497_v26  ;;  %v2613_v19 = vunpack.c.h.b16 %v2497_v26 }
 0x35d   :  { %v2033_v54 = vpop.f32.mrf.mxu1 }
 0x35e   :  { %v2622_v27 = vrot.slane %v2613_v19, 7  ;;  %v2589_v40 = vrot.slane %v2517_v50, 5  ;;  %v2549_v3 = vrot.slane %v2517_v50, 1  ;;  %v2571_v42 = vrot.slane %v2517_v50, 3 }
 0x35f   :  { %v2035_v62 = vpop.f32.mrf.mxu1  ;;  %v2526_v51 = vrot.slane %v2517_v50, 7  ;;  %v2239_v30 = vadd.f32 %v5771_v6, %v2033_v54 }
 0x360   :  { %v2623_v59 = vsel %vm2527_vm8, %v2622_v27, %v2612_v44  ;;  %v6030_v61 = vsel %vm2527_vm8, %v2589_v40, %v2588_v7  ;;  %v6033_v9 = vsel %vm2527_vm8, %v2549_v3, %v2548_v46  ;;  %v2572_v37 = vsel %vm2527_vm8, %v2571_v42, %v2570_v41 }
 0x361   :  { %v2036_v10 = vpop.f32.mrf.mxu1  ;;  %v2528_v16 = vsel %vm2527_vm8, %v2526_v51, %v2516_v34 }
 0x362   :  { %v2242_v21 = vadd.f32 %v5786_v13, %v2036_v10 }
 0x363   :  { %v2038_v12 = vpop.f32.mrf.mxu1 }
 0x364   :  { %v2381_v1 = vpack.c.bf16 %v2242_v21, %v2239_v30 }
 0x365   :  { %v2041_v11 = vpop.f32.mrf.mxu1 }
 0x366   :  { %v2247_v36 = vadd.f32 %v5760_v22, %v2041_v11  ;;  %v2410_v17 = vadd.bf16 %v5992_v8, %v2381_v1 }
 0x367   :  { %v2043_v18 = vpop.f32.mrf.mxu1 }
 0x368   :  { %v2430_v13 = vmax.bf16 %v6630_v49, %v2410_v17 }
 0x369   :  { %v2044_v56 = vpop.f32.mrf.mxu1 }
 0x36a   :  { %v2250_v52 = vadd.f32 %v5776_v39, %v2044_v56 }
 0x36b   :  { %v2046_v4 = vpop.f32.mrf.mxu1 }
 0x36c   :  { %v2382_v23 = vpack.c.bf16 %v2250_v52, %v2247_v36 }
 0x36d   :  { %v2049_v47 = vpop.f32.mrf.mxu1 }
 0x36e   :  { %v2411_v38 = vadd.bf16 %v5992_v8, %v2382_v23  ;;  %v2255_v43 = vadd.f32 %v5803_v15, %v2049_v47 }
 0x36f   :  { %v2051_v25 = vpop.f32.mrf.mxu1 }
 0x370   :  { %v2431_v2 = vmax.bf16 %v6630_v49, %v2411_v38 }
 0x371   :  { %v2052_v6 = vpop.f32.mrf.mxu1 }
 0x372   :  { %v2448_v58 = vmax.bf16 %v2431_v2, %v2430_v13  ;;  %v2258_v22 = vadd.f32 %v5818_v29, %v2052_v6 }
 0x373   :  { %v2054_v14 = vpop.f32.mrf.mxu1 }
 0x374   :  { %v2463_v5 = vshrl.u32 %v2448_v58, 16  ;;  %v2383_v28 = vpack.c.bf16 %v2258_v22, %v2255_v43 }
 0x375   :  { %v2057_v20 = vpop.f32.mrf.mxu1 }
 0x376   :  { %v2498_v39 = vmax.bf16 %v2463_v5, %v2448_v58  ;;  %v2263_v26 = vadd.f32 %v5791_v45, %v2057_v20  ;;  %v2412_v15 = vadd.bf16 %v5992_v8, %v2383_v28 }
 0x377   :  { %v2059_v55 = vpop.f32.mrf.mxu1 }
 0x378   :  { %v6047_v53 = vunpack.c.l.b16 %v2498_v39  ;;  %v2614_v35 = vunpack.c.h.b16 %v2498_v39 }
 0x379   :  { %v2060_v48 = vpop.f32.mrf.mxu1 }
 0x37a   :  { %v2624_v34 = vrot.slane %v2614_v35, 6  ;;  %v2266_v50 = vadd.f32 %v5811_v63, %v2060_v48  ;;  %v2573_v44 = vrot.slane %v6047_v53, 2  ;;  %v2529_v29 = vrot.slane %v6047_v53, 6 }
 0x37b   :  { %v2062_v19 = vpop.f32.mrf.mxu1  ;;  %v2432_v63 = vmax.bf16 %v6630_v49, %v2412_v15  ;;  %v2591_v39 = vrot.slane %v6047_v53, 4  ;;  %v6632_v15 = vld [vmem:[#allocation5_spill] sm:$0xff] }
 0x37c   :  { %v2625_v54 = vsel %vm2530_vm9, %v2624_v34, %v2623_v59  ;;  %v2384_v7 = vpack.c.bf16 %v2266_v50, %v2263_v26  ;;  %v2574_v40 = vsel %vm2530_vm9, %v2573_v44, %v2572_v37  ;;  %v2531_v46 = vsel %vm2530_vm9, %v2529_v29, %v2528_v16  ;;  %v6631_v26 = vld [vmem:[#allocation8_spill] sm:$0xff] }
 0x37d   :  { %v2065_v27 = vpop.f32.mrf.mxu1  ;;  %v2592_v44 = vsel %vm2530_vm9, %v2591_v39, %v6030_v61  ;;  %v2551_v29 = vsel %vm2530_vm9, %v6047_v53, %v6033_v9  ;;  %v4420_v61 = vld [vmem:[%s6574_s4 + $0x78] sm:$0xff]  }
 0x37e   :  { %v2413_v45 = vadd.bf16 %v5992_v8, %v2384_v7  ;;  %v2271_v11 = vadd.f32 %v5844_v60, %v2065_v27  ;;  %4108 = vmatprep.subr.bf16.mxu0 %v4420_v61 }
 0x37f   :  { %v2067_v3 = vpop.f32.mrf.mxu1 }
 0x380   :  { %v2433_v62 = vmax.bf16 %v6630_v49, %v2413_v45  ;;  %v4419_v45 = vld [vmem:[%s6574_s4 + $0x138] sm:$0xff]  }
 0x381   :  { %v2068_v41 = vpop.f32.mrf.mxu1 }
 0x382   :  { %v2449_v42 = vmax.bf16 %v2433_v62, %v2432_v63  ;;  %v2274_v59 = vadd.f32 %v5865_v33, %v2068_v41  ;;  %v4421_v41 = vld [vmem:[%s6574_s4 + $0x38] sm:$0xff]  }
 0x383   :  { %v2070_v51 = vpop.f32.mrf.mxu1  ;;  %4109 = vmatpush3.bf16.msra.mxu0 %v4421_v41 }
 0x384   :  { %v2466_v10 = vshrl.u32 %v2449_v42, 16  ;;  %v2385_v18 = vpack.c.bf16 %v2274_v59, %v2271_v11 }
 0x385   :  { %v2073_v12 = vpop.f32.mrf.mxu1 }
 0x386   :  { %v2499_v21 = vmax.bf16 %v2466_v10, %v2449_v42  ;;  %v2279_v36 = vadd.f32 %v5835_v57, %v2073_v12  ;;  %v2414_v47 = vadd.bf16 %v5992_v8, %v2385_v18  ;;  %v4422_v12 = vld [vmem:[%s6574_s4 + $0x70] sm:$0xff]  }
 0x387   :  { %v2075_v37 = vpop.f32.mrf.mxu1  ;;  %v4423_v18 = vld [vmem:[%s6574_s4 + $0x30] sm:$0xff]   ;;  %4110 = vmatprep.subr.bf16.mxu0 %v4422_v12 }
 0x388   :  { %v2519_v30 = vunpack.c.l.b16 %v2499_v21  ;;  %v2615_v16 = vunpack.c.h.b16 %v2499_v21  ;;  %v2434_v57 = vmax.bf16 %v6630_v49, %v2414_v47  ;;  %v4426_v21 = vld [vmem:[%s6574_s4 + $0x170] sm:$0xff]   ;;  %4111 = vmatpush3.bf16.msra.mxu0 %v4423_v18 }
 0x389   :  { %v2076_v1 = vpop.f32.mrf.mxu1 }
 0x38a   :  { %v2626_v56 = vrot.slane %v2615_v16, 5  ;;  %v2282_v52 = vadd.f32 %v5854_v0, %v2076_v1  ;;  %v2575_v17 = vrot.slane %v2519_v30, 1  ;;  %v2532_v23 = vrot.slane %v2519_v30, 5  ;;  %v4424_v1 = vld [vmem:[%s6574_s4 + $0x68] sm:$0xff]  }
 0x38b   :  { %v2078_v4 = vpop.f32.mrf.mxu1  ;;  %v2593_v35 = vrot.slane %v2519_v30, 3  ;;  %v2552_v28 = vrot.slane %v2519_v30, 7  ;;  %v4428_v30 = vld [vmem:[%s6574_s4 + $0x130] sm:$0xff]   ;;  %4112 = vmatprep.subr.bf16.mxu0 %v4424_v1 }
 0x38c   :  { %v2627_v33 = vsel %vm2533_vm10, %v2626_v56, %v2625_v54  ;;  %v2386_v38 = vpack.c.bf16 %v2282_v52, %v2279_v36  ;;  %v2576_v25 = vsel %vm2533_vm10, %v2575_v17, %v2574_v40  ;;  %v2534_v13 = vsel %vm2533_vm10, %v2532_v23, %v2531_v46  ;;  %v4418_v46 = vld [vmem:[%s6574_s4 + $0x178] sm:$0xff]   ;;  %v4425_v56 = vld [vmem:[%s6574_s4 + $0x28] sm:$0xff]   ;;  %v4427_v36 = vld [vmem:[%s6574_s4 + $0x60] sm:$0xff]   ;;  %v4333_v17 = vpop.f32.mrf.mxu0 }
 0x38d   :  { %v2081_v60 = vpop.f32.mrf.mxu1  ;;  %v2594_v9 = vsel %vm2533_vm10, %v2593_v35, %v2592_v44  ;;  %v2553_v53 = vsel %vm2533_vm10, %v2552_v28, %v2551_v29  ;;  %4152 = vmatprep.subr.bf16.mxu1 %v4418_v46  ;;  %4113 = vmatpush3.bf16.msra.mxu0 %v4425_v56  ;;  %v4429_v52 = vld [vmem:[%s6574_s4 + $0x20] sm:$0xff]   ;;  %v4430_v4 = vld [vmem:[%s6574_s4 + $0x58] sm:$0xff]  }
 0x38e   :  { %v2415_v2 = vadd.bf16 %v5992_v8, %v2386_v38  ;;  %4153 = vmatpush3.bf16.msra.mxu1 %v4419_v45  ;;  %4114 = vmatprep.subr.bf16.mxu0 %v4427_v36  ;;  %v4431_v23 = vld [vmem:[%s6574_s4 + $0x18] sm:$0xff]   ;;  %v2300_v47 = vpop.f32.mrf.mxu0  ;;  %v4433_v38 = vld [vmem:[%s6574_s4 + $0x10] sm:$0xff]  }
 0x38f   :  { %v2082_v6 = vpop.f32.mrf.mxu1  ;;  %4154 = vmatprep.subr.bf16.mxu1 %v4426_v21 }
 0x390   :  { %v2435_v0 = vmax.bf16 %v6630_v49, %v2415_v2  ;;  %v4334_v60 = vpop.f32.mrf.mxu0 }
 0x391   :  { %v2083_v58 = vpop.f32.mrf.mxu1  ;;  %4115 = vmatpush3.bf16.msra.mxu0 %v4429_v52 }
 0x392   :  { %v2450_v14 = vmax.bf16 %v2435_v0, %v2434_v57  ;;  %4155 = vmatpush3.bf16.msra.mxu1 %v4428_v30  ;;  %4116 = vmatprep.subr.bf16.mxu0 %v4430_v4  ;;  %v2303_v2 = vpop.f32.mrf.mxu0 }
 0x393   :  { %v2084_v5 = vpop.f32.mrf.mxu1 }
 0x394   :  { %v2469_v22 = vshrl.u32 %v2450_v14, 16 }
 0x395   :  { %v2087_v20 = vpop.f32.mrf.mxu1  ;;  %4117 = vmatpush3.bf16.msra.mxu0 %v4431_v23 }
 0x396   :  { %v2500_v43 = vmax.bf16 %v2469_v22, %v2450_v14  ;;  %v6073_v50 = vadd.f32 %v6631_v26, %v2087_v20 }
 0x397   :  { %v2089_v55 = vpop.f32.mrf.mxu1 }
 0x398   :  { %v2520_v48 = vunpack.c.l.b16 %v2500_v43  ;;  %v2616_v34 = vunpack.c.h.b16 %v2500_v43 }
 0x399   :  { %v2090_v19 = vpop.f32.mrf.mxu1 }
 0x39a   :  { %v2628_v54 = vrot.slane %v2616_v34, 4  ;;  %v2296_v7 = vadd.f32 %v6632_v15, %v2090_v19  ;;  %v2595_v27 = vrot.slane %v2520_v48, 2  ;;  %v2554_v40 = vrot.slane %v2520_v48, 6  ;;  %v4337_v19 = vpop.f32.mrf.mxu0 }
 0x39b   :  { %v2092_v3 = vpop.f32.mrf.mxu1  ;;  %v6093_v63 = vsel %vm2536_vm11, %v2520_v48, %v2576_v25  ;;  %v2535_v62 = vrot.slane %v2520_v48, 4 }
 0x39c   :  { %v6099_v42 = vsel %vm2536_vm11, %v2628_v54, %v2627_v33  ;;  %v2387_v51 = vpack.c.bf16 %v2296_v7, %v6073_v50  ;;  %v2596_v10 = vsel %vm2536_vm11, %v2595_v27, %v2594_v9  ;;  %v2555_v59 = vsel %vm2536_vm11, %v2554_v40, %v2553_v53  ;;  %v4432_v33 = vld [vmem:[%s6574_s4 + $0x50] sm:$0xff]   ;;  %v2316_v44 = vpop.f32.mrf.mxu0 }
 0x39d   :  { %v2606_v11 = vpack.c.b16 %v2596_v10, %v2596_v10  ;;  %v2564_v37 = vpack.c.b16 %v2555_v59, %v2555_v59  ;;  %v6114_v16 = vsel %vm2536_vm11, %v2535_v62, %v2534_v13  ;;  %4118 = vmatprep.subr.bf16.mxu0 %v4432_v33 }
 0x39e   :  { %4119 = vmatpush3.bf16.msra.mxu0 %v4433_v38  ;;  %v2416_v14 = vadd.bf16 %v5992_v8, %v2387_v51  ;;  %v4338_v29 = vpop.f32.mrf.mxu0 }
 0x39f   :  { %2608 = vrot.lane.b32.xlu1 %v2606_v11, %s4543_s9  ;;  %2566 = vrot.lane.b32.xlu0 %v2564_v37, %s4543_s9 }
 0x3a0   :  { %v2436_v43 = vmax.bf16 %v6630_v49, %v2416_v14  ;;  %v2319_v7 = vpop.f32.mrf.mxu0 }
 0x3a2   :  { %v4341_v59 = vpop.f32.mrf.mxu0 }
 0x3a4   :  { %v2332_v18 = vpop.f32.mrf.mxu0 }
 0x3b1   :  { %v2095_v25 = vpop.f32.mrf.mxu1 }
 0x3b2   :  { %v2301_v57 = vadd.f32 %v2300_v47, %v2095_v25 }
 0x3b3   :  { %v2097_v13 = vpop.f32.mrf.mxu1 }
 0x3b5   :  { %v2098_v6 = vpop.f32.mrf.mxu1 }
 0x3b6   :  { %v2304_v0 = vadd.f32 %v2303_v2, %v2098_v6 }
 0x3b7   :  { %v2100_v58 = vpop.f32.mrf.mxu1 }
 0x3b8   :  { %v2388_v5 = vpack.c.bf16 %v2304_v0, %v2301_v57 }
 0x3b9   :  { %v2103_v22 = vpop.f32.mrf.mxu1 }
 0x3ba   :  { %v2417_v20 = vadd.bf16 %v5992_v8, %v2388_v5  ;;  %v2309_v48 = vadd.f32 %v4333_v17, %v2103_v22  ;;  %v4342_v17 = vpop.f32.mrf.mxu0 }
 0x3bb   :  { %v2105_v39 = vpop.f32.mrf.mxu1 }
 0x3bc   :  { %v2437_v55 = vmax.bf16 %v6630_v49, %v2417_v20  ;;  %v2335_v39 = vpop.f32.mrf.mxu0 }
 0x3bd   :  { %v2106_v35 = vpop.f32.mrf.mxu1 }
 0x3be   :  { %v2451_v28 = vmax.bf16 %v2437_v55, %v2436_v43  ;;  %v2312_v34 = vadd.f32 %v4334_v60, %v2106_v35 }
 0x3bf   :  { %v2108_v26 = vpop.f32.mrf.mxu1 }
 0x3c0   :  { %v2389_v50 = vpack.c.bf16 %v2312_v34, %v2309_v48  ;;  %v2472_v9 = vshrl.u32 %v2451_v28, 16 }
 0x3c2   :  { %v2418_v61 = vadd.bf16 %v5992_v8, %v2389_v50  ;;  %v2501_v12 = vmax.bf16 %v2472_v9, %v2451_v28 }
 0x3c4   :  { %v2438_v51 = vmax.bf16 %v6630_v49, %v2418_v61  ;;  %v2521_v1 = vunpack.c.l.b16 %v2501_v12  ;;  %v2617_v23 = vunpack.c.h.b16 %v2501_v12 }
 0x3c6   :  { %v2597_v47 = vrot.slane %v2521_v1, 6  ;;  %v2556_v38 = vrot.slane %v2521_v1, 2  ;;  %v2578_v57 = vrot.slane %v2521_v1, 4 }
 0x3c9   :  { %v2111_v54 = vpop.f32.mrf.mxu1 }
 0x3ca   :  { %v2317_v40 = vadd.f32 %v2316_v44, %v2111_v54 }
 0x3cb   :  { %v2113_v15 = vpop.f32.mrf.mxu1 }
 0x3cd   :  { %v2114_v27 = vpop.f32.mrf.mxu1 }
 0x3ce   :  { %v2320_v46 = vadd.f32 %v2319_v7, %v2114_v27 }
 0x3cf   :  { %v2116_v45 = vpop.f32.mrf.mxu1 }
 0x3d0   :  { %v2390_v3 = vpack.c.bf16 %v2320_v46, %v2317_v40 }
 0x3d1   :  { %v2119_v53 = vpop.f32.mrf.mxu1 }
 0x3d2   :  { %v2419_v62 = vadd.bf16 %v5992_v8, %v2390_v3  ;;  %v2325_v25 = vadd.f32 %v4337_v19, %v2119_v53  ;;  %v4345_v19 = vpop.f32.mrf.mxu0 }
 0x3d3   :  { %v2121_v41 = vpop.f32.mrf.mxu1 }
 0x3d4   :  { %v2439_v10 = vmax.bf16 %v6630_v49, %v2419_v62  ;;  %v2348_v27 = vpop.f32.mrf.mxu0 }
 0x3d5   :  { %v2122_v21 = vpop.f32.mrf.mxu1 }
 0x3d6   :  { %v2452_v11 = vmax.bf16 %v2439_v10, %v2438_v51  ;;  %v2328_v4 = vadd.f32 %v4338_v29, %v2122_v21  ;;  %v4346_v9 = vpop.f32.mrf.mxu0 }
 0x3d7   :  { %v2124_v37 = vpop.f32.mrf.mxu1 }
 0x3d8   :  { %v2475_v30 = vshrl.u32 %v2452_v11, 16  ;;  %v2391_v5 = vpack.c.bf16 %v2328_v4, %v2325_v25 }
 0x3da   :  { %v2502_v56 = vmax.bf16 %v2475_v30, %v2452_v11  ;;  %v2420_v26 = vadd.bf16 %v5992_v8, %v2391_v5  ;;  %v2351_v11 = vpop.f32.mrf.mxu0 }
 0x3dc   :  { %v2522_v36 = vunpack.c.l.b16 %v2502_v56  ;;  %v2618_v52 = vunpack.c.h.b16 %v2502_v56  ;;  %v2440_v15 = vmax.bf16 %v6630_v49, %v2420_v26 }
 0x3dd   :  { %v2127_v33 = vpop.f32.mrf.mxu1 }
 0x3de   :  { %v2630_v60 = vrot.slane %v2618_v52, 7  ;;  %v2598_v13 = vrot.slane %v2522_v36, 5  ;;  %v2557_v2 = vrot.slane %v2522_v36, 1  ;;  %v2579_v0 = vrot.slane %v2522_v36, 3 }
 0x3df   :  { %v2129_v6 = vpop.f32.mrf.mxu1  ;;  %v2538_v58 = vrot.slane %v2522_v36, 7  ;;  %v2333_v28 = vadd.f32 %v2332_v18, %v2127_v33 }
 0x3e0   :  { %v2631_v14 = vsel %vm2527_vm8, %v2630_v60, %v2617_v23  ;;  %v6155_v22 = vsel %vm2527_vm8, %v2598_v13, %v2597_v47  ;;  %v6158_v20 = vsel %vm2527_vm8, %v2557_v2, %v2556_v38  ;;  %v2580_v55 = vsel %vm2527_vm8, %v2579_v0, %v2578_v57 }
 0x3e1   :  { %v2130_v43 = vpop.f32.mrf.mxu1  ;;  %v2539_v35 = vsel %vm2527_vm8, %v2538_v58, %v2521_v1 }
 0x3e2   :  { %v2336_v48 = vadd.f32 %v2335_v39, %v2130_v43 }
 0x3e3   :  { %v2132_v34 = vpop.f32.mrf.mxu1 }
 0x3e4   :  { %v2392_v50 = vpack.c.bf16 %v2336_v48, %v2333_v28 }
 0x3e5   :  { %v2135_v44 = vpop.f32.mrf.mxu1 }
 0x3e6   :  { %v2421_v29 = vadd.bf16 %v5992_v8, %v2392_v50  ;;  %v2341_v41 = vadd.f32 %v4341_v59, %v2135_v44 }
 0x3e7   :  { %v2137_v54 = vpop.f32.mrf.mxu1 }
 0x3e8   :  { %v2441_v7 = vmax.bf16 %v6630_v49, %v2421_v29 }
 0x3e9   :  { %v2138_v40 = vpop.f32.mrf.mxu1 }
 0x3ea   :  { %v2453_v46 = vmax.bf16 %v2441_v7, %v2440_v15  ;;  %v2344_v3 = vadd.f32 %v4342_v17, %v2138_v40 }
 0x3eb   :  { %v2140_v45 = vpop.f32.mrf.mxu1 }
 0x3ec   :  { %v2478_v61 = vshrl.u32 %v2453_v46, 16  ;;  %v2393_v21 = vpack.c.bf16 %v2344_v3, %v2341_v41 }
 0x3ed   :  { %v2143_v53 = vpop.f32.mrf.mxu1 }
 0x3ee   :  { %v2503_v62 = vmax.bf16 %v2478_v61, %v2453_v46  ;;  %v2349_v18 = vadd.f32 %v2348_v27, %v2143_v53  ;;  %v2422_v17 = vadd.bf16 %v5992_v8, %v2393_v21  ;;  %v4435_v21 = vld [vmem:[%s6574_s4 + $0x8] sm:$0xff]  }
 0x3ef   :  { %v2145_v51 = vpop.f32.mrf.mxu1 }
 0x3f0   :  { %v6166_v10 = vunpack.c.l.b16 %v2503_v62  ;;  %v2619_v12 = vunpack.c.h.b16 %v2503_v62  ;;  %v2442_v25 = vmax.bf16 %v6630_v49, %v2422_v17  ;;  %v4434_v51 = vld [vmem:[%s6574_s4 + $0x48] sm:$0xff]  }
 0x3f1   :  { %v2146_v37 = vpop.f32.mrf.mxu1  ;;  %4120 = vmatprep.subr.bf16.mxu0 %v4434_v51 }
 0x3f2   :  { %v2632_v30 = vrot.slane %v2619_v12, 6  ;;  %v2352_v1 = vadd.f32 %v2351_v11, %v2146_v37  ;;  %v2581_v36 = vrot.slane %v6166_v10, 2  ;;  %v2540_v52 = vrot.slane %v6166_v10, 6  ;;  %4121 = vmatpush3.bf16.msra.mxu0 %v4435_v21 }
 0x3f3   :  { %v2148_v56 = vpop.f32.mrf.mxu1  ;;  %v2600_v11 = vrot.slane %v6166_v10, 4 }
 0x3f4   :  { %v2633_v4 = vsel %vm2530_vm9, %v2632_v30, %v2631_v14  ;;  %v2394_v59 = vpack.c.bf16 %v2352_v1, %v2349_v18  ;;  %v2582_v33 = vsel %vm2530_vm9, %v2581_v36, %v2580_v55  ;;  %v2541_v47 = vsel %vm2530_vm9, %v2540_v52, %v2539_v35 }
 0x3f5   :  { %v2151_v23 = vpop.f32.mrf.mxu1  ;;  %v2601_v36 = vsel %vm2530_vm9, %v2600_v11, %v6155_v22  ;;  %v2559_v52 = vsel %vm2530_vm9, %v6166_v10, %v6158_v20 }
 0x3f6   :  { %v2423_v38 = vadd.bf16 %v5992_v8, %v2394_v59  ;;  %v2357_v35 = vadd.f32 %v4345_v19, %v2151_v23 }
 0x3f7   :  { %v2153_v60 = vpop.f32.mrf.mxu1 }
 0x3f8   :  { %v2443_v13 = vmax.bf16 %v6630_v49, %v2423_v38  ;;  %v4349_v2 = vpop.f32.mrf.mxu0  ;;  %v4438_v60 = vld [vmem:[%s6574_s4 + $0x168] sm:$0xff]  }
 0x3f9   :  { %v2154_v6 = vpop.f32.mrf.mxu1  ;;  %4156 = vmatprep.subr.bf16.mxu1 %v4438_v60 }
 0x3fa   :  { %v2454_v57 = vmax.bf16 %v2443_v13, %v2442_v25  ;;  %v2364_v0 = vpop.f32.mrf.mxu0  ;;  %v2360_v43 = vadd.f32 %v4346_v9, %v2154_v6  ;;  %v4439_v25 = vld [vmem:[%s6574_s4 + $0x128] sm:$0xff]  }
 0x3fb   :  { %v2156_v58 = vpop.f32.mrf.mxu1  ;;  %4157 = vmatpush3.bf16.msra.mxu1 %v4439_v25 }
 0x3fc   :  { %v2481_v14 = vshrl.u32 %v2454_v57, 16  ;;  %v4350_v5 = vpop.f32.mrf.mxu0  ;;  %v2395_v44 = vpack.c.bf16 %v2360_v43, %v2357_v35  ;;  %v4442_v58 = vld [vmem:[%s6574_s4 + $0x158] sm:$0xff]   ;;  %v4445_v43 = vld [vmem:[%s6574_s4 + $0x110] sm:$0xff]  }
 0x3fd   :  { %v4443_v5 = vld [vmem:[%s6574_s4 + $0x118] sm:$0xff]  }
 0x3fe   :  { %v2504_v39 = vmax.bf16 %v2481_v14, %v2454_v57  ;;  %v2367_v15 = vpop.f32.mrf.mxu0  ;;  %v2424_v3 = vadd.bf16 %v5992_v8, %v2395_v44  ;;  %v4440_v57 = vld [vmem:[%s6574_s4 + $0x160] sm:$0xff]   ;;  %v4446_v14 = vld [vmem:[%s6574_s4 + $0xf8] sm:$0xff]  }
 0x3ff   :  { %4158 = vmatprep.subr.bf16.mxu1 %v4440_v57  ;;  %v4465_v44 = vld [vmem:[%s6574_s4 + $0x100] sm:$0xff]  }
 0x400   :  { %v2524_v28 = vunpack.c.l.b16 %v2504_v39  ;;  %v2620_v55 = vunpack.c.h.b16 %v2504_v39  ;;  %v2159_v48 = vpop.f32.mrf.mxu1  ;;  %v2444_v53 = vmax.bf16 %v6630_v49, %v2424_v3  ;;  %v4444_v39 = vld [vmem:[%s6574_s4 + $0x150] sm:$0xff]  }
 0x401   :  { %v2365_v40 = vadd.f32 %v2364_v0, %v2159_v48  ;;  %v4441_v0 = vld [vmem:[%s6574_s4 + $0x120] sm:$0xff]  }
 0x402   :  { %v2634_v34 = vrot.slane %v2620_v55, 5  ;;  %v2161_v26 = vpop.f32.mrf.mxu1  ;;  %v2583_v50 = vrot.slane %v2524_v28, 1  ;;  %v2542_v29 = vrot.slane %v2524_v28, 5  ;;  %v2602_v30 = vrot.slane %v2524_v28, 3  ;;  %4159 = vmatpush3.bf16.msra.mxu1 %v4441_v0  ;;  %v4453_v55 = vld [vmem:[%s6574_s4 + $0x108] sm:$0xff]   ;;  %v4464_v48 = vld [vmem:[%s6574_s4 + $0x140] sm:$0xff]  }
 0x403   :  { %v2560_v18 = vrot.slane %v2524_v28, 7  ;;  %4160 = vmatprep.subr.bf16.mxu1 %v4442_v58  ;;  %v4451_v28 = vld [vmem:[%s6574_s4 + $0x148] sm:$0xff]   ;;  %v2586_v26 = vpack.c.b16 %v6093_v63, %v6093_v63  ;;  %v4455_v0 = vld [vmem:[%s6574_s4 + $0xa0] sm:$0xff]  }
 0x404   :  { %v2635_v54 = vsel %vm2533_vm10, %v2634_v34, %v2633_v4  ;;  %v2162_v7 = vpop.f32.mrf.mxu1  ;;  %v2584_v27 = vsel %vm2533_vm10, %v2583_v50, %v2582_v33  ;;  %v2543_v45 = vsel %vm2533_vm10, %v2542_v29, %v2541_v47  ;;  %v2603_v33 = vsel %vm2533_vm10, %v2602_v30, %v2601_v36 }
 0x405   :  { %v2368_v46 = vadd.f32 %v2367_v15, %v2162_v7  ;;  %v2561_v47 = vsel %vm2533_vm10, %v2560_v18, %v2559_v52  ;;  %v2546_v50 = vpack.c.b16 %v6114_v16, %v6114_v16  ;;  %v4447_v18 = vld [vmem:[%s6574_s4 + $0xb8] sm:$0xff]   ;;  %v1369_v36 = vshrl.u32 %v6003_v31, 16 }
 0x406   :  { %v2164_v61 = vpop.f32.mrf.mxu1  ;;  %4161 = vmatpush3.bf16.msra.mxu1 %v4443_v5  ;;  %v6633_v52 = vld [vmem:[#allocation15_spill] sm:$0xff] }
 0x407   :  { %v2396_v9 = vpack.c.bf16 %v2368_v46, %v2365_v40  ;;  %4162 = vmatprep.subr.bf16.mxu1 %v4444_v39  ;;  %v4456_v5 = vld [vmem:[%s6574_s4 + $0xd8] sm:$0xff]  }
 0x409   :  { %v2425_v19 = vadd.bf16 %v5992_v8, %v2396_v9  ;;  %v4436_v8 = vld [vmem:[%s6574_s4 + $0x40] sm:$0xff]  }
 0x40a   :  { %4122 = vmatprep.subr.bf16.mxu0 %v4436_v8  ;;  %4163 = vmatpush3.bf16.msra.mxu1 %v4445_v43 }
 0x40b   :  { %v2445_v62 = vmax.bf16 %v6630_v49, %v2425_v19  ;;  %v4437_v49 = vld [vmem:[%s6574_s4] sm:$0xff]   ;;  %4164 = vmatprep.subr.bf16.mxu1 %v4451_v28  ;;  %v4457_v28 = vld [vmem:[%s6574_s4 + $0x98] sm:$0xff]  }
 0x40c   :  { %4123 = vmatpush3.bf16.msra.mxu0 %v4437_v49 }
 0x40d   :  { %v2455_v41 = vmax.bf16 %v2445_v62, %v2444_v53  ;;  %4130 = vmatprep.subr.bf16.mxu0 %v4446_v14 }
 0x40e   :  { %4165 = vmatpush3.bf16.msra.mxu1 %v4453_v55 }
 0x40f   :  { %v2484_v12 = vshrl.u32 %v2455_v41, 16  ;;  %4166 = vmatprep.subr.bf16.mxu1 %v4464_v48 }
 0x411   :  { %v2505_v37 = vmax.bf16 %v2484_v12, %v2455_v41  ;;  %v2609_v35 = vpop.permute.xlu1 %2608  ;;  %v2567_v34 = vpop.permute.xlu0 %2566  ;;  %v1371_v12 = vshll.u32 %v6003_v31, 16 }
 0x412   :  { %v2648_v29 = vsel %vm1469_vm6, %v2586_v26, %v2609_v35  ;;  %4167 = vmatpush3.bf16.msra.mxu1 %v4465_v44  ;;  %v4458_v35 = vld [vmem:[%s6574_s4 + $0xd0] sm:$0xff]   ;;  %v4460_v26 = vld [vmem:[%s6574_s4 + $0xc8] sm:$0xff]   ;;  %v4462_v44 = vld [vmem:[%s6574_s4 + $0xc0] sm:$0xff]  }
 0x413   :  { %v2525_v1 = vunpack.c.l.b16 %v2505_v37  ;;  %v2621_v56 = vunpack.c.h.b16 %v2505_v37  ;;  %v6258_v15 = vunpack.c.l.b16 %v2648_v29  ;;  %v4463_v29 = vld [vmem:[%s6574_s4 + $0x80] sm:$0xff]  }
 0x415   :  { %v2636_v4 = vrot.slane %v2621_v56, 4  ;;  %v2604_v17 = vrot.slane %v2525_v1, 2  ;;  %v2562_v59 = vrot.slane %v2525_v1, 6  ;;  %v2585_v23 = vsel %vm2536_vm11, %v2525_v1, %v2584_v27  ;;  %v4448_v56 = vld [vmem:[%s6574_s4 + $0xf0] sm:$0xff]  }
 0x416   :  { %v2544_v38 = vrot.slane %v2525_v1, 4  ;;  %v2587_v27 = vpack.c.b16 %v2585_v23, %v2585_v23  ;;  %v2675_v9 = vrot.slane %v6258_v15, 1  ;;  %v1373_v1 = vrot.slane %v1371_v12, 1  ;;  %v4450_v23 = vld [vmem:[%s6574_s4 + $0xe8] sm:$0xff]  }
 0x417   :  { %v6209_v22 = vsel %vm2536_vm11, %v2636_v4, %v2635_v54  ;;  %v2605_v20 = vsel %vm2536_vm11, %v2604_v17, %v2603_v33  ;;  %v2563_v10 = vsel %vm2536_vm11, %v2562_v59, %v2561_v47  ;;  %v2642_v54 = vsel %vm1469_vm6, %v2546_v50, %v2567_v34  ;;  %v4449_v17 = vld [vmem:[%s6574_s4 + $0xb0] sm:$0xff]   ;;  %v6634_v47 = vld [vmem:[#allocation13_spill] sm:$0xff] }
 0x418   :  { %v2607_v13 = vpack.c.b16 %v2605_v20, %v2605_v20  ;;  %v2565_v2 = vpack.c.b16 %v2563_v10, %v2563_v10  ;;  %v2545_v6 = vsel %vm2536_vm11, %v2544_v38, %v2543_v45  ;;  %v6260_v7 = vunpack.c.l.b16 %v2642_v54  ;;  %v4454_v10 = vld [vmem:[%s6574_s4 + $0xe0] sm:$0xff]   ;;  %v4459_v34 = vld [vmem:[%s6574_s4 + $0x90] sm:$0xff]   ;;  %v4461_v50 = vld [vmem:[%s6574_s4 + $0x88] sm:$0xff]  }
 0x419   :  { %v2547_v40 = vpack.c.b16 %v2545_v6, %v2545_v6  ;;  %v6295_v4 = vunpack.i.l.s16 %v6099_v42  ;;  %v1374_v59 = vor.u32 %v1373_v1, %v1369_v36  ;;  %v6304_v33 = vunpack.i.l.s16 %v6209_v22  ;;  %v4477_v42 = vld [vmem:[%s6574_s4 + $0x278] sm:$0xff]   ;;  %v4452_v22 = vld [vmem:[%s6574_s4 + $0xa8] sm:$0xff]  }
 0x41a   :  { %2610 = vrot.lane.b32.xlu1 %v2607_v13, %s4543_s9  ;;  %2568 = vrot.lane.b32.xlu0 %v2565_v2, %s4543_s9  ;;  %v2673_v19 = vrot.slane %v6260_v7, 1  ;;  %v2707_v38 = vrot.slane %v6260_v7, 3  ;;  %v6635_v6 = vld [vmem:[#allocation14_spill] sm:$0xff]  ;;  %v2710_v57 = vrot.slane %v6258_v15, 3  ;;  %v4466_v54 = vld [vmem:[%s6574_s4 + $0x1f8] sm:$0xff]  }
 0x41b   :  { %v2677_v60 = vrot.slane %v6295_v4, 1  ;;  %4196 = vmatprep.subr.bf16.mxu1 %v4477_v42  ;;  %v1375_v20 = vsel %vm866_vm4, %v1374_v59, %v4993_v24  ;;  %v2714_v13 = vrot.slane %v6304_v33, 2  ;;  %v2713_v24 = vrot.slane %v6295_v4, 3  ;;  %v4470_v12 = vld [vmem:[%s6574_s4 + $0x1e8] sm:$0xff]  }
 0x41c   :  { %v2699_v1 = vrot.slane %v6295_v4, 2 }
 0x41d   :  { %v2678_v25 = vsel %vm2527_vm8, %v6304_v33, %v2677_v60  ;;  %v2715_v39 = vsel %vm2527_vm8, %v2714_v13, %v2713_v24 }
 0x41e   :  { %v2681_v14 = vpack.c.b16 %v2678_v25, %v2678_v25  ;;  %v2718_v55 = vpack.c.b16 %v2715_v39, %v2715_v39  ;;  %v4480_v39 = vld [vmem:[%s6574_s4 + $0x1c8] sm:$0xff]  }
 0x48c   :  { %v2611_v46 = vpop.permute.xlu1 %2610  ;;  %v2569_v63 = vpop.permute.xlu0 %2568 }
 0x48d   :  { %v2651_v45 = vsel %vm1469_vm6, %v2587_v27, %v2611_v46  ;;  %v2645_v16 = vsel %vm1469_vm6, %v2547_v40, %v2569_v63  ;;  %v2666_v27 = vrot.slane %v6304_v33, 7 }
 0x48e   :  { %v6264_v61 = vunpack.c.l.b16 %v2651_v45  ;;  %v6266_v3 = vunpack.c.l.b16 %v2645_v16  ;;  %v4467_v16 = vld [vmem:[%s6574_s4 + $0x1b8] sm:$0xff]  }
 0x48f   :  { %v2667_v40 = vsel %vm2527_vm8, %v2666_v27, %v6295_v4 }
 0x490   :  { %v2662_v53 = vrot.slane %v6266_v3, 7  ;;  %v2676_v62 = vsel %vm2527_vm8, %v6264_v61, %v2675_v9  ;;  %v2674_v41 = vsel %vm2527_vm8, %v6266_v3, %v2673_v19  ;;  %v2664_v51 = vrot.slane %v6264_v61, 7 }
 0x491   :  { %v2680_v21 = vpack.c.b16 %v2676_v62, %v2676_v62  ;;  %v2679_v11 = vpack.c.b16 %v2674_v41, %v2674_v41  ;;  %v2711_v2 = vrot.slane %v6264_v61, 2  ;;  %v2670_v46 = vpack.c.b16 %v2667_v40, %v2667_v40  ;;  %v4488_v40 = vld [vmem:[%s6574_s4 + $0x260] sm:$0xff]  }
 0x492   :  { %v2665_v8 = vsel %vm2527_vm8, %v2664_v51, %v6258_v15  ;;  %v2663_v37 = vsel %vm2527_vm8, %v2662_v53, %v6260_v7  ;;  %v4468_v53 = vld [vmem:[%s6574_s4 + $0x1f0] sm:$0xff]   ;;  %v2733_v27 = vrot.slane %v6264_v61, 3 }
 0x493   :  { %2684 = vrot.lane.b32.xlu1 %v2680_v21, %s4543_s9  ;;  %2682 = vrot.lane.b32.xlu0 %v2679_v11, %s4543_s9  ;;  %v2669_v49 = vpack.c.b16 %v2665_v8, %v2665_v8  ;;  %v2668_v30 = vpack.c.b16 %v2663_v37, %v2663_v37  ;;  %v2712_v43 = vsel %vm2527_vm8, %v2711_v2, %v2710_v57  ;;  %v4469_v51 = vld [vmem:[%s6574_s4 + $0x1b0] sm:$0xff]   ;;  %v2694_v21 = vrot.slane %v6266_v3, 1  ;;  %v4471_v37 = vld [vmem:[%s6574_s4 + $0x1a8] sm:$0xff]  }
 0x494   :  { %v2717_v48 = vpack.c.b16 %v2712_v43, %v2712_v43  ;;  %v4476_v57 = vld [vmem:[%s6574_s4 + $0x1d0] sm:$0xff]  }
 0x495   :  { %3593 = vmatprep.mubr.bf16.mxu0 %v2669_v49  ;;  %v2700_v49 = vrot.slane %v6304_v33, 1 }
 0x496   :  { %3594 = vmatmul.mubr.bf16.vlgmr.msra.gmra.mxu0 %v2668_v30  ;;  %v4472_v30 = vld [vmem:[%s6574_s4 + $0x1e0] sm:$0xff]  }
 0x497   :  { %1089 = vrot.lane.b32.xlu1 %v5859_v32, %s4544_s27  ;;  %1312 = vrot.lane.b32.xlu0 %v6633_v52, %s4544_s27  ;;  %v2708_v32 = vrot.slane %v6266_v3, 2  ;;  %v6637_v52 = vld [vmem:[#allocation23_spill] sm:$0xff]  ;;  %v2701_v60 = vsel %vm2527_vm8, %v2700_v49, %v2699_v1  ;;  %v4501_v49 = vld [vmem:[%s6574_s4 + $0x2e0] sm:$0xff]  }
 0x498   :  { %4131 = vmatpush3.bf16.msra.mxu0 %v4447_v18  ;;  %v2693_v18 = vrot.slane %v6260_v7, 2  ;;  %v2704_v25 = vpack.c.b16 %v2701_v60, %v2701_v60  ;;  %v4504_v1 = vld [vmem:[%s6574_s4 + $0x240] sm:$0xff]   ;;  %v4513_v60 = vld [vmem:[%s6574_s4 + $0x310] sm:$0xff]  }
 0x499   :  { %4132 = vmatprep.subr.bf16.mxu0 %v4448_v56  ;;  %v6636_v56 = vld [vmem:[#allocation12_spill] sm:$0xff] }
 0x49a   :  { %v2695_v59 = vsel %vm2527_vm8, %v2694_v21, %v2693_v18  ;;  %v4497_v21 = vld [vmem:[%s6574_s4 + $0x2e8] sm:$0xff]   ;;  %v4503_v18 = vld [vmem:[%s6574_s4 + $0x2a0] sm:$0xff]  }
 0x49b   :  { %1202 = vrot.lane.b32.xlu1 %v6634_v47, %s4543_s9  ;;  %1358 = vrot.lane.b32.xlu0 %v6003_v31, %s4543_s9  ;;  %v2709_v31 = vsel %vm2527_vm8, %v2708_v32, %v2707_v38  ;;  %v4473_v38 = vld [vmem:[%s6574_s4 + $0x1a0] sm:$0xff]  }
 0x49c   :  { %4133 = vmatpush3.bf16.msra.mxu0 %v4449_v17  ;;  %v2716_v58 = vpack.c.b16 %v2709_v31, %v2709_v31  ;;  %v2702_v31 = vpack.c.b16 %v2695_v59, %v2695_v59  ;;  %v4509_v59 = vld [vmem:[%s6574_s4 + $0x290] sm:$0xff]  }
 0x49d   :  { %4134 = vmatprep.subr.bf16.mxu0 %v4450_v23 }
 0x49f   :  { %1248 = vrot.lane.b32.xlu1 %v6635_v6, %s4542_s29  ;;  %1418 = vrot.lane.b32.xlu0 %v1375_v20, %s4542_s29  ;;  %v4475_v6 = vld [vmem:[%s6574_s4 + $0x198] sm:$0xff]  }
 0x4a0   :  { %4135 = vmatpush3.bf16.msra.mxu0 %v4452_v22 }
 0x4a1   :  { %4136 = vmatprep.subr.bf16.mxu0 %v4454_v10  ;;  %v4474_v10 = vld [vmem:[%s6574_s4 + $0x1d8] sm:$0xff]  }
 0x4a3   :  { %2719 = vrot.lane.b32.xlu1 %v2716_v58, %s4543_s9  ;;  %2686 = vrot.lane.b32.xlu0 %v2681_v14, %s4543_s9  ;;  %v4479_v58 = vld [vmem:[%s6574_s4 + $0x238] sm:$0xff]  }
 0x4a4   :  { %4137 = vmatpush3.bf16.msra.mxu0 %v4455_v0  ;;  %v4478_v0 = vld [vmem:[%s6574_s4 + $0x190] sm:$0xff]  }
 0x4a5   :  { %4138 = vmatprep.subr.bf16.mxu0 %v4456_v5 }
 0x4a7   :  { %2723 = vrot.lane.b32.xlu1 %v2718_v55, %s4543_s9  ;;  %2721 = vrot.lane.b32.xlu0 %v2717_v48, %s4543_s9  ;;  %v4482_v48 = vld [vmem:[%s6574_s4 + $0x188] sm:$0xff]  }
 0x4a8   :  { %4139 = vmatpush3.bf16.msra.mxu0 %v4457_v28  ;;  %v4481_v28 = vld [vmem:[%s6574_s4 + $0x270] sm:$0xff]  }
 0x4a9   :  { %4140 = vmatprep.subr.bf16.mxu0 %v4458_v35  ;;  %v4483_v35 = vld [vmem:[%s6574_s4 + $0x230] sm:$0xff]  }
 0x4ac   :  { %4141 = vmatpush3.bf16.msra.mxu0 %v4459_v34  ;;  %v4484_v34 = vld [vmem:[%s6574_s4 + $0x1c0] sm:$0xff]  }
 0x4ad   :  { %4142 = vmatprep.subr.bf16.mxu0 %v4460_v26  ;;  %v4485_v26 = vld [vmem:[%s6574_s4 + $0x268] sm:$0xff]  }
 0x4b0   :  { %4143 = vmatpush3.bf16.msra.mxu0 %v4461_v50  ;;  %v2697_v50 = vrot.slane %v6264_v61, 1  ;;  %v4490_v61 = vld [vmem:[%s6574_s4 + $0x220] sm:$0xff]  }
 0x4b1   :  { %4144 = vmatprep.subr.bf16.mxu0 %v4462_v44  ;;  %v4486_v44 = vld [vmem:[%s6574_s4 + $0x180] sm:$0xff]  }
 0x4b4   :  { %4145 = vmatpush3.bf16.msra.mxu0 %v4463_v29  ;;  %v4487_v29 = vld [vmem:[%s6574_s4 + $0x228] sm:$0xff]  }
 0x4b5   :  { %4174 = vmatprep.subr.bf16.mxu0 %v4466_v54  ;;  %v2696_v54 = vrot.slane %v6258_v15, 2 }
 0x505   :  { %v2685_v63 = vpop.permute.xlu1 %2684  ;;  %v2683_v45 = vpop.permute.xlu0 %2682 }
 0x506   :  { %v2745_v9 = vsel %vm1469_vm6, %v2670_v46, %v2683_v45  ;;  %v2689_v19 = vsel %vm1469_vm6, %v2683_v45, %v2685_v63  ;;  %v4489_v46 = vld [vmem:[%s6574_s4 + $0x2f8] sm:$0xff]   ;;  %v2732_v45 = vrot.slane %v6258_v15, 4  ;;  %v4493_v15 = vld [vmem:[%s6574_s4 + $0x2f0] sm:$0xff]  }
 0x507   :  { %3633 = vmatprep.mubr.bf16.mxu0 %v2689_v19 }
 0x508   :  { %3634 = vmatmul.mubr.bf16.vlgmr.msra.gmra.mxu0 %v2745_v9  ;;  %v2734_v9 = vsel %vm2527_vm8, %v2733_v27, %v2732_v45 }
 0x509   :  { %4175 = vmatpush3.bf16.msra.mxu0 %v4467_v16  ;;  %v1090_v62 = vpop.permute.xlu1 %1089  ;;  %v1313_v41 = vpop.permute.xlu0 %1312  ;;  %v4491_v16 = vld [vmem:[%s6574_s4 + $0x2b8] sm:$0xff]  }
 0x50a   :  { %4176 = vmatprep.subr.bf16.mxu0 %v4468_v53  ;;  %v1468_v36 = vsel %vm1424_vm5, %v6636_v56, %v1090_v62  ;;  %v1646_v17 = vsel %vm1424_vm5, %v6637_v52, %v1313_v41  ;;  %v4492_v53 = vld [vmem:[%s6574_s4 + $0x258] sm:$0xff]   ;;  %v2739_v62 = vpack.c.b16 %v2734_v9, %v2734_v9 }
 0x50b   :  { %v4494_v41 = vld [vmem:[%s6574_s4 + $0x218] sm:$0xff]  }
 0x50c   :  { %v4505_v56 = vld [vmem:[%s6574_s4 + $0x2d8] sm:$0xff]  }
 0x50d   :  { %4177 = vmatpush3.bf16.msra.mxu0 %v4469_v51  ;;  %v1203_v11 = vpop.permute.xlu1 %1202  ;;  %v1359_v8 = vpop.permute.xlu0 %1358  ;;  %v4495_v51 = vld [vmem:[%s6574_s4 + $0x2b0] sm:$0xff]   ;;  %v4507_v52 = vld [vmem:[%s6574_s4 + $0x298] sm:$0xff]  }
 0x50e   :  { %4178 = vmatprep.subr.bf16.mxu0 %v4470_v12  ;;  %v1513_v23 = vsel %vm1469_vm6, %v1468_v36, %v1203_v11  ;;  %v1690_v32 = vsel %vm1469_vm6, %v1646_v17, %v1359_v8  ;;  %v4496_v12 = vld [vmem:[%s6574_s4 + $0x250] sm:$0xff]   ;;  %v4499_v8 = vld [vmem:[%s6574_s4 + $0x2a8] sm:$0xff]   ;;  %v4506_v36 = vld [vmem:[%s6574_s4 + $0x200] sm:$0xff]  }
 0x50f   :  { %v4498_v11 = vld [vmem:[%s6574_s4 + $0x210] sm:$0xff]  }
 0x510   :  { %v4508_v17 = vld [vmem:[%s6574_s4 + $0x2d0] sm:$0xff]  }
 0x511   :  { %4179 = vmatpush3.bf16.msra.mxu0 %v4471_v37  ;;  %v1249_v42 = vpop.permute.xlu1 %1248  ;;  %v1419_v47 = vpop.permute.xlu0 %1418  ;;  %v4500_v37 = vld [vmem:[%s6574_s4 + $0x248] sm:$0xff]  }
 0x512   :  { %v1755_v22 = vsel %vm1514_vm7, %v1690_v32, %v1419_v47  ;;  %4180 = vmatprep.subr.bf16.mxu0 %v4472_v30  ;;  %v1579_v20 = vsel %vm1514_vm7, %v1513_v23, %v1249_v42  ;;  %v4502_v30 = vld [vmem:[%s6574_s4 + $0x208] sm:$0xff]   ;;  %v4510_v23 = vld [vmem:[%s6574_s4 + $0x318] sm:$0xff]   ;;  %v4545_v32 = vmov 0.0  }
 0x513   :  { %2165 = vmatprep.mubr.bf16.mxu1 %v1755_v22  ;;  %v4511_v42 = vld [vmem:[%s6574_s4 + $0x2c8] sm:$0xff]   ;;  %v4514_v22 = vld [vmem:[%s6574_s4 + $0x2c0] sm:$0xff]  }
 0x514   :  { %2166 = vmatmul.mubr.bf16.gmra.mxu1 %v1579_v20  ;;  %v2730_v20 = vrot.slane %v6266_v3, 3  ;;  %v2736_v3 = vrot.slane %v6304_v33, 3 }
 0x515   :  { %4181 = vmatpush3.bf16.msra.mxu0 %v4473_v38  ;;  %v6413_v13 = vpop.permute.xlu1 %2719  ;;  %3673 = vmatprep.mubr.bf16.mxu1 %v2702_v31  ;;  %v2687_v2 = vpop.permute.xlu0 %2686  ;;  %v4512_v38 = vld [vmem:[%s6574_s4 + $0x288] sm:$0xff]  }
 0x516   :  { %4182 = vmatprep.subr.bf16.mxu0 %v4474_v10  ;;  %v2749_v24 = vsel %vm1469_vm6, %v2704_v25, %v6413_v13  ;;  %v2690_v43 = vsel %vm1469_vm6, %v2685_v63, %v2687_v2  ;;  %v2698_v63 = vsel %vm2527_vm8, %v2697_v50, %v2696_v54  ;;  %v4515_v10 = vld [vmem:[%s6574_s4 + $0x280] sm:$0xff]   ;;  %v4516_v31 = vld [vmem:[%s6574_s4 + $0x308] sm:$0xff]   ;;  %v2729_v25 = vrot.slane %v6260_v7, 4 }
 0x517   :  { %3713 = vmatprep.mubr.bf16.mxu0 %v2749_v24  ;;  %v2703_v19 = vpack.c.b16 %v2698_v63, %v2698_v63  ;;  %v4517_v2 = vld [vmem:[%s6574_s4 + $0x300] sm:$0xff]  }
 0x519   :  { %4183 = vmatpush3.bf16.msra.mxu0 %v4475_v6  ;;  %v2724_v14 = vpop.permute.xlu1 %2723  ;;  %v6429_v5 = vpop.permute.xlu0 %2721  ;;  %v2735_v6 = vrot.slane %v6295_v4, 4 }
 0x51a   :  { %4184 = vmatprep.subr.bf16.mxu0 %v4476_v57  ;;  %v2726_v55 = vsel %vm1469_vm6, %v6429_v5, %v2724_v14  ;;  %v2725_v47 = vsel %vm1469_vm6, %v6413_v13, %v6429_v5  ;;  %v2731_v13 = vsel %vm2527_vm8, %v2730_v20, %v2729_v25 }
 0x51b   :  { %v2738_v24 = vpack.c.b16 %v2731_v13, %v2731_v13  ;;  %v2737_v57 = vsel %vm2527_vm8, %v2736_v3, %v2735_v6 }
 0x51c   :  { %3674 = vmatmul.mubr.bf16.vlgmr.msra.gmra.mxu1 %v2690_v43  ;;  %v2740_v7 = vpack.c.b16 %v2737_v57, %v2737_v57 }
 0x51d   :  { %4185 = vmatpush3.bf16.msra.mxu0 %v4478_v0  ;;  %4197 = vmatpush3.bf16.msra.mxu1 %v4479_v58 }
 0x51e   :  { %3753 = vmatprep.mubr.bf16.mxu1 %v2726_v55  ;;  %4186 = vmatprep.subr.bf16.mxu0 %v4480_v39 }
 0x51f   :  { %4198 = vmatprep.subr.bf16.mxu1 %v4481_v28 }
 0x521   :  { %4187 = vmatpush3.bf16.msra.mxu0 %v4482_v48  ;;  %4199 = vmatpush3.bf16.msra.mxu1 %v4483_v35 }
 0x522   :  { %4188 = vmatprep.subr.bf16.mxu0 %v4484_v34  ;;  %4200 = vmatprep.subr.bf16.mxu1 %v4485_v26 }
 0x525   :  { %4189 = vmatpush3.bf16.msra.mxu0 %v4486_v44  ;;  %4201 = vmatpush3.bf16.msra.mxu1 %v4487_v29 }
 0x526   :  { %4202 = vmatprep.subr.bf16.mxu1 %v4488_v40  ;;  %4218 = vmatprep.subr.bf16.mxu0 %v4489_v46 }
 0x528   :  { %3714 = vmatmul.mubr.bf16.vlgmr.msra.gmra.mxu0 %v2703_v19 }
 0x529   :  { %4203 = vmatpush3.bf16.msra.mxu1 %v4490_v61  ;;  %4219 = vmatpush3.bf16.msra.mxu0 %v4491_v16  ;;  %v3953_v61 = vld [vmem:[%s6575_s5] ss:$0 sm:$0xff]  ;;  %s4518_s5 = scalar_lea.vmem %s3849_s8, 32 }
 0x52a   :  { %3793 = vmatprep.mubr.bf16.mxu0 %v2739_v62  ;;  %4204 = vmatprep.subr.bf16.mxu1 %v4492_v53  ;;  %p4519_p0 = scmp.ne.s32.totalorder %s3849_s8, %s4518_s5  ;;  %p4524_p2 = scmp.lt.s32.totalorder %s4518_s5, %s4518_s5 }
 0x52b   :  { %4220 = vmatprep.subr.bf16.mxu0 %v4493_v15 }
 0x52c   :  { %p4525_p3 = por %p4524_p2, %p4523_p1 }
 0x52d   :  { %4205 = vmatpush3.bf16.msra.mxu1 %v4494_v41  ;;  %4221 = vmatpush3.bf16.msra.mxu0 %v4495_v51 }
 0x52e   :  { %4206 = vmatprep.subr.bf16.mxu1 %v4496_v12  ;;  %4222 = vmatprep.subr.bf16.mxu0 %v4497_v21  ;;  %p4526_p4 = pnand %p4525_p3, %p4519_p0 }
 0x531   :  { %4207 = vmatpush3.bf16.msra.mxu1 %v4498_v11  ;;  %4223 = vmatpush3.bf16.msra.mxu0 %v4499_v8 }
 0x532   :  { %4208 = vmatprep.subr.bf16.mxu1 %v4500_v37  ;;  %4224 = vmatprep.subr.bf16.mxu0 %v4501_v49 }
 0x535   :  { %4209 = vmatpush3.bf16.msra.mxu1 %v4502_v30  ;;  %4225 = vmatpush3.bf16.msra.mxu0 %v4503_v18 }
 0x536   :  { %4210 = vmatprep.subr.bf16.mxu1 %v4504_v1  ;;  %4226 = vmatprep.subr.bf16.mxu0 %v4505_v56 }
 0x539   :  { %4211 = vmatpush3.bf16.msra.mxu1 %v4506_v36  ;;  %4227 = vmatpush3.bf16.msra.mxu0 %v4507_v52 }
 0x53a   :  { %4228 = vmatprep.subr.bf16.mxu0 %v4508_v17  ;;  %4351 = vmatprep.subr.bf16.mxu1 %v4545_v32 }
 0x53c   :  { %3754 = vmatmul.mubr.bf16.vlgmr.msra.gmra.mxu1 %v2725_v47 }
 0x53d   :  { %4229 = vmatpush3.bf16.msra.mxu0 %v4509_v59  ;;  %4352 = vmatpush3.bf16.msra.mxu1 %v4510_v23 }
 0x53e   :  { %4230 = vmatprep.subr.bf16.mxu0 %v4511_v42  ;;  %4353 = vmatprep.subr.bf16.mxu1 %v4545_v32 }
 0x53f   :  { %4359 = vmatprep.mubr.msk.bf16.mxu1 %vm4546_vm12, %v4545_v32 }
 0x541   :  { %4231 = vmatpush3.bf16.msra.mxu0 %v4512_v38  ;;  %4354 = vmatpush3.bf16.msra.mxu1 %v4513_v60 }
 0x542   :  { %4232 = vmatprep.subr.bf16.mxu0 %v4514_v22  ;;  %4355 = vmatprep.subr.bf16.mxu1 %v4545_v32 }
 0x545   :  { %4233 = vmatpush3.bf16.msra.mxu0 %v4515_v10  ;;  %4356 = vmatpush3.bf16.msra.mxu1 %v4516_v31 }
 0x546   :  { %4357 = vmatprep.subr.bf16.mxu1 %v4545_v32 }
 0x548   :  { %3794 = vmatmul.mubr.bf16.vlgmr.msra.gmra.mxu0 %v2738_v24 }
 0x549   :  { %4358 = vmatpush3.bf16.msra.mxu1 %v4517_v2 }
 0x54c   :  { %4360 = vmatmul.mubr.msk.bf16.vlgmr.msra.gmra.mxu1 %vm1469_vm6, %v2740_v7 }
 0x556   :  { %v4124_v0 = vpop.f32.mrf.mxu0 }
 0x558   :  { %v4125_v58 = vpop.f32.mrf.mxu0 }
 0x559   :  { %v4126_v33 = vadd.f32 %v4125_v58, %v4124_v0 }
 0x55a   :  { %v4127_v14 = vpop.f32.mrf.mxu0 }
 0x55b   :  { %v3596_v53 = vadd.f32 %v4126_v33, %v3953_v61 }
 0x55c   :  { %v4128_v5 = vpop.f32.mrf.mxu0 }
 0x5c8   :  { %v4146_v39 = vpop.f32.mrf.mxu0 }
 0x5ca   :  { %v4147_v43 = vpop.f32.mrf.mxu0 }
 0x5cb   :  { %v4148_v9 = vadd.f32 %v4147_v43, %v4146_v39 }
 0x5cc   :  { %v4149_v28 = vpop.f32.mrf.mxu0 }
 0x5cd   :  { %v3636_v62 = vadd.f32 %v4148_v9, %v3596_v53 }
 0x5ce   :  { %v4150_v55 = vpop.f32.mrf.mxu0 }
 0x5d4   :  { %v2167_v48 = vpop.f32.mrf.mxu1 }
 0x5d6   :  { %v2168_v4 = vpop.f32.mrf.mxu1 }
 0x5d8   :  { %v2169_v35 = vpop.f32.mrf.mxu1 }
 0x5da   :  { %v2170_v34 = vpop.f32.mrf.mxu1 }
 0x5dc   :  { %v4168_v26 = vpop.f32.mrf.mxu1 }
 0x5de   :  { %v4169_v50 = vpop.f32.mrf.mxu1 }
 0x5df   :  { %v4170_v15 = vadd.f32 %v4169_v50, %v4168_v26 }
 0x5e0   :  { %v4171_v44 = vpop.f32.mrf.mxu1 }
 0x5e1   :  { %v3676_v51 = vadd.f32 %v4170_v15, %v3636_v62 }
 0x5e2   :  { %v4172_v29 = vpop.f32.mrf.mxu1 }
 0x5e8   :  { %v4190_v54 = vpop.f32.mrf.mxu0 }
 0x5ea   :  { %v4191_v27 = vpop.f32.mrf.mxu0 }
 0x5eb   :  { %v4192_v41 = vadd.f32 %v4191_v27, %v4190_v54 }
 0x5ec   :  { %v4193_v40 = vpop.f32.mrf.mxu0 }
 0x5ed   :  { %v3716_v11 = vadd.f32 %v4192_v41, %v3676_v51 }
 0x5ee   :  { %v4194_v46 = vpop.f32.mrf.mxu0 }
 0x5fc   :  { %v4212_v63 = vpop.f32.mrf.mxu1 }
 0x5fe   :  { %v4213_v45 = vpop.f32.mrf.mxu1 }
 0x5ff   :  { %v4214_v12 = vadd.f32 %v4213_v45, %v4212_v63 }
 0x600   :  { %v4215_v16 = vpop.f32.mrf.mxu1 }
 0x601   :  { %v3756_v37 = vadd.f32 %v4214_v12, %v3716_v11 }
 0x602   :  { %v4216_v19 = vpop.f32.mrf.mxu1 }
 0x608   :  { %v4234_v21 = vpop.f32.mrf.mxu0 }
 0x60a   :  { %v4235_v8 = vpop.f32.mrf.mxu0 }
 0x60b   :  { %v4236_v49 = vadd.f32 %v4235_v8, %v4234_v21 }
 0x60c   :  { %v4237_v30 = vpop.f32.mrf.mxu0  ;;  %v3835_v18 = vpop.f32.mrf.mxu1 }
 0x60d   :  { %v3796_v1 = vadd.f32 %v4236_v49, %v3756_v37 }
 0x60e   :  { %v4238_v56 = vpop.f32.mrf.mxu0  ;;  %v4361_v36 = vpop.f32.mrf.mxu1 }
 0x60f   :  { %v3836_v52 = vadd.f32 %v3835_v18, %v3796_v1 }
 0x610   :  { %v3838_v17 = vpop.f32.mrf.mxu1 }
 0x611   :  { %3841 = vst [vmem:[#allocation2] sm:$0x3] %v3836_v52 }
 0x612   :  { %v4362_v59 = vpop.f32.mrf.mxu1 }
 0x613   :  { %4529 = shalt.err (!%p4526_p4)
}
 0x614   :  { %3851 = dma.vmem_to_hbm [thread:$0]  %s3849_s8, 32, %s6576_s6, [#allocation3]  }
 0x615   :  { %4538 = dma.done.wait [#allocation3], 32  }
 0x616   :  { %4539 = vsyncadd [#allocation3], 4294967264 }
 0x617   :  { %3855 = vsyncpa [#allocation3], 1 }

</bundles_post_ra>
